<compile_context>
chip_gen: v6e
topology: v6e:2x2x1
jax: 0.10.0
libtpu: 0.0.40
codegen_flags: <defaults>
</compile_context>

<pallas_src>
import math

import jax
import jax.numpy as jnp
from jax import lax
from jax.experimental import pallas as pl
from jax.experimental.pallas import tpu as pltpu

HIDDEN = 128         # hidden_dims (module default; lane-dense on TPU)
N_LAYERS = 2
GAT_HEADS = 3        # gat_num_heads
LEAKY_SLOPE = 0.01   # F.leaky_relu default
NPAD = 128           # padded node-row count for every node-indexed table


def _round8(n):
    return ((n + 7) // 8) * 8


# ----------------------------------------------------------------------------
# Deterministic parameter init (shapes from the module's __init__)
# ----------------------------------------------------------------------------
def _xavier_uniform(key, shape, gain):
    fan_out, fan_in = shape
    limit = gain * math.sqrt(6.0 / (fan_in + fan_out))
    return jax.random.uniform(key, shape, jnp.float32, -limit, limit)


def _xavier_normal(key, shape, gain):
    fan_out, fan_in = shape
    std = gain * math.sqrt(2.0 / (fan_in + fan_out))
    return std * jax.random.normal(key, shape, jnp.float32)


def init_params(key, n_ntype=20, n_c1=10, n_c2=10):
    keys = iter(jax.random.split(key, 64))
    gain = math.sqrt(2.0)  # calculate_gain('relu')
    params = {
        "ntype_params": jax.random.normal(next(keys), (n_ntype, HIDDEN), jnp.float32),
        "c1type_params": jax.random.normal(next(keys), (n_c1, HIDDEN), jnp.float32),
        "c2type_params": jax.random.normal(next(keys), (n_c2, HIDDEN), jnp.float32),
        "node_bias": jnp.zeros((n_ntype,), jnp.float32),   # ItemToItemScorer bias (zeros)
        "c1_bias": jnp.zeros((n_c1,), jnp.float32),
        "convs": [],
    }
    for _ in range(N_LAYERS):
        Qw = _xavier_uniform(next(keys), (HIDDEN, HIDDEN), gain)          # (out,in)
        Ww = _xavier_uniform(next(keys), (HIDDEN, 2 * HIDDEN), gain)      # (out,in) on cat([nb,tgt])
        heads = jnp.stack([_xavier_normal(next(keys), (1, 3 * HIDDEN), gain)[0]
                           for _ in range(GAT_HEADS)], axis=0)            # (heads, 3H)
        params["convs"].append({
            "Qw_T": Qw.T,                                  # (H,H)
            "Qb": jnp.zeros((HIDDEN,), jnp.float32),
            "W_catT": Ww.T,                                # (2H,H) — stacked [Wneighbor;Wtarget]
            "Wb": jnp.zeros((HIDDEN,), jnp.float32),
            "Wa_catT": heads.T,                            # (3H,heads) — stacked [src|dst|ctx]
        })
    return params


# ----------------------------------------------------------------------------
# Synthetic graph (replaces DGL blocks / pos / neg graphs)
# ----------------------------------------------------------------------------
def build_graph(key, n_ntype=20):
    k = jax.random.split(key, 10)
    S0, D0, E0 = 12, 8, 24      # block 0: src, dst, edges
    S1, D1, E1 = 8, 4, 16       # block 1  (D0 == S1, seeds = first D1 nodes)
    EP = 6                      # pos/neg graph edges

    def make_block(ku, kv, ns, nd, ne):
        eu = jax.random.randint(ku, (ne,), 0, ns, dtype=jnp.int32)
        ev = jax.random.randint(kv, (ne,), 0, nd, dtype=jnp.int32)
        return {"eu": eu, "ev": ev, "num_src": ns, "num_dst": nd}

    blocks = [make_block(k[0], k[1], S0, D0, E0),
              make_block(k[2], k[3], S1, D1, E1)]

    src_ids0 = jax.random.permutation(k[4], n_ntype)[:S0].astype(jnp.int32)  # blocks[0].srcdata NID
    dst_ids_last = src_ids0[:D1]                                             # blocks[-1].dstdata NID

    ctx0 = jax.random.normal(k[5], (E0, HIDDEN), jnp.float32)   # context_blocks[0]['h']
    ctx1 = jax.random.normal(k[6], (E1, HIDDEN), jnp.float32)   # context_blocks[-1]['h']

    pu = jax.random.randint(k[7], (EP,), 0, D1, dtype=jnp.int32)
    pv = jax.random.randint(k[8], (EP,), 0, D1, dtype=jnp.int32)
    nu = pu                                                     # PinSAGE-style negatives: same src
    nv = jax.random.randint(k[9], (EP,), 0, D1, dtype=jnp.int32)

    return {"blocks": blocks, "src_ids0": src_ids0, "dst_ids_last": dst_ids_last,
            "ctx0": ctx0, "ctx1": ctx1, "pu": pu, "pv": pv, "nu": nu, "nv": nv,
            "pair_nid": dst_ids_last}


# ----------------------------------------------------------------------------
# MultiSAGEModel.forward (level = 1 -> node_scorer): one pallas_call total.
# ----------------------------------------------------------------------------
def multisage_model_forward(params, g, level=1):
    blocks = g["blocks"]
    H = HIDDEN
    S0 = blocks[0]["num_src"]
    E0 = blocks[0]["eu"].shape[0]
    E1 = blocks[1]["eu"].shape[0]
    D1 = blocks[1]["num_dst"]
    EP = g["pu"].shape[0]
    GS = _round8(EP)               # 8-aligned row stride for the merged scorer gather

    if level == 1:
        bias = params["node_bias"]
    elif level == 2:
        bias = params["c1_bias"]
    else:
        raise ValueError

    # ---------------- trace-time glue: NID gathers + slab packing ----------------
    # blocks[-1].dstdata nodes are a prefix of blocks[0].srcdata nodes (DGL block
    # convention), so h_item_dst == h_item[:D1]; the residual needs no 2nd gather.
    h_item = params["ntype_params"][g["src_ids0"]]                       # (S0, H)
    h_pad = jnp.zeros((NPAD, H), jnp.float32).at[:S0, :].set(h_item)

    # (1) activation slab: [h_item padded to NPAD rows ; ctx0 ; ctx1]
    act_slab = jnp.concatenate([h_pad, g["ctx0"], g["ctx1"]], axis=0)    # (NPAD+E0+E1, H)

    # (2) one-hot slab (all gathers / scatter-transposes, 128-lane padded):
    #     [gu0 ; gv0 ; gu1 ; gv1 ; scorer(pu) ; scorer(pv) ; scorer(nv)]
    def edge_onehot(idx):
        return jax.nn.one_hot(idx, NPAD, dtype=jnp.float32)              # (E, NPAD)

    def scorer_onehot(idx):
        oh = jax.nn.one_hot(idx, NPAD, dtype=jnp.float32)                # (EP, NPAD)
        return jnp.pad(oh, ((0, GS - idx.shape[0]), (0, 0)))             # 8-aligned group

    # nu == pu (PinSAGE negatives share the source), so the neg-graph source
    # gather and its bias row are reused from the pos graph inside the kernel.
    oh_slab = jnp.concatenate([
        edge_onehot(blocks[0]["eu"]), edge_onehot(blocks[0]["ev"]),
        edge_onehot(blocks[1]["eu"]), edge_onehot(blocks[1]["ev"]),
        scorer_onehot(g["pu"]), scorer_onehot(g["pv"]), scorer_onehot(g["nv"]),
    ], axis=0)                                                           # (2E0+2E1+3GS, NPAD)

    # (3) weight slab per layer: [Qw^T ; Wa (heads in first lanes, rest zero) ;
    #     W_cat^T * 1/(E*heads)] -> (6H, H); both layers stacked -> (12H, H).
    def layer_weight_slab(lp, n_e):
        wa_pad = jnp.zeros((3 * H, H), jnp.float32).at[:, :GAT_HEADS].set(lp["Wa_catT"])
        wcat = lp["W_catT"] * (1.0 / (n_e * GAT_HEADS))   # fold 1/E and 1/heads (W is linear)
        return jnp.concatenate([lp["Qw_T"], wa_pad, wcat], axis=0)

    w_slab = jnp.concatenate([layer_weight_slab(params["convs"][0], E0),
                              layer_weight_slab(params["convs"][1], E1)], axis=0)

    # (4) bias slab: [Qb0 ; Wb0 ; Qb1 ; Wb1 ; bias_src_pos ; bias_dst_pos ; bias_dst_neg ; 0]
    nid = g["pair_nid"]

    def pad_row(v):
        return jnp.zeros((1, H), jnp.float32).at[0, :v.shape[0]].set(v)

    b_slab = jnp.concatenate([
        params["convs"][0]["Qb"].reshape(1, -1), params["convs"][0]["Wb"].reshape(1, -1),
        params["convs"][1]["Qb"].reshape(1, -1), params["convs"][1]["Wb"].reshape(1, -1),
        pad_row(bias[nid[g["pu"]]]), pad_row(bias[nid[g["pv"]]]), pad_row(bias[nid[g["nv"]]]),
        jnp.zeros((1, H), jnp.float32),
    ], axis=0)                                                           # (8, H)

    # ---------------- static row offsets (Python ints) ----------------
    r_ctx0, r_ctx1 = NPAD, NPAD + E0
    o_gu0, o_gv0 = 0, E0
    o_gu1, o_gv1 = 2 * E0, 2 * E0 + E1
    o_sc = 2 * E0 + 2 * E1
    WROWS = 6 * H
    TRANS_LHS = (((0,), (0,)), ((), ()))     # contract over the edge axis (scatter-sum on MXU)

    def conv_layer(h_full, ctx, gu, gv, w_ref, w_off, qb, wb, head_mask):
        # z_src = relu(Q(h_src))
        # TODO(synk): nn.Dropout(0.5) evaluated in eval mode (identity) for determinism.
        qw_t = w_ref[w_off:w_off + H, :]
        z_src = jnp.maximum(jnp.dot(h_full, qw_t, preferred_element_type=jnp.float32) + qb, 0.0)

        # edge-endpoint gathers: exact f32 one-hot matmuls (dst nodes are a src prefix)
        zs = jnp.dot(gu, z_src, preferred_element_type=jnp.float32)      # (E, H)
        zt = jnp.dot(gv, h_full, preferred_element_type=jnp.float32)     # (E, H)
        zc = jnp.maximum(ctx, 0.0)                                       # act(context)

        # additive attention: all heads in one (E,3H)@(3H,128) MXU dot; only the
        # first GAT_HEADS output lanes carry real heads (zero weight columns elsewhere).
        wa = w_ref[w_off + H:w_off + 4 * H, :]
        cat3 = jnp.concatenate([zs, zt, zc], axis=1)                     # (E, 3H)
        scores = jnp.dot(cat3, wa, preferred_element_type=jnp.float32)   # (E, 128)
        scores = jnp.maximum(scores, LEAKY_SLOPE * scores)               # leaky_relu

        # edge_softmax over incoming edges of each destination; the global (per-head)
        # max-shift cancels per destination.
        # TODO(synk): switch to a per-destination max-shift at production scale.
        scores = scores - jnp.max(scores, axis=0, keepdims=True)
        exp_s = jnp.exp(scores) * head_mask                              # zero the padded head lanes
        denom = lax.dot_general(gv, exp_s, TRANS_LHS,
                                preferred_element_type=jnp.float32)      # (NPAD,128) per-dst sums
        inv_d = pl.reciprocal(jnp.maximum(denom, 1e-30), approx=True)    # EUP
        inv_e = jnp.dot(gv, inv_d, preferred_element_type=jnp.float32)   # (E,128) gather back
        attn = exp_s * inv_e
        a_sum = jnp.sum(attn, axis=1, keepdims=True)                     # (E,1); head-mean folded into wcat

        # messages: one scatter-sum over cat([neighbors, targets]), one (2H,H) projection
        zc_a = zc * a_sum
        msg = jnp.concatenate([zs * zc_a, zt * zc_a], axis=1)            # (E, 2H)
        agg = lax.dot_general(gv, msg, TRANS_LHS,
                              preferred_element_type=jnp.float32)        # (NPAD, 2H)
        wcat = w_ref[w_off + 4 * H:w_off + 6 * H, :]
        z = jnp.maximum(jnp.dot(agg, wcat, preferred_element_type=jnp.float32) + wb, 0.0)

        # row-wise L2 normalize with rsqrt (EUP); the eps clamp reproduces the torch
        # `z_norm == 0 -> 1` guard (all-zero rows stay zero).
        sumsq = jnp.sum(z * z, axis=1, keepdims=True)
        return z * lax.rsqrt(jnp.maximum(sumsq, 1e-24))                  # (NPAD, H)

    def kernel(act_ref, oh_ref, w_ref, b_ref, o_ref):
        b_all = b_ref[...]                                               # (8,128): one tile load
        head_mask = (lax.broadcasted_iota(jnp.int32, (1, H), 1)
                     < GAT_HEADS).astype(jnp.float32)

        h0 = act_ref[0:NPAD, :]                                          # h_item, zero-padded rows
        h1 = conv_layer(h0, act_ref[r_ctx0:r_ctx0 + E0, :],
                        oh_ref[o_gu0:o_gu0 + E0, :], oh_ref[o_gv0:o_gv0 + E0, :],
                        w_ref, 0, b_all[0:1, :], b_all[1:2, :], head_mask)
        h2 = conv_layer(h1, act_ref[r_ctx1:r_ctx1 + E1, :],
                        oh_ref[o_gu1:o_gu1 + E1, :], oh_ref[o_gv1:o_gv1 + E1, :],
                        w_ref, WROWS, b_all[2:3, :], b_all[3:4, :], head_mask)

        # residual: h_rep = h_item_dst + multisage(...); only rows < D1 are ever read back.
        h_rep = h0 + h2                                                  # (NPAD, H)

        # ItemToItemScorer on pos & neg graphs: ONE merged gather dot, then per-edge u·v.
        hcat = jnp.dot(oh_ref[o_sc:o_sc + 3 * GS, :], h_rep,
                       preferred_element_type=jnp.float32)               # (3*GS, H)
        hu_p = hcat[0:EP]
        hv_p = hcat[GS:GS + EP]
        hv_n = hcat[2 * GS:2 * GS + EP]
        pos_dot = jnp.sum(hu_p * hv_p, axis=1, keepdims=True)            # (EP, 1)
        neg_dot = jnp.sum(hu_p * hv_n, axis=1, keepdims=True)            # nu == pu -> reuse hu_p

        bsp = b_all[4:5, 0:EP]     # bias[NID[pu]] == bias[NID[nu]]
        bdp = b_all[5:6, 0:EP]
        bdn = b_all[6:7, 0:EP]
        # (EP,1)+(1,EP)+(1,EP) deliberately reproduces torch's (E,1)+(E,)+(E,) broadcast.
        pos_score = pos_dot + bsp + bdp                                  # (EP, EP)
        neg_score = neg_dot + bsp + bdn
        o_ref[...] = jnp.maximum(neg_score - pos_score + 1.0, 0.0)

    # Single-step kernel: no grid, no pipelining, whole-array VMEM residency.
    # TODO(synk): at production scale replace the one-hot matmul gathers with
    # scalar-prefetched edge indices (PrefetchScalarGridSpec) / DMA gathers and a
    # tiled edge grid with a leading 'parallel' axis (v7x has 2 TensorCores, 64 MiB VMEM).
    vmem = pl.BlockSpec(memory_space=pltpu.MemorySpace.VMEM)
    return pl.pallas_call(
        kernel,
        in_specs=[vmem, vmem, vmem, vmem],
        out_specs=vmem,
        out_shape=jax.ShapeDtypeStruct((EP, EP), jnp.float32),
    )(act_slab, oh_slab, w_slab, b_slab)


if __name__ == "__main__":
    key = jax.random.PRNGKey(0)
    k_params, k_graph = jax.random.split(key)
    params = init_params(k_params)
    graph = build_graph(k_graph)

    out = multisage_model_forward(params, graph, level=1)
    out = jax.block_until_ready(out)
    assert out.shape == (6, 6) and out.dtype == jnp.float32
    assert bool(jnp.all(jnp.isfinite(out)))
    print("KERNEL_OK")
</pallas_src>

<mosaic_0001>
module attributes {stable_mosaic.version = 11 : i64} {
  func.func @kernel(%arg0: memref<168x128xf32, #tpu.memory_space<vmem>>, %arg1: memref<104x128xf32, #tpu.memory_space<vmem>>, %arg2: memref<1536x128xf32, #tpu.memory_space<vmem>>, %arg3: memref<8x128xf32, #tpu.memory_space<vmem>>, %arg4: memref<6x6xf32, #tpu.memory_space<vmem>>) attributes {dimension_semantics = [], scalar_prefetch = 0 : i64, scratch_operands = 0 : i64, tpu.core_type = #tpu.core_type<tc>} {
    %c0 = arith.constant 0 : index
    %c0_0 = arith.constant 0 : index
    %0 = vector.load %arg3[%c0, %c0_0] : memref<8x128xf32, #tpu.memory_space<vmem>>, vector<8x128xf32>
    %1 = tpu.iota {dimensions = array<i32: 1>} : vector<1x128xi32>
    %c3_i32 = arith.constant 3 : i32
    %2 = vector.broadcast %c3_i32 : i32 to vector<1x128xi32>
    %3 = arith.cmpi slt, %1, %2 : vector<1x128xi32>
    %4 = arith.extui %3 : vector<1x128xi1> to vector<1x128xi32>
    %5 = arith.sitofp %4 : vector<1x128xi32> to vector<1x128xf32>
    %c0_1 = arith.constant 0 : index
    %c0_2 = arith.constant 0 : index
    %6 = vector.load %arg0[%c0_1, %c0_2] : memref<168x128xf32, #tpu.memory_space<vmem>>, vector<128x128xf32>
    %c128 = arith.constant 128 : index
    %c0_3 = arith.constant 0 : index
    %7 = vector.load %arg0[%c128, %c0_3] : memref<168x128xf32, #tpu.memory_space<vmem>>, vector<24x128xf32>
    %c0_4 = arith.constant 0 : index
    %c0_5 = arith.constant 0 : index
    %8 = vector.load %arg1[%c0_4, %c0_5] : memref<104x128xf32, #tpu.memory_space<vmem>>, vector<24x128xf32>
    %c24 = arith.constant 24 : index
    %c0_6 = arith.constant 0 : index
    %9 = vector.load %arg1[%c24, %c0_6] : memref<104x128xf32, #tpu.memory_space<vmem>>, vector<24x128xf32>
    %10 = vector.extract_strided_slice %0 {offsets = [0, 0], sizes = [1, 128], strides = [1, 1]} : vector<8x128xf32> to vector<1x128xf32>
    %11 = vector.extract_strided_slice %0 {offsets = [1, 0], sizes = [1, 128], strides = [1, 1]} : vector<8x128xf32> to vector<1x128xf32>
    %c0_7 = arith.constant 0 : index
    %c0_8 = arith.constant 0 : index
    %12 = vector.load %arg2[%c0_7, %c0_8] : memref<1536x128xf32, #tpu.memory_space<vmem>>, vector<128x128xf32>
    %cst = arith.constant dense<0.000000e+00> : vector<128x128xf32>
    %13 = tpu.matmul %6, %12, %cst {dimension_numbers = #tpu.dot_dimension_numbers<[1], [0], [0], [1], [0, 0, 1, 1], [], []>} : vector<128x128xf32>, vector<128x128xf32>, vector<128x128xf32> -> vector<128x128xf32>
    %14 = vector.broadcast %10 : vector<1x128xf32> to vector<128x128xf32>
    %15 = arith.addf %13, %14 : vector<128x128xf32>
    %cst_9 = arith.constant 0.000000e+00 : f32
    %16 = vector.broadcast %cst_9 : f32 to vector<128x128xf32>
    %17 = arith.maximumf %15, %16 : vector<128x128xf32>
    %cst_10 = arith.constant dense<0.000000e+00> : vector<24x128xf32>
    %18 = tpu.matmul %8, %17, %cst_10 {dimension_numbers = #tpu.dot_dimension_numbers<[1], [0], [0], [1], [0, 0, 1, 1], [], []>} : vector<24x128xf32>, vector<128x128xf32>, vector<24x128xf32> -> vector<24x128xf32>
    %cst_11 = arith.constant dense<0.000000e+00> : vector<24x128xf32>
    %19 = tpu.matmul %9, %6, %cst_11 {dimension_numbers = #tpu.dot_dimension_numbers<[1], [0], [0], [1], [0, 0, 1, 1], [], []>} : vector<24x128xf32>, vector<128x128xf32>, vector<24x128xf32> -> vector<24x128xf32>
    %cst_12 = arith.constant 0.000000e+00 : f32
    %20 = vector.broadcast %cst_12 : f32 to vector<24x128xf32>
    %21 = arith.maximumf %7, %20 : vector<24x128xf32>
    %c128_13 = arith.constant 128 : index
    %c0_14 = arith.constant 0 : index
    %22 = vector.load %arg2[%c128_13, %c0_14] : memref<1536x128xf32, #tpu.memory_space<vmem>>, vector<384x128xf32>
    %23 = tpu.concatenate %18, %19, %21 in 1 : vector<24x128xf32>, vector<24x128xf32>, vector<24x128xf32> -> vector<24x384xf32>
    %cst_15 = arith.constant dense<0.000000e+00> : vector<24x128xf32>
    %24 = tpu.matmul %23, %22, %cst_15 {dimension_numbers = #tpu.dot_dimension_numbers<[1], [0], [0], [1], [0, 0, 1, 1], [], []>} : vector<24x384xf32>, vector<384x128xf32>, vector<24x128xf32> -> vector<24x128xf32>
    %cst_16 = arith.constant 0.00999999977 : f32
    %25 = vector.broadcast %cst_16 : f32 to vector<24x128xf32>
    %26 = arith.mulf %25, %24 : vector<24x128xf32>
    %27 = arith.maximumf %24, %26 : vector<24x128xf32>
    %cst_17 = arith.constant dense<0xFF800000> : vector<128xf32>
    %28 = vector.multi_reduction <maximumf>, %27, %cst_17 [0] : vector<24x128xf32> to vector<128xf32>
    %29 = vector.shape_cast %28 : vector<128xf32> to vector<1x128xf32>
    %30 = vector.broadcast %29 : vector<1x128xf32> to vector<24x128xf32>
    %31 = arith.subf %27, %30 : vector<24x128xf32>
    %32 = math.exp %31 : vector<24x128xf32>
    %33 = vector.broadcast %5 : vector<1x128xf32> to vector<24x128xf32>
    %34 = arith.mulf %32, %33 : vector<24x128xf32>
    %cst_18 = arith.constant dense<0.000000e+00> : vector<128x128xf32>
    %35 = tpu.matmul %9, %34, %cst_18 {dimension_numbers = #tpu.dot_dimension_numbers<[0], [0], [1], [1], [0, 1, 1, 1], [], []>} : vector<24x128xf32>, vector<24x128xf32>, vector<128x128xf32> -> vector<128x128xf32>
    %cst_19 = arith.constant 1.000000e-30 : f32
    %36 = vector.broadcast %cst_19 : f32 to vector<128x128xf32>
    %37 = arith.maximumf %35, %36 : vector<128x128xf32>
    %38 = tpu.reciprocal %37 {approx = true} : vector<128x128xf32> -> vector<128x128xf32>
    %cst_20 = arith.constant dense<0.000000e+00> : vector<24x128xf32>
    %39 = tpu.matmul %9, %38, %cst_20 {dimension_numbers = #tpu.dot_dimension_numbers<[1], [0], [0], [1], [0, 0, 1, 1], [], []>} : vector<24x128xf32>, vector<128x128xf32>, vector<24x128xf32> -> vector<24x128xf32>
    %40 = arith.mulf %34, %39 : vector<24x128xf32>
    %cst_21 = arith.constant dense<0.000000e+00> : vector<24xf32>
    %41 = vector.multi_reduction <add>, %40, %cst_21 [1] : vector<24x128xf32> to vector<24xf32>
    %42 = vector.shape_cast %41 : vector<24xf32> to vector<24x1xf32>
    %43 = vector.broadcast %42 : vector<24x1xf32> to vector<24x128xf32>
    %44 = arith.mulf %21, %43 : vector<24x128xf32>
    %45 = arith.mulf %18, %44 : vector<24x128xf32>
    %46 = arith.mulf %19, %44 : vector<24x128xf32>
    %47 = tpu.concatenate %45, %46 in 1 : vector<24x128xf32>, vector<24x128xf32> -> vector<24x256xf32>
    %cst_22 = arith.constant dense<0.000000e+00> : vector<128x256xf32>
    %48 = tpu.matmul %9, %47, %cst_22 {dimension_numbers = #tpu.dot_dimension_numbers<[0], [0], [1], [1], [0, 1, 1, 1], [], []>} : vector<24x128xf32>, vector<24x256xf32>, vector<128x256xf32> -> vector<128x256xf32>
    %c512 = arith.constant 512 : index
    %c0_23 = arith.constant 0 : index
    %49 = vector.load %arg2[%c512, %c0_23] : memref<1536x128xf32, #tpu.memory_space<vmem>>, vector<256x128xf32>
    %cst_24 = arith.constant dense<0.000000e+00> : vector<128x128xf32>
    %50 = tpu.matmul %48, %49, %cst_24 {dimension_numbers = #tpu.dot_dimension_numbers<[1], [0], [0], [1], [0, 0, 1, 1], [], []>} : vector<128x256xf32>, vector<256x128xf32>, vector<128x128xf32> -> vector<128x128xf32>
    %51 = vector.broadcast %11 : vector<1x128xf32> to vector<128x128xf32>
    %52 = arith.addf %50, %51 : vector<128x128xf32>
    %cst_25 = arith.constant 0.000000e+00 : f32
    %53 = vector.broadcast %cst_25 : f32 to vector<128x128xf32>
    %54 = arith.maximumf %52, %53 : vector<128x128xf32>
    %55 = arith.mulf %54, %54 : vector<128x128xf32>
    %cst_26 = arith.constant dense<0.000000e+00> : vector<128xf32>
    %56 = vector.multi_reduction <add>, %55, %cst_26 [1] : vector<128x128xf32> to vector<128xf32>
    %57 = vector.shape_cast %56 : vector<128xf32> to vector<128x1xf32>
    %cst_27 = arith.constant 1.000000e-24 : f32
    %58 = vector.broadcast %cst_27 : f32 to vector<128x1xf32>
    %59 = arith.maximumf %57, %58 : vector<128x1xf32>
    %60 = math.rsqrt %59 : vector<128x1xf32>
    %61 = vector.broadcast %60 : vector<128x1xf32> to vector<128x128xf32>
    %62 = arith.mulf %54, %61 : vector<128x128xf32>
    %c152 = arith.constant 152 : index
    %c0_28 = arith.constant 0 : index
    %63 = vector.load %arg0[%c152, %c0_28] : memref<168x128xf32, #tpu.memory_space<vmem>>, vector<16x128xf32>
    %c48 = arith.constant 48 : index
    %c0_29 = arith.constant 0 : index
    %64 = vector.load %arg1[%c48, %c0_29] : memref<104x128xf32, #tpu.memory_space<vmem>>, vector<16x128xf32>
    %c64 = arith.constant 64 : index
    %c0_30 = arith.constant 0 : index
    %65 = vector.load %arg1[%c64, %c0_30] : memref<104x128xf32, #tpu.memory_space<vmem>>, vector<16x128xf32>
    %66 = vector.extract_strided_slice %0 {offsets = [2, 0], sizes = [1, 128], strides = [1, 1]} : vector<8x128xf32> to vector<1x128xf32>
    %67 = vector.extract_strided_slice %0 {offsets = [3, 0], sizes = [1, 128], strides = [1, 1]} : vector<8x128xf32> to vector<1x128xf32>
    %c768 = arith.constant 768 : index
    %c0_31 = arith.constant 0 : index
    %68 = vector.load %arg2[%c768, %c0_31] : memref<1536x128xf32, #tpu.memory_space<vmem>>, vector<128x128xf32>
    %cst_32 = arith.constant dense<0.000000e+00> : vector<128x128xf32>
    %69 = tpu.matmul %62, %68, %cst_32 {dimension_numbers = #tpu.dot_dimension_numbers<[1], [0], [0], [1], [0, 0, 1, 1], [], []>} : vector<128x128xf32>, vector<128x128xf32>, vector<128x128xf32> -> vector<128x128xf32>
    %70 = vector.broadcast %66 : vector<1x128xf32> to vector<128x128xf32>
    %71 = arith.addf %69, %70 : vector<128x128xf32>
    %cst_33 = arith.constant 0.000000e+00 : f32
    %72 = vector.broadcast %cst_33 : f32 to vector<128x128xf32>
    %73 = arith.maximumf %71, %72 : vector<128x128xf32>
    %cst_34 = arith.constant dense<0.000000e+00> : vector<16x128xf32>
    %74 = tpu.matmul %64, %73, %cst_34 {dimension_numbers = #tpu.dot_dimension_numbers<[1], [0], [0], [1], [0, 0, 1, 1], [], []>} : vector<16x128xf32>, vector<128x128xf32>, vector<16x128xf32> -> vector<16x128xf32>
    %cst_35 = arith.constant dense<0.000000e+00> : vector<16x128xf32>
    %75 = tpu.matmul %65, %62, %cst_35 {dimension_numbers = #tpu.dot_dimension_numbers<[1], [0], [0], [1], [0, 0, 1, 1], [], []>} : vector<16x128xf32>, vector<128x128xf32>, vector<16x128xf32> -> vector<16x128xf32>
    %cst_36 = arith.constant 0.000000e+00 : f32
    %76 = vector.broadcast %cst_36 : f32 to vector<16x128xf32>
    %77 = arith.maximumf %63, %76 : vector<16x128xf32>
    %c896 = arith.constant 896 : index
    %c0_37 = arith.constant 0 : index
    %78 = vector.load %arg2[%c896, %c0_37] : memref<1536x128xf32, #tpu.memory_space<vmem>>, vector<384x128xf32>
    %79 = tpu.concatenate %74, %75, %77 in 1 : vector<16x128xf32>, vector<16x128xf32>, vector<16x128xf32> -> vector<16x384xf32>
    %cst_38 = arith.constant dense<0.000000e+00> : vector<16x128xf32>
    %80 = tpu.matmul %79, %78, %cst_38 {dimension_numbers = #tpu.dot_dimension_numbers<[1], [0], [0], [1], [0, 0, 1, 1], [], []>} : vector<16x384xf32>, vector<384x128xf32>, vector<16x128xf32> -> vector<16x128xf32>
    %cst_39 = arith.constant 0.00999999977 : f32
    %81 = vector.broadcast %cst_39 : f32 to vector<16x128xf32>
    %82 = arith.mulf %81, %80 : vector<16x128xf32>
    %83 = arith.maximumf %80, %82 : vector<16x128xf32>
    %cst_40 = arith.constant dense<0xFF800000> : vector<128xf32>
    %84 = vector.multi_reduction <maximumf>, %83, %cst_40 [0] : vector<16x128xf32> to vector<128xf32>
    %85 = vector.shape_cast %84 : vector<128xf32> to vector<1x128xf32>
    %86 = vector.broadcast %85 : vector<1x128xf32> to vector<16x128xf32>
    %87 = arith.subf %83, %86 : vector<16x128xf32>
    %88 = math.exp %87 : vector<16x128xf32>
    %89 = vector.broadcast %5 : vector<1x128xf32> to vector<16x128xf32>
    %90 = arith.mulf %88, %89 : vector<16x128xf32>
    %cst_41 = arith.constant dense<0.000000e+00> : vector<128x128xf32>
    %91 = tpu.matmul %65, %90, %cst_41 {dimension_numbers = #tpu.dot_dimension_numbers<[0], [0], [1], [1], [0, 1, 1, 1], [], []>} : vector<16x128xf32>, vector<16x128xf32>, vector<128x128xf32> -> vector<128x128xf32>
    %cst_42 = arith.constant 1.000000e-30 : f32
    %92 = vector.broadcast %cst_42 : f32 to vector<128x128xf32>
    %93 = arith.maximumf %91, %92 : vector<128x128xf32>
    %94 = tpu.reciprocal %93 {approx = true} : vector<128x128xf32> -> vector<128x128xf32>
    %cst_43 = arith.constant dense<0.000000e+00> : vector<16x128xf32>
    %95 = tpu.matmul %65, %94, %cst_43 {dimension_numbers = #tpu.dot_dimension_numbers<[1], [0], [0], [1], [0, 0, 1, 1], [], []>} : vector<16x128xf32>, vector<128x128xf32>, vector<16x128xf32> -> vector<16x128xf32>
    %96 = arith.mulf %90, %95 : vector<16x128xf32>
    %cst_44 = arith.constant dense<0.000000e+00> : vector<16xf32>
    %97 = vector.multi_reduction <add>, %96, %cst_44 [1] : vector<16x128xf32> to vector<16xf32>
    %98 = vector.shape_cast %97 : vector<16xf32> to vector<16x1xf32>
    %99 = vector.broadcast %98 : vector<16x1xf32> to vector<16x128xf32>
    %100 = arith.mulf %77, %99 : vector<16x128xf32>
    %101 = arith.mulf %74, %100 : vector<16x128xf32>
    %102 = arith.mulf %75, %100 : vector<16x128xf32>
    %103 = tpu.concatenate %101, %102 in 1 : vector<16x128xf32>, vector<16x128xf32> -> vector<16x256xf32>
    %cst_45 = arith.constant dense<0.000000e+00> : vector<128x256xf32>
    %104 = tpu.matmul %65, %103, %cst_45 {dimension_numbers = #tpu.dot_dimension_numbers<[0], [0], [1], [1], [0, 1, 1, 1], [], []>} : vector<16x128xf32>, vector<16x256xf32>, vector<128x256xf32> -> vector<128x256xf32>
    %c1280 = arith.constant 1280 : index
    %c0_46 = arith.constant 0 : index
    %105 = vector.load %arg2[%c1280, %c0_46] : memref<1536x128xf32, #tpu.memory_space<vmem>>, vector<256x128xf32>
    %cst_47 = arith.constant dense<0.000000e+00> : vector<128x128xf32>
    %106 = tpu.matmul %104, %105, %cst_47 {dimension_numbers = #tpu.dot_dimension_numbers<[1], [0], [0], [1], [0, 0, 1, 1], [], []>} : vector<128x256xf32>, vector<256x128xf32>, vector<128x128xf32> -> vector<128x128xf32>
    %107 = vector.broadcast %67 : vector<1x128xf32> to vector<128x128xf32>
    %108 = arith.addf %106, %107 : vector<128x128xf32>
    %cst_48 = arith.constant 0.000000e+00 : f32
    %109 = vector.broadcast %cst_48 : f32 to vector<128x128xf32>
    %110 = arith.maximumf %108, %109 : vector<128x128xf32>
    %111 = arith.mulf %110, %110 : vector<128x128xf32>
    %cst_49 = arith.constant dense<0.000000e+00> : vector<128xf32>
    %112 = vector.multi_reduction <add>, %111, %cst_49 [1] : vector<128x128xf32> to vector<128xf32>
    %113 = vector.shape_cast %112 : vector<128xf32> to vector<128x1xf32>
    %cst_50 = arith.constant 1.000000e-24 : f32
    %114 = vector.broadcast %cst_50 : f32 to vector<128x1xf32>
    %115 = arith.maximumf %113, %114 : vector<128x1xf32>
    %116 = math.rsqrt %115 : vector<128x1xf32>
    %117 = vector.broadcast %116 : vector<128x1xf32> to vector<128x128xf32>
    %118 = arith.mulf %110, %117 : vector<128x128xf32>
    %119 = arith.addf %6, %118 : vector<128x128xf32>
    %c80 = arith.constant 80 : index
    %c0_51 = arith.constant 0 : index
    %120 = vector.load %arg1[%c80, %c0_51] : memref<104x128xf32, #tpu.memory_space<vmem>>, vector<24x128xf32>
    %cst_52 = arith.constant dense<0.000000e+00> : vector<24x128xf32>
    %121 = tpu.matmul %120, %119, %cst_52 {dimension_numbers = #tpu.dot_dimension_numbers<[1], [0], [0], [1], [0, 0, 1, 1], [], []>} : vector<24x128xf32>, vector<128x128xf32>, vector<24x128xf32> -> vector<24x128xf32>
    %122 = vector.extract_strided_slice %121 {offsets = [0, 0], sizes = [6, 128], strides = [1, 1]} : vector<24x128xf32> to vector<6x128xf32>
    %123 = vector.extract_strided_slice %121 {offsets = [8, 0], sizes = [6, 128], strides = [1, 1]} : vector<24x128xf32> to vector<6x128xf32>
    %124 = vector.extract_strided_slice %121 {offsets = [16, 0], sizes = [6, 128], strides = [1, 1]} : vector<24x128xf32> to vector<6x128xf32>
    %125 = arith.mulf %122, %123 : vector<6x128xf32>
    %cst_53 = arith.constant dense<0.000000e+00> : vector<6xf32>
    %126 = vector.multi_reduction <add>, %125, %cst_53 [1] : vector<6x128xf32> to vector<6xf32>
    %127 = vector.shape_cast %126 : vector<6xf32> to vector<6x1xf32>
    %128 = arith.mulf %122, %124 : vector<6x128xf32>
    %cst_54 = arith.constant dense<0.000000e+00> : vector<6xf32>
    %129 = vector.multi_reduction <add>, %128, %cst_54 [1] : vector<6x128xf32> to vector<6xf32>
    %130 = vector.shape_cast %129 : vector<6xf32> to vector<6x1xf32>
    %131 = vector.extract_strided_slice %0 {offsets = [4, 0], sizes = [1, 6], strides = [1, 1]} : vector<8x128xf32> to vector<1x6xf32>
    %132 = vector.extract_strided_slice %0 {offsets = [5, 0], sizes = [1, 6], strides = [1, 1]} : vector<8x128xf32> to vector<1x6xf32>
    %133 = vector.extract_strided_slice %0 {offsets = [6, 0], sizes = [1, 6], strides = [1, 1]} : vector<8x128xf32> to vector<1x6xf32>
    %134 = vector.broadcast %127 : vector<6x1xf32> to vector<6x6xf32>
    %135 = vector.broadcast %131 : vector<1x6xf32> to vector<6x6xf32>
    %136 = arith.addf %134, %135 : vector<6x6xf32>
    %137 = vector.broadcast %132 : vector<1x6xf32> to vector<6x6xf32>
    %138 = arith.addf %136, %137 : vector<6x6xf32>
    %139 = vector.broadcast %130 : vector<6x1xf32> to vector<6x6xf32>
    %140 = vector.broadcast %131 : vector<1x6xf32> to vector<6x6xf32>
    %141 = arith.addf %139, %140 : vector<6x6xf32>
    %142 = vector.broadcast %133 : vector<1x6xf32> to vector<6x6xf32>
    %143 = arith.addf %141, %142 : vector<6x6xf32>
    %144 = arith.subf %143, %138 : vector<6x6xf32>
    %cst_55 = arith.constant 1.000000e+00 : f32
    %145 = vector.broadcast %cst_55 : f32 to vector<6x6xf32>
    %146 = arith.addf %144, %145 : vector<6x6xf32>
    %cst_56 = arith.constant 0.000000e+00 : f32
    %147 = vector.broadcast %cst_56 : f32 to vector<6x6xf32>
    %148 = arith.maximumf %146, %147 : vector<6x6xf32>
    %c0_57 = arith.constant 0 : index
    %c0_58 = arith.constant 0 : index
    %149 = vector.load %arg4[%c0_57, %c0_58] : memref<6x6xf32, #tpu.memory_space<vmem>>, vector<6x6xf32>
    tpu.vector_store %arg4[%c0_57, %c0_58], %148 {strides = array<i32>} : memref<6x6xf32, #tpu.memory_space<vmem>>, vector<6x6xf32>,
    return
  }
}

</mosaic_0001>

<bundles_post_ra>
// kernel: tpu_custom_call.1
= control target key start
LH: loop header
LB: loop body
LE: loop exit
PB: predicated region body
PF: predicated region fallthrough
CT: control target
= control target key end

     0   :  { %9 = vsyncpa [#allocation3], 0  ;;  %s5219_s0 = inlined_call_operand.hbm [shape: f32[168,128], index: 0, kind: input, shape index: {}]   ;;  %s5220_s1 = inlined_call_operand.hbm [shape: f32[104,128], index: 1, kind: input, shape index: {}]   ;;  %s5221_s2 = inlined_call_operand.hbm [shape: f32[1536,128], index: 2, kind: input, shape index: {}]   ;;  %s5222_s3 = inlined_call_operand.hbm [shape: f32[8,128], index: 3, kind: input, shape index: {}]   ;;  %s5223_s4 = inlined_call_operand.hbm [shape: f32[6,6], index: 4, kind: output, shape index: {}]  }
   0x1   :  { %10 = vsyncpa [#allocation6], 0 }
   0x2   :  { %11 = vsyncpa [#allocation9], 0 }
   0x3   :  { %12 = vsyncpa [#allocation4], 0  ;;  %s4383_s15 = smov [#allocation5]   ;;  %s4384_s17 = smov [#allocation2]  }
   0x4   :  { %s30_s16 = sshll.u32 %s4383_s15, 4  ;;  %s18_s18 = sshll.u32 %s4384_s17, 4  ;;  %s31_s16 = int_to_ptr.vmem [resolvable:$true] %s30_s16  ;;  %s19_s18 = int_to_ptr.vmem [resolvable:$true] %s18_s18 }
   0x5   :  { %s4283_s19 = scalar_lea.vmem %s31_s16, 1664  ;;  %p4288_p1 = scmp.lt.s32.totalorder %s31_s16, %s31_s16 }
   0x6   :  { %p4284_p0 = scmp.ne.s32.totalorder %s31_s16, %s4283_s19  ;;  %p4289_p2 = scmp.lt.s32.totalorder %s4283_s19, %s4283_s19 }
   0x8   :  { %p4290_p3 = por %p4289_p2, %p4288_p1 }
   0xa   :  { %p4291_p4 = pnand %p4290_p3, %p4284_p0 }
   0xc   :  { %4294 = shalt.err (!%p4291_p4)
}
   0xd   :  { %s4385_s20 = smov 128   ;;  %s4386_s21 = smov 8  }
   0xe   :  { %36 = dma.hbm_to_vmem [thread:$0]  %s5220_s1, 1664, %s31_s16, [#allocation6], %s4385_s20, %s4385_s20, %s4386_s21  }
   0xf   :  { %s4303_s24 = scalar_lea.vmem %s19_s18, 2688  ;;  %p4308_p6 = scmp.lt.s32.totalorder %s19_s18, %s19_s18 }
  0x10   :  { %p4304_p5 = scmp.ne.s32.totalorder %s19_s18, %s4303_s24  ;;  %p4309_p7 = scmp.lt.s32.totalorder %s4303_s24, %s4303_s24 }
  0x12   :  { %p4310_p8 = por %p4309_p7, %p4308_p6 }
  0x14   :  { %p4311_p9 = pnand %p4310_p8, %p4304_p5 }
  0x16   :  { %4314 = shalt.err (!%p4311_p9)
}
  0x17   :  { %24 = dma.hbm_to_vmem [thread:$0]  %s5219_s0, 2688, %s19_s18, [#allocation3], %s4385_s20, %s4385_s20, %s4386_s21  }
  0x18   :  { %s4387_s27 = smov [#allocation7]   ;;  %s4388_s29 = smov [#allocation8]  }
  0x19   :  { %s42_s28 = sshll.u32 %s4387_s27, 4  ;;  %s55_s30 = sshll.u32 %s4388_s29, 4  ;;  %s43_s28 = int_to_ptr.vmem [resolvable:$true] %s42_s28  ;;  %s56_s30 = int_to_ptr.vmem [resolvable:$true] %s55_s30 }
  0x1a   :  { %s4323_s5 = scalar_lea.vmem %s43_s28, 24576  ;;  %p4328_p11 = scmp.lt.s32.totalorder %s43_s28, %s43_s28 }
  0x1b   :  { %p4324_p10 = scmp.ne.s32.totalorder %s43_s28, %s4323_s5  ;;  %p4329_p12 = scmp.lt.s32.totalorder %s4323_s5, %s4323_s5 }
  0x1d   :  { %p4330_p13 = por %p4329_p12, %p4328_p11 }
  0x1f   :  { %p4331_p0 = pnand %p4330_p13, %p4324_p10 }
  0x21   :  { %4334 = shalt.err (!%p4331_p0)
}
  0x22   :  { %48 = dma.hbm_to_vmem [thread:$0]  %s5221_s2, 24576, %s43_s28, [#allocation6], %s4385_s20, %s4385_s20, %s4386_s21  }
  0x23   :  { %s4343_s7 = scalar_lea.vmem %s56_s30, 128  ;;  %p4348_p2 = scmp.lt.s32.totalorder %s56_s30, %s56_s30 }
  0x24   :  { %p4344_p1 = scmp.ne.s32.totalorder %s56_s30, %s4343_s7  ;;  %p4349_p3 = scmp.lt.s32.totalorder %s4343_s7, %s4343_s7 }
  0x26   :  { %p4350_p4 = por %p4349_p3, %p4348_p2 }
  0x28   :  { %p4351_p5 = pnand %p4350_p4, %p4344_p1 }
  0x2a   :  { %4354 = shalt.err (!%p4351_p5)
}
  0x2b   :  { %58 = dma.hbm_to_vmem [thread:$0]  %s5222_s3, 128, %s56_s30, [#allocation9]  }
  0x2c   :  { %4375 = dma.done.wait [#allocation3], 2688  }
  0x2d   :  { %4376 = vsyncadd [#allocation3], 4294964608 }
  0x2e   :  { %4377 = dma.done.wait [#allocation6], 26240  }
  0x2f   :  { %4378 = vsyncadd [#allocation6], 4294941056 }
  0x30   :  { %4379 = dma.done.wait [#allocation9], 128  }
  0x31   :  { %4380 = vsyncadd [#allocation9], 4294967168  ;;  %v117_v0 = vld [vmem:[#allocation7 + $0x78] sm:$0xff]  ;;  %v116_v1 = vld [vmem:[#allocation7 + $0x70] sm:$0xff]  ;;  %v4389_v32 = vmov 0.0   ;;  %vm4390_vm0 = vmmov 0   ;;  %v72_v58 = vlaneseq }
  0x32   :  { %3563 = vmatprep.subr.mxu0 %v117_v0  ;;  %v115_v2 = vld [vmem:[#allocation7 + $0x68] sm:$0xff]  ;;  %v114_v3 = vld [vmem:[#allocation7 + $0x60] sm:$0xff]  ;;  %v4429_v4 = vld [vmem:[#allocation2] sm:$0xff]  ;;  %3619 = vmatprep.subr.mxu1 %v4389_v32  ;;  %vm712_vm1 = vcmask 195584   ;;  %vm2078_vm3 = vcmask 130048   ;;  %vm2945_vm4 = vcmask 1045504  }
  0x33   :  { %3564 = vmatpush3.msra.mxu0 %v117_v0  ;;  %v113_v5 = vld [vmem:[#allocation7 + $0x58] sm:$0xff]  ;;  %3595 = vmatprep.mubr.f32.mxu0 %v4429_v4  ;;  %v112_v6 = vld [vmem:[#allocation7 + $0x50] sm:$0xff]  ;;  %v111_v7 = vld [vmem:[#allocation7 + $0x48] sm:$0xff]  ;;  %v4492_v61 = vshrl.u32 %v72_v58, 7  ;;  %s4391_s2 = smov [#allocation10]   ;;  %vm2972_vm5 = vcmask 46080  }
  0x34   :  { %3565 = vmatprep.subr.mxu0 %v116_v1  ;;  %v110_v8 = vld [vmem:[#allocation7 + $0x40] sm:$0xff]  ;;  %v109_v9 = vld [vmem:[#allocation7 + $0x38] sm:$0xff]  ;;  %v108_v10 = vld [vmem:[#allocation7 + $0x30] sm:$0xff]  ;;  %3651 = vmatprep.mubr.msk.f32.mxu1 %vm4390_vm0, %v4389_v32  ;;  %s2980_s3 = sshll.u32 %s4391_s2, 4  ;;  %s2981_s3 = int_to_ptr.vmem [resolvable:$true] %s2980_s3 }
  0x35   :  { %3566 = vmatpush3.msra.mxu0 %v116_v1  ;;  %v107_v11 = vld [vmem:[#allocation7 + $0x28] sm:$0xff]  ;;  %v106_v12 = vld [vmem:[#allocation7 + $0x20] sm:$0xff]  ;;  %v105_v13 = vld [vmem:[#allocation7 + $0x18] sm:$0xff]  ;;  %v120_v0 = vsub.s32 0, %v4492_v61  ;;  %s4355_s9 = scalar_lea.vmem %s2981_s3, 128  ;;  %p4360_p7 = scmp.lt.s32.totalorder %s2981_s3, %s2981_s3 }
  0x36   :  { %3567 = vmatprep.subr.mxu0 %v115_v2  ;;  %v104_v14 = vld [vmem:[#allocation7 + $0x10] sm:$0xff]  ;;  %v103_v15 = vld [vmem:[#allocation7 + $0x8] sm:$0xff]  ;;  %v102_v16 = vld [vmem:[#allocation7] sm:$0xff]  ;;  %p4356_p6 = scmp.ne.s32.totalorder %s2981_s3, %s4355_s9  ;;  %p4361_p8 = scmp.lt.s32.totalorder %s4355_s9, %s4355_s9 }
  0x37   :  { %3568 = vmatpush3.msra.mxu0 %v115_v2  ;;  %v78_v17 = vld [vmem:[#allocation2 + $0x8] sm:$0xff]  ;;  %v79_v18 = vld [vmem:[#allocation2 + $0x10] sm:$0xff]  ;;  %v80_v19 = vld [vmem:[#allocation2 + $0x18] sm:$0xff] }
  0x38   :  { %3569 = vmatprep.subr.mxu0 %v114_v3  ;;  %v81_v20 = vld [vmem:[#allocation2 + $0x20] sm:$0xff]  ;;  %v82_v21 = vld [vmem:[#allocation2 + $0x28] sm:$0xff]  ;;  %v83_v22 = vld [vmem:[#allocation2 + $0x30] sm:$0xff]  ;;  %p4362_p9 = por %p4361_p8, %p4360_p7 }
  0x39   :  { %3570 = vmatpush3.msra.mxu0 %v114_v3  ;;  %v84_v23 = vld [vmem:[#allocation2 + $0x38] sm:$0xff]  ;;  %v85_v24 = vld [vmem:[#allocation2 + $0x40] sm:$0xff]  ;;  %v86_v25 = vld [vmem:[#allocation2 + $0x48] sm:$0xff] }
  0x3a   :  { %3571 = vmatprep.subr.mxu0 %v113_v5  ;;  %v87_v26 = vld [vmem:[#allocation2 + $0x50] sm:$0xff]  ;;  %v88_v27 = vld [vmem:[#allocation2 + $0x58] sm:$0xff]  ;;  %v89_v28 = vld [vmem:[#allocation2 + $0x60] sm:$0xff]  ;;  %p4363_p10 = pnand %p4362_p9, %p4356_p6 }
  0x3b   :  { %3572 = vmatpush3.msra.mxu0 %v113_v5  ;;  %v90_v29 = vld [vmem:[#allocation2 + $0x68] sm:$0xff]  ;;  %v91_v30 = vld [vmem:[#allocation2 + $0x70] sm:$0xff]  ;;  %v92_v31 = vld [vmem:[#allocation2 + $0x78] sm:$0xff] }
  0x3c   :  { %3573 = vmatprep.subr.mxu0 %v112_v6  ;;  %v4452_v33 = vld [vmem:[#allocation5 + $0x18] sm:$0xff]  ;;  %v4461_v34 = vld [vmem:[#allocation5 + $0x20] sm:$0xff]  ;;  %v4467_v35 = vld [vmem:[#allocation5 + $0x28] sm:$0xff] }
  0x3d   :  { %3574 = vmatpush3.msra.mxu0 %v112_v6  ;;  %680 = vxpose.xlu0.b32.start [1/3] (short) %v4452_v33, 128  ;;  %v493_v36 = vld [vmem:[#allocation7 + $0x1f8] sm:$0xff]  ;;  %v492_v37 = vld [vmem:[#allocation7 + $0x1f0] sm:$0xff]  ;;  %v491_v38 = vld [vmem:[#allocation7 + $0x1e8] sm:$0xff] }
  0x3e   :  { %3575 = vmatprep.subr.mxu0 %v111_v7  ;;  %v490_v39 = vld [vmem:[#allocation7 + $0x1e0] sm:$0xff]  ;;  %v489_v40 = vld [vmem:[#allocation7 + $0x1d8] sm:$0xff]  ;;  %v488_v41 = vld [vmem:[#allocation7 + $0x1d0] sm:$0xff] }
  0x3f   :  { %3576 = vmatpush3.msra.mxu0 %v111_v7  ;;  %v487_v42 = vld [vmem:[#allocation7 + $0x1c8] sm:$0xff]  ;;  %v486_v43 = vld [vmem:[#allocation7 + $0x1c0] sm:$0xff]  ;;  %v485_v44 = vld [vmem:[#allocation7 + $0x1b8] sm:$0xff] }
  0x40   :  { %3577 = vmatprep.subr.mxu0 %v110_v8  ;;  %v484_v45 = vld [vmem:[#allocation7 + $0x1b0] sm:$0xff]  ;;  %v483_v46 = vld [vmem:[#allocation7 + $0x1a8] sm:$0xff]  ;;  %v482_v47 = vld [vmem:[#allocation7 + $0x1a0] sm:$0xff] }
  0x41   :  { %3578 = vmatpush3.msra.mxu0 %v110_v8  ;;  %681 = vxpose.xlu0.b32.cont [2/3] (short) %v4461_v34, 128  ;;  %v481_v48 = vld [vmem:[#allocation7 + $0x198] sm:$0xff]  ;;  %v480_v49 = vld [vmem:[#allocation7 + $0x190] sm:$0xff]  ;;  %v71_v1 = vld [vmem:[#allocation8] sm:$0xff] }
  0x42   :  { %3579 = vmatprep.subr.mxu0 %v109_v9 }
  0x43   :  { %3580 = vmatpush3.msra.mxu0 %v109_v9 }
  0x44   :  { %3581 = vmatprep.subr.mxu0 %v108_v10 }
  0x45   :  { %3582 = vmatpush3.msra.mxu0 %v108_v10  ;;  %682 = vxpose.xlu0.b32.end [3/3] (short) %v4467_v35, 128 }
  0x46   :  { %3583 = vmatprep.subr.mxu0 %v107_v11 }
  0x47   :  { %3584 = vmatpush3.msra.mxu0 %v107_v11 }
  0x48   :  { %3585 = vmatprep.subr.mxu0 %v106_v12 }
  0x49   :  { %3586 = vmatpush3.msra.mxu0 %v106_v12 }
  0x4a   :  { %3587 = vmatprep.subr.mxu0 %v105_v13 }
  0x4b   :  { %3588 = vmatpush3.msra.mxu0 %v105_v13 }
  0x4c   :  { %3589 = vmatprep.subr.mxu0 %v104_v14 }
  0x4d   :  { %3590 = vmatpush3.msra.mxu0 %v104_v14 }
  0x4e   :  { %3591 = vmatprep.subr.mxu0 %v103_v15 }
  0x4f   :  { %3592 = vmatpush3.msra.mxu0 %v103_v15 }
  0x50   :  { %3593 = vmatprep.subr.mxu0 %v102_v16 }
  0x51   :  { %3594 = vmatpush3.msra.mxu0 %v102_v16 }
  0x52   :  { %3596 = vmatmul.mubr.f32.vlgmr.msra.gmra.mxu0 %v78_v17  ;;  %3660 = vmatprep.subr.mxu0 %v4389_v32 }
  0x53   :  { %3598 = vmatprep.mubr.f32.mxu0 %v79_v18  ;;  %3661 = vmatpush3.msra.mxu0 %v92_v31 }
  0x54   :  { %3662 = vmatprep.subr.mxu0 %v4389_v32 }
  0x55   :  { %3663 = vmatpush3.msra.mxu0 %v91_v30 }
  0x56   :  { %3599 = vmatmul.mubr.f32.gmra.mxu0 %v80_v19  ;;  %3664 = vmatprep.subr.mxu0 %v4389_v32 }
  0x57   :  { %3601 = vmatprep.mubr.f32.mxu0 %v81_v20  ;;  %3665 = vmatpush3.msra.mxu0 %v90_v29 }
  0x58   :  { %3666 = vmatprep.subr.mxu0 %v4389_v32 }
  0x59   :  { %3667 = vmatpush3.msra.mxu0 %v89_v28 }
  0x5a   :  { %3602 = vmatmul.mubr.f32.gmra.mxu0 %v82_v21  ;;  %3668 = vmatprep.subr.mxu0 %v4389_v32 }
  0x5b   :  { %3604 = vmatprep.mubr.f32.mxu0 %v83_v22  ;;  %3669 = vmatpush3.msra.mxu0 %v88_v27 }
  0x5c   :  { %3670 = vmatprep.subr.mxu0 %v4389_v32 }
  0x5d   :  { %3671 = vmatpush3.msra.mxu0 %v87_v26 }
  0x5e   :  { %3605 = vmatmul.mubr.f32.gmra.mxu0 %v84_v23  ;;  %3672 = vmatprep.subr.mxu0 %v4389_v32 }
  0x5f   :  { %3607 = vmatprep.mubr.f32.mxu0 %v85_v24  ;;  %3673 = vmatpush3.msra.mxu0 %v86_v25 }
  0x60   :  { %3674 = vmatprep.subr.mxu0 %v4389_v32 }
  0x61   :  { %3675 = vmatpush3.msra.mxu0 %v85_v24 }
  0x62   :  { %3608 = vmatmul.mubr.f32.gmra.mxu0 %v86_v25  ;;  %3676 = vmatprep.subr.mxu0 %v4389_v32 }
  0x63   :  { %3610 = vmatprep.mubr.f32.mxu0 %v87_v26  ;;  %3677 = vmatpush3.msra.mxu0 %v84_v23 }
  0x64   :  { %3678 = vmatprep.subr.mxu0 %v4389_v32 }
  0x65   :  { %3679 = vmatpush3.msra.mxu0 %v83_v22 }
  0x66   :  { %3611 = vmatmul.mubr.f32.gmra.mxu0 %v88_v27  ;;  %3680 = vmatprep.subr.mxu0 %v4389_v32 }
  0x67   :  { %3613 = vmatprep.mubr.f32.mxu0 %v89_v28  ;;  %3681 = vmatpush3.msra.mxu0 %v82_v21 }
  0x68   :  { %3682 = vmatprep.subr.mxu0 %v4389_v32 }
  0x69   :  { %3683 = vmatpush3.msra.mxu0 %v81_v20 }
  0x6a   :  { %3614 = vmatmul.mubr.f32.gmra.mxu0 %v90_v29  ;;  %3684 = vmatprep.subr.mxu0 %v4389_v32 }
  0x6b   :  { %3616 = vmatprep.mubr.f32.mxu0 %v91_v30  ;;  %3685 = vmatpush3.msra.mxu0 %v80_v19 }
  0x6c   :  { %3686 = vmatprep.subr.mxu0 %v4389_v32 }
  0x6d   :  { %3687 = vmatpush3.msra.mxu0 %v79_v18 }
  0x6e   :  { %3617 = vmatmul.mubr.f32.gmra.mxu0 %v92_v31  ;;  %3688 = vmatprep.subr.mxu0 %v4389_v32 }
  0x6f   :  { %3689 = vmatpush3.msra.mxu0 %v78_v17  ;;  %3692 = vmatprep.mubr.msk.f32.mxu0 %vm4390_vm0, %v4389_v32 }
  0x70   :  { %3690 = vmatprep.subr.mxu0 %v4389_v32 }
  0x71   :  { %3691 = vmatpush3.msra.mxu0 %v4429_v4  ;;  %v121_v4 = vrot.slane %v71_v1, %v120_v0  ;;  %v469_v0 = vld [vmem:[#allocation7 + $0x138] sm:$0xff] }
  0x72   :  { %3693 = vmatmul.mubr.f32.vlgmr.msra.gmra.mxu0 %v4452_v33  ;;  %3701 = vmatprep.subr.mxu0 %v4389_v32  ;;  %v453_v1 = vld [vmem:[#allocation7 + $0xb8] sm:$0xff] }
  0x73   :  { %3695 = vmatprep.mubr.msk.f32.mxu0 %vm4390_vm0, %v4389_v32  ;;  %3702 = vmatpush3.msra.mxu0 %v493_v36 }
  0x74   :  { %3703 = vmatprep.subr.mxu0 %v4389_v32 }
  0x75   :  { %3704 = vmatpush3.msra.mxu0 %v492_v37 }
  0x76   :  { %3696 = vmatmul.mubr.f32.gmra.mxu0 %v4461_v34  ;;  %3705 = vmatprep.subr.mxu0 %v4389_v32 }
  0x77   :  { %3698 = vmatprep.mubr.msk.f32.mxu0 %vm4390_vm0, %v4389_v32  ;;  %3706 = vmatpush3.msra.mxu0 %v491_v38 }
  0x78   :  { %3707 = vmatprep.subr.mxu0 %v4389_v32 }
  0x79   :  { %3708 = vmatpush3.msra.mxu0 %v490_v39 }
  0x7a   :  { %3699 = vmatmul.mubr.f32.gmra.mxu0 %v4467_v35  ;;  %3709 = vmatprep.subr.mxu0 %v4389_v32 }
  0x7b   :  { %3733 = vmatprep.mubr.msk.f32.mxu0 %vm4390_vm0, %v4389_v32  ;;  %3710 = vmatpush3.msra.mxu0 %v489_v40 }
  0x7c   :  { %3711 = vmatprep.subr.mxu0 %v4389_v32 }
  0x7d   :  { %3712 = vmatpush3.msra.mxu0 %v488_v41 }
  0x7e   :  { %3713 = vmatprep.subr.mxu0 %v4389_v32 }
  0x7f   :  { %3714 = vmatpush3.msra.mxu0 %v487_v42 }
  0x80   :  { %3715 = vmatprep.subr.mxu0 %v4389_v32 }
  0x81   :  { %3716 = vmatpush3.msra.mxu0 %v486_v43  ;;  %v96_v43 = vld [vmem:[#allocation5] sm:$0xff] }
  0x82   :  { %3717 = vmatprep.subr.mxu0 %v4389_v32 }
  0x83   :  { %3718 = vmatpush3.msra.mxu0 %v485_v44  ;;  %v477_v44 = vld [vmem:[#allocation7 + $0x178] sm:$0xff] }
  0x84   :  { %3719 = vmatprep.subr.mxu0 %v4389_v32 }
  0x85   :  { %3720 = vmatpush3.msra.mxu0 %v484_v45  ;;  %v461_v45 = vld [vmem:[#allocation7 + $0xf8] sm:$0xff] }
  0x86   :  { %3721 = vmatprep.subr.mxu0 %v4389_v32 }
  0x87   :  { %3722 = vmatpush3.msra.mxu0 %v483_v46  ;;  %v476_v46 = vld [vmem:[#allocation7 + $0x170] sm:$0xff] }
  0x88   :  { %3723 = vmatprep.subr.mxu0 %v4389_v32 }
  0x89   :  { %3724 = vmatpush3.msra.mxu0 %v482_v47  ;;  %v460_v47 = vld [vmem:[#allocation7 + $0xf0] sm:$0xff] }
  0x8a   :  { %3725 = vmatprep.subr.mxu0 %v4389_v32 }
  0x8b   :  { %3726 = vmatpush3.msra.mxu0 %v481_v48  ;;  %v97_v48 = vld [vmem:[#allocation5 + $0x8] sm:$0xff] }
  0x8c   :  { %3727 = vmatprep.subr.mxu0 %v4389_v32 }
  0x8d   :  { %3728 = vmatpush3.msra.mxu0 %v480_v49  ;;  %v475_v49 = vld [vmem:[#allocation7 + $0x168] sm:$0xff] }
  0x8e   :  { %3729 = vmatprep.subr.mxu0 %v4389_v32 }
 0x112   :  { %v4487_v50 = vpop.f32.mrf.mxu0 }
 0x113   :  { %v194_v37 = vadd.f32 %v4487_v50, %v121_v4  ;;  %v459_v50 = vld [vmem:[#allocation7 + $0xe8] sm:$0xff] }
 0x114   :  { %v4489_v51 = vpop.f32.mrf.mxu0 }
 0x115   :  { %v189_v39 = vadd.f32 %v4489_v51, %v121_v4  ;;  %v268_v41 = vmax.f32 %v194_v37, 0.0  ;;  %v474_v51 = vld [vmem:[#allocation7 + $0x160] sm:$0xff] }
 0x116   :  { %v3600_v52 = vpop.f32.mrf.mxu0 }
 0x117   :  { %v204_v29 = vadd.f32 %v3600_v52, %v121_v4  ;;  %v267_v42 = vmax.f32 %v189_v39, 0.0  ;;  %v458_v52 = vld [vmem:[#allocation7 + $0xe0] sm:$0xff] }
 0x118   :  { %v198_v53 = vpop.f32.mrf.mxu0 }
 0x119   :  { %v199_v31 = vadd.f32 %v198_v53, %v121_v4  ;;  %v270_v38 = vmax.f32 %v204_v29, 0.0  ;;  %v98_v53 = vld [vmem:[#allocation5 + $0x10] sm:$0xff] }
 0x11a   :  { %v3603_v54 = vpop.f32.mrf.mxu0 }
 0x11b   :  { %v214_v25 = vadd.f32 %v3603_v54, %v121_v4  ;;  %v269_v40 = vmax.f32 %v199_v31, 0.0  ;;  %v473_v54 = vld [vmem:[#allocation7 + $0x158] sm:$0xff] }
 0x11c   :  { %v208_v55 = vpop.f32.mrf.mxu0 }
 0x11d   :  { %v209_v27 = vadd.f32 %v208_v55, %v121_v4  ;;  %v272_v30 = vmax.f32 %v214_v25, 0.0  ;;  %v457_v55 = vld [vmem:[#allocation7 + $0xd8] sm:$0xff] }
 0x11e   :  { %v3606_v56 = vpop.f32.mrf.mxu0 }
 0x11f   :  { %v224_v21 = vadd.f32 %v3606_v56, %v121_v4  ;;  %v271_v36 = vmax.f32 %v209_v27, 0.0  ;;  %v472_v56 = vld [vmem:[#allocation7 + $0x150] sm:$0xff] }
 0x120   :  { %v218_v57 = vpop.f32.mrf.mxu0 }
 0x121   :  { %v219_v23 = vadd.f32 %v218_v57, %v121_v4  ;;  %v274_v26 = vmax.f32 %v224_v21, 0.0  ;;  %v456_v57 = vld [vmem:[#allocation7 + $0xd0] sm:$0xff]  ;;  %v478_v21 = vld [vmem:[#allocation7 + $0x180] sm:$0xff] }
 0x122   :  { %v3609_v59 = vpop.f32.mrf.mxu0 }
 0x123   :  { %v234_v17 = vadd.f32 %v3609_v59, %v121_v4  ;;  %v273_v28 = vmax.f32 %v219_v23, 0.0  ;;  %v471_v59 = vld [vmem:[#allocation7 + $0x148] sm:$0xff] }
 0x124   :  { %v228_v60 = vpop.f32.mrf.mxu0 }
 0x125   :  { %v229_v19 = vadd.f32 %v228_v60, %v121_v4  ;;  %v276_v22 = vmax.f32 %v234_v17, 0.0  ;;  %v455_v60 = vld [vmem:[#allocation7 + $0xc8] sm:$0xff]  ;;  %v446_v17 = vld [vmem:[#allocation7 + $0x80] sm:$0xff] }
 0x126   :  { %v3612_v62 = vpop.f32.mrf.mxu0 }
 0x127   :  { %v244_v13 = vadd.f32 %v3612_v62, %v121_v4  ;;  %v275_v24 = vmax.f32 %v229_v19, 0.0  ;;  %v470_v62 = vld [vmem:[#allocation7 + $0x140] sm:$0xff]  ;;  %v4519_v19 = vld [vmem:[#allocation2 + $0x80] sm:$0xff] }
 0x128   :  { %v238_v63 = vpop.f32.mrf.mxu0 }
 0x129   :  { %v239_v15 = vadd.f32 %v238_v63, %v121_v4  ;;  %v278_v18 = vmax.f32 %v244_v13, 0.0  ;;  %v454_v63 = vld [vmem:[#allocation7 + $0xc0] sm:$0xff]  ;;  %v447_v13 = vld [vmem:[#allocation7 + $0x88] sm:$0xff] }
 0x12a   :  { %v3615_v2 = vpop.f32.mrf.mxu0 }
 0x12b   :  { %v254_v8 = vadd.f32 %v3615_v2, %v121_v4  ;;  %v277_v20 = vmax.f32 %v239_v15, 0.0  ;;  %v468_v2 = vld [vmem:[#allocation7 + $0x130] sm:$0xff] }
 0x12c   :  { %v248_v3 = vpop.f32.mrf.mxu0 }
 0x12d   :  { %v249_v11 = vadd.f32 %v248_v3, %v121_v4  ;;  %v280_v14 = vmax.f32 %v254_v8, 0.0  ;;  %v452_v3 = vld [vmem:[#allocation7 + $0xb0] sm:$0xff]  ;;  %v465_v8 = vld [vmem:[#allocation7 + $0x118] sm:$0xff] }
 0x12e   :  { %v3618_v5 = vpop.f32.mrf.mxu0 }
 0x12f   :  { %v264_v6 = vadd.f32 %v3618_v5, %v121_v4  ;;  %v279_v16 = vmax.f32 %v249_v11, 0.0  ;;  %v451_v5 = vld [vmem:[#allocation7 + $0xa8] sm:$0xff]  ;;  %v448_v11 = vld [vmem:[#allocation7 + $0x90] sm:$0xff] }
 0x130   :  { %v258_v7 = vpop.f32.mrf.mxu0 }
 0x131   :  { %v282_v9 = vmax.f32 %v264_v6, 0.0  ;;  %v259_v10 = vadd.f32 %v258_v7, %v121_v4  ;;  %v467_v4 = vld [vmem:[#allocation7 + $0x128] sm:$0xff]  ;;  %v466_v6 = vld [vmem:[#allocation7 + $0x120] sm:$0xff] }
 0x132   :  { %v450_v7 = vld [vmem:[#allocation7 + $0xa0] sm:$0xff]  ;;  %v4516_v15 = vpop.f32.mrf.mxu0 }
 0x133   :  { %v281_v12 = vmax.f32 %v259_v10, 0.0  ;;  %3620 = vmatpush3.msra.mxu1 %v282_v9  ;;  %v449_v9 = vld [vmem:[#allocation7 + $0x98] sm:$0xff]  ;;  %v464_v10 = vld [vmem:[#allocation7 + $0x110] sm:$0xff] }
 0x134   :  { %3621 = vmatprep.subr.mxu1 %v4389_v32 }
 0x135   :  { %3622 = vmatpush3.msra.mxu1 %v281_v12  ;;  %v463_v12 = vld [vmem:[#allocation7 + $0x108] sm:$0xff] }
 0x136   :  { %3623 = vmatprep.subr.mxu1 %v4389_v32 }
 0x137   :  { %3624 = vmatpush3.msra.mxu1 %v280_v14  ;;  %v462_v14 = vld [vmem:[#allocation7 + $0x100] sm:$0xff] }
 0x138   :  { %3625 = vmatprep.subr.mxu1 %v4389_v32 }
 0x139   :  { %3626 = vmatpush3.msra.mxu1 %v279_v16  ;;  %v3694_v16 = vpop.f32.mrf.mxu0 }
 0x13a   :  { %3627 = vmatprep.subr.mxu1 %v4389_v32 }
 0x13b   :  { %3628 = vmatpush3.msra.mxu1 %v278_v18  ;;  %v479_v18 = vld [vmem:[#allocation7 + $0x188] sm:$0xff] }
 0x13c   :  { %3629 = vmatprep.subr.mxu1 %v4389_v32  ;;  %3730 = vmatpush3.msra.mxu0 %v479_v18 }
 0x13d   :  { %3630 = vmatpush3.msra.mxu1 %v277_v20  ;;  %v4521_v20 = vpop.f32.mrf.mxu0  ;;  %3731 = vmatprep.subr.mxu0 %v4389_v32 }
 0x13e   :  { %3631 = vmatprep.subr.mxu1 %v4389_v32  ;;  %3732 = vmatpush3.msra.mxu0 %v478_v21 }
 0x13f   :  { %3632 = vmatpush3.msra.mxu1 %v276_v22  ;;  %v443_v22 = vmax.f32 %v4519_v19, 0.0  ;;  %v3697_v23 = vpop.f32.mrf.mxu0  ;;  %v1198_v19 = vld [vmem:[#allocation7 + $0x208] sm:$0xff] }
 0x140   :  { %3633 = vmatprep.subr.mxu1 %v4389_v32 }
 0x141   :  { %3634 = vmatpush3.msra.mxu1 %v275_v24  ;;  %3734 = vmatmul.mubr.f32.vlgmr.msra.gmra.mxu0 %v443_v22  ;;  %v4529_v24 = vld [vmem:[#allocation2 + $0x88] sm:$0xff]  ;;  %v4531_v25 = vpop.f32.mrf.mxu0 }
 0x142   :  { %3635 = vmatprep.subr.mxu1 %v4389_v32  ;;  %3736 = vmatprep.mubr.msk.f32.mxu0 %vm4390_vm0, %v4389_v32 }
 0x143   :  { %3636 = vmatpush3.msra.mxu1 %v274_v26  ;;  %v444_v26 = vmax.f32 %v4529_v24, 0.0  ;;  %v3700_v27 = vpop.f32.mrf.mxu0 }
 0x144   :  { %3637 = vmatprep.subr.mxu1 %v4389_v32 }
 0x145   :  { %3638 = vmatpush3.msra.mxu1 %v273_v28  ;;  %3737 = vmatmul.mubr.f32.gmra.mxu0 %v444_v26  ;;  %v4538_v28 = vld [vmem:[#allocation2 + $0x90] sm:$0xff] }
 0x146   :  { %3639 = vmatprep.subr.mxu1 %v4389_v32  ;;  %3739 = vmatprep.mubr.msk.f32.mxu0 %vm4390_vm0, %v4389_v32  ;;  %v445_v29 = vmax.f32 %v4538_v28, 0.0 }
 0x147   :  { %3640 = vmatpush3.msra.mxu1 %v272_v30 }
 0x148   :  { %3641 = vmatprep.subr.mxu1 %v4389_v32 }
 0x149   :  { %3642 = vmatpush3.msra.mxu1 %v271_v36  ;;  %3740 = vmatmul.mubr.f32.gmra.mxu0 %v445_v29 }
 0x14a   :  { %3643 = vmatprep.subr.mxu1 %v4389_v32  ;;  %1100 = vmatprep.mubr.f32.mxu0 %v4389_v32 }
 0x14b   :  { %3644 = vmatpush3.msra.mxu1 %v270_v38 }
 0x14c   :  { %3645 = vmatprep.subr.mxu1 %v4389_v32 }
 0x14d   :  { %3646 = vmatpush3.msra.mxu1 %v269_v40 }
 0x14e   :  { %3647 = vmatprep.subr.mxu1 %v4389_v32 }
 0x14f   :  { %3648 = vmatpush3.msra.mxu1 %v268_v41 }
 0x150   :  { %3649 = vmatprep.subr.mxu1 %v4389_v32 }
 0x151   :  { %3650 = vmatpush3.msra.mxu1 %v267_v42 }
 0x152   :  { %3652 = vmatmul.mubr.f32.vlgmr.msra.gmra.mxu1 %v96_v43  ;;  %3126 = vmatprep.subr.mxu1 %v477_v44 }
 0x153   :  { %3654 = vmatprep.mubr.msk.f32.mxu1 %vm4390_vm0, %v4389_v32  ;;  %3127 = vmatpush3.msra.mxu1 %v461_v45 }
 0x154   :  { %3128 = vmatprep.subr.mxu1 %v476_v46  ;;  %v4555_v46 = vpop.trf.xlu0 }
 0x155   :  { %3129 = vmatpush3.msra.mxu1 %v460_v47 }
 0x156   :  { %3655 = vmatmul.mubr.f32.gmra.mxu1 %v97_v48  ;;  %3130 = vmatprep.subr.mxu1 %v475_v49 }
 0x157   :  { %3657 = vmatprep.mubr.msk.f32.mxu1 %vm4390_vm0, %v4389_v32  ;;  %3131 = vmatpush3.msra.mxu1 %v459_v50 }
 0x158   :  { %3132 = vmatprep.subr.mxu1 %v474_v51  ;;  %v4559_v49 = vpop.trf.xlu0 }
 0x159   :  { %3133 = vmatpush3.msra.mxu1 %v458_v52 }
 0x15a   :  { %3658 = vmatmul.mubr.f32.gmra.mxu1 %v98_v53  ;;  %3134 = vmatprep.subr.mxu1 %v473_v54 }
 0x15b   :  { %3135 = vmatpush3.msra.mxu1 %v457_v55  ;;  %558 = vmatprep.mubr.f32.mxu1 %v4516_v15 }
 0x15c   :  { %3136 = vmatprep.subr.mxu1 %v472_v56  ;;  %v4561_v56 = vpop.trf.xlu0 }
 0x15d   :  { %3137 = vmatpush3.msra.mxu1 %v456_v57 }
 0x15e   :  { %3138 = vmatprep.subr.mxu1 %v471_v59 }
 0x15f   :  { %3139 = vmatpush3.msra.mxu1 %v455_v60 }
 0x160   :  { %3140 = vmatprep.subr.mxu1 %v470_v62 }
 0x161   :  { %3141 = vmatpush3.msra.mxu1 %v454_v63 }
 0x162   :  { %3142 = vmatprep.subr.mxu1 %v469_v0 }
 0x163   :  { %3143 = vmatpush3.msra.mxu1 %v453_v1 }
 0x164   :  { %3144 = vmatprep.subr.mxu1 %v468_v2  ;;  %v4563_v2 = vpop.trf.xlu0 }
 0x165   :  { %3145 = vmatpush3.msra.mxu1 %v452_v3 }
 0x166   :  { %3146 = vmatprep.subr.mxu1 %v467_v4 }
 0x167   :  { %3147 = vmatpush3.msra.mxu1 %v451_v5 }
 0x168   :  { %3148 = vmatprep.subr.mxu1 %v466_v6 }
 0x169   :  { %3149 = vmatpush3.msra.mxu1 %v450_v7 }
 0x16a   :  { %3150 = vmatprep.subr.mxu1 %v465_v8  ;;  %v4565_v8 = vpop.trf.xlu0 }
 0x16b   :  { %3151 = vmatpush3.msra.mxu1 %v449_v9 }
 0x16c   :  { %3152 = vmatprep.subr.mxu1 %v464_v10 }
 0x16d   :  { %3153 = vmatpush3.msra.mxu1 %v448_v11 }
 0x16e   :  { %3154 = vmatprep.subr.mxu1 %v463_v12  ;;  %v4567_v12 = vpop.trf.xlu0 }
 0x16f   :  { %3155 = vmatpush3.msra.mxu1 %v447_v13 }
 0x170   :  { %3156 = vmatprep.subr.mxu1 %v462_v14 }
 0x171   :  { %3157 = vmatpush3.msra.mxu1 %v446_v17 }
 0x172   :  { %v4569_v17 = vpop.trf.xlu0 }
 0x201   :  { %v640_v40 = vpop.f32.mrf.mxu0 }
 0x203   :  { %v3735_v41 = vpop.f32.mrf.mxu0 }
 0x205   :  { %v645_v42 = vpop.f32.mrf.mxu0 }
 0x207   :  { %v3738_v43 = vpop.f32.mrf.mxu0 }
 0x209   :  { %v650_v44 = vpop.f32.mrf.mxu0 }
 0x20b   :  { %v3741_v45 = vpop.f32.mrf.mxu0 }
 0x212   :  { %v4544_v30 = vpop.f32.mrf.mxu1 }
 0x213   :  { %559 = vmatmul.mubr.f32.vlgmr.msra.gmra.mxu1 %v4544_v30 }
 0x214   :  { %v3653_v31 = vpop.f32.mrf.mxu1  ;;  %563 = vmatprep.mubr.f32.mxu1 %v4521_v20 }
 0x216   :  { %v4548_v36 = vpop.f32.mrf.mxu1 }
 0x217   :  { %564 = vmatmul.mubr.f32.gmra.mxu1 %v4548_v36 }
 0x218   :  { %v3656_v37 = vpop.f32.mrf.mxu1  ;;  %568 = vmatprep.mubr.f32.mxu1 %v4531_v25 }
 0x21a   :  { %v4552_v38 = vpop.f32.mrf.mxu1 }
 0x21b   :  { %569 = vmatmul.mubr.f32.gmra.mxu1 %v4552_v38 }
 0x21c   :  { %v3659_v39 = vpop.f32.mrf.mxu1  ;;  %3748 = vmatprep.mubr.msk.f32.mxu1 %vm712_vm1, %v4555_v46 }
 0x21d   :  { %v4571_v39 = vpop.trf.xlu0 }
 0x221   :  { %v4574_v41 = vpop.trf.xlu0 }
 0x225   :  { %v4579_v43 = vpop.trf.xlu0 }
 0x2d3   :  { %v3158_v47 = vpop.f32.mrf.mxu1 }
 0x2d5   :  { %v3159_v48 = vpop.f32.mrf.mxu1 }
 0x2d6   :  { %v3160_v50 = vadd.f32 %v3159_v48, %v3158_v47 }
 0x2d7   :  { %v3161_v51 = vpop.f32.mrf.mxu1 }
 0x2d8   :  { %v641_v53 = vadd.f32 %v3160_v50, %v640_v40  ;;  %v73_v40 = vand.u32 127, %v72_v58  ;;  %v4589_v58 = vpop.trf.xlu0 }
 0x2d9   :  { %v3162_v52 = vpop.f32.mrf.mxu1 }
 0x2da   :  { %v3163_v54 = vadd.f32 %v3162_v52, %v3161_v51  ;;  %v654_v60 = vmul.f32 0.01, %v641_v53  ;;  %vm74_vm2 = vcmp.lt.s32.totalorder %v73_v40, 3 }
 0x2db   :  { %v3164_v55 = vpop.f32.mrf.mxu1 }
 0x2dc   :  { %v646_v57 = vadd.f32 %v3163_v54, %v645_v42  ;;  %v657_v3 = vmax.f32 %v641_v53, %v654_v60  ;;  %v4577_v42 = vsel %vm74_vm2, 1.0, %v4389_v32  ;;  %v4603_v52 = vpop.trf.xlu0 }
 0x2dd   :  { %v3165_v59 = vpop.f32.mrf.mxu1 }
 0x2de   :  { %v655_v62 = vmul.f32 0.01, %v646_v57  ;;  %v3166_v63 = vadd.f32 %v3165_v59, %v3164_v55 }
 0x2e0   :  { %v658_v0 = vmax.f32 %v646_v57, %v655_v62  ;;  %v651_v1 = vadd.f32 %v3166_v63, %v650_v44  ;;  %v4609_v53 = vpop.trf.xlu0 }
 0x2e2   :  { %v656_v4 = vmul.f32 0.01, %v651_v1  ;;  %v660_v5 = vmax.f32 %v657_v3, %v658_v0 }
 0x2e4   :  { %v659_v6 = vmax.f32 %v651_v1, %v656_v4  ;;  %v4619_v54 = vpop.trf.xlu0 }
 0x2e6   :  { %v661_v7 = vmax.f32 %v660_v5, %v659_v6 }
 0x2e8   :  { %v662_v9 = vrot.slane %v661_v7, 4  ;;  %v4625_v55 = vpop.trf.xlu0 }
 0x2ea   :  { %v663_v10 = vmax.f32 %v661_v7, %v662_v9 }
 0x2ec   :  { %v664_v11 = vrot.slane %v663_v10, 2  ;;  %v4635_v57 = vpop.trf.xlu0 }
 0x2ee   :  { %v665_v13 = vmax.f32 %v663_v10, %v664_v11 }
 0x2f0   :  { %v666_v14 = vrot.slane %v665_v13, 1 }
 0x2f2   :  { %v667_v16 = vmax.f32 %v665_v13, %v666_v14 }
 0x2f4   :  { %v668_v18 = vsub.f32 %v657_v3, %v667_v16  ;;  %v669_v21 = vsub.f32 %v658_v0, %v667_v16  ;;  %v670_v23 = vsub.f32 %v659_v6, %v667_v16 }
 0x2f6   :  { %v673_v27 = vmul.f32 1.442695, %v669_v21  ;;  %v675_v31 = vmul.f32 1.442695, %v670_v23  ;;  %v671_v37 = vmul.f32 1.442695, %v668_v18 }
 0x2f8   :  { %4119 = vpow2.f32 %v673_v27 }
 0x2f9   :  { %4121 = vpow2.f32 %v675_v31 }
 0x2fa   :  { %4123 = vpow2.f32 %v671_v37 }
 0x305   :  { %v4120_v44 = vpop.eup %4119 }
 0x306   :  { %v4122_v45 = vpop.eup %4121  ;;  %v4586_v50 = vmul.f32 %v4120_v44, %v4577_v42 }
 0x307   :  { %v4582_v47 = vmul.f32 %v4122_v45, %v4577_v42  ;;  %v4124_v48 = vpop.eup %4123 }
 0x308   :  { %v4593_v51 = vmul.f32 %v4124_v48, %v4577_v42 }
 0x309   :  { %3742 = vmatprep.subr.mxu1 %v4582_v47 }
 0x30a   :  { %3743 = vmatpush3.msra.mxu1 %v4582_v47 }
 0x30b   :  { %3744 = vmatprep.subr.mxu1 %v4586_v50 }
 0x30c   :  { %3745 = vmatpush3.msra.mxu1 %v4586_v50 }
 0x30d   :  { %3746 = vmatprep.subr.mxu1 %v4593_v51 }
 0x30e   :  { %3747 = vmatpush3.msra.mxu1 %v4593_v51 }
 0x30f   :  { %3749 = vmatmul.mubr.msk.f32.vlgmr.msra.gmra.mxu1 %vm712_vm1, %v4559_v49  ;;  %3772 = vmatprep.subr.mxu1 %v4389_v32 }
 0x310   :  { %3751 = vmatprep.mubr.msk.f32.mxu1 %vm712_vm1, %v4561_v56 }
 0x313   :  { %3752 = vmatmul.mubr.msk.f32.gmra.mxu1 %vm712_vm1, %v4563_v2 }
 0x314   :  { %3754 = vmatprep.mubr.msk.f32.mxu1 %vm712_vm1, %v4565_v8 }
 0x317   :  { %3755 = vmatmul.mubr.msk.f32.gmra.mxu1 %vm712_vm1, %v4567_v12 }
 0x318   :  { %3757 = vmatprep.mubr.msk.f32.mxu1 %vm712_vm1, %v4569_v17 }
 0x31b   :  { %3758 = vmatmul.mubr.msk.f32.gmra.mxu1 %vm712_vm1, %v4571_v39 }
 0x31c   :  { %3760 = vmatprep.mubr.msk.f32.mxu1 %vm712_vm1, %v4574_v41 }
 0x31f   :  { %3761 = vmatmul.mubr.msk.f32.gmra.mxu1 %vm712_vm1, %v4579_v43 }
 0x320   :  { %3763 = vmatprep.mubr.msk.f32.mxu1 %vm712_vm1, %v4589_v58 }
 0x323   :  { %3764 = vmatmul.mubr.msk.f32.gmra.mxu1 %vm712_vm1, %v4603_v52 }
 0x324   :  { %3766 = vmatprep.mubr.msk.f32.mxu1 %vm712_vm1, %v4609_v53 }
 0x327   :  { %3767 = vmatmul.mubr.msk.f32.gmra.mxu1 %vm712_vm1, %v4619_v54 }
 0x328   :  { %3769 = vmatprep.mubr.msk.f32.mxu1 %vm712_vm1, %v4625_v55 }
 0x32b   :  { %3770 = vmatmul.mubr.msk.f32.gmra.mxu1 %vm712_vm1, %v4635_v57 }
 0x32c   :  { %3804 = vmatprep.mubr.msk.f32.mxu1 %vm4390_vm0, %v4389_v32 }
 0x3cf   :  { %v4641_v59 = vpop.f32.mrf.mxu1 }
 0x3d1   :  { %v4643_v60 = vpop.f32.mrf.mxu1 }
 0x3d3   :  { %v3753_v62 = vpop.f32.mrf.mxu1 }
 0x3d5   :  { %v837_v63 = vpop.f32.mrf.mxu1 }
 0x3d7   :  { %v3756_v0 = vpop.f32.mrf.mxu1 }
 0x3d9   :  { %v847_v1 = vpop.f32.mrf.mxu1 }
 0x3db   :  { %v3759_v3 = vpop.f32.mrf.mxu1 }
 0x3dc   :  { %v913_v44 = vmax.f32 %v3759_v3, 1e-30  ;;  %v909_v3 = vmax.f32 %v3753_v62, 1e-30  ;;  %v906_v62 = vmax.f32 %v4643_v60, 1e-30 }
 0x3dd   :  { %v857_v4 = vpop.f32.mrf.mxu1 }
 0x3de   :  { %v912_v48 = vmax.f32 %v857_v4, 1e-30 }
 0x3df   :  { %v3762_v5 = vpop.f32.mrf.mxu1 }
 0x3e0   :  { %v915_v37 = vmax.f32 %v3762_v5, 1e-30 }
 0x3e1   :  { %v867_v6 = vpop.f32.mrf.mxu1 }
 0x3e2   :  { %v914_v40 = vmax.f32 %v867_v6, 1e-30  ;;  %v908_v6 = vmax.f32 %v837_v63, 1e-30 }
 0x3e3   :  { %v3765_v7 = vpop.f32.mrf.mxu1 }
 0x3e4   :  { %v917_v27 = vmax.f32 %v3765_v7, 1e-30 }
 0x3e5   :  { %v877_v9 = vpop.f32.mrf.mxu1 }
 0x3e6   :  { %v916_v31 = vmax.f32 %v877_v9, 1e-30  ;;  %v910_v9 = vmax.f32 %v847_v1, 1e-30 }
 0x3e7   :  { %v3768_v10 = vpop.f32.mrf.mxu1 }
 0x3e8   :  { %v919_v18 = vmax.f32 %v3768_v10, 1e-30  ;;  %v911_v10 = vmax.f32 %v3756_v0, 1e-30 }
 0x3e9   :  { %v887_v11 = vpop.f32.mrf.mxu1 }
 0x3ea   :  { %v918_v23 = vmax.f32 %v887_v11, 1e-30  ;;  %v907_v11 = vmax.f32 %v4641_v59, 1e-30 }
 0x3eb   :  { %v3771_v13 = vpop.f32.mrf.mxu1 }
 0x3ec   :  { %v921_v14 = vmax.f32 %v3771_v13, 1e-30 }
 0x3ed   :  { %v897_v16 = vpop.f32.mrf.mxu1 }
 0x3ee   :  { %4125 = vrcp.f32 %v921_v14  ;;  %v920_v21 = vmax.f32 %v897_v16, 1e-30 }
 0x3f0   :  { %4127 = vrcp.f32 %v920_v21 }
 0x3f1   :  { %4129 = vrcp.f32 %v919_v18 }
 0x3f2   :  { %4131 = vrcp.f32 %v918_v23 }
 0x3f3   :  { %4133 = vrcp.f32 %v917_v27 }
 0x3f4   :  { %4135 = vrcp.f32 %v916_v31 }
 0x3f5   :  { %4137 = vrcp.f32 %v915_v37 }
 0x3f6   :  { %4139 = vrcp.f32 %v914_v40 }
 0x3f7   :  { %4141 = vrcp.f32 %v913_v44 }
 0x3f8   :  { %4143 = vrcp.f32 %v912_v48 }
 0x3f9   :  { %4145 = vrcp.f32 %v911_v10 }
 0x3fa   :  { %4147 = vrcp.f32 %v910_v9  ;;  %v1227_v9 = vld [vmem:[#allocation7 + $0x2f0] sm:$0xff] }
 0x3fb   :  { %v4126_v45 = vpop.eup %4125  ;;  %4149 = vrcp.f32 %v909_v3  ;;  %v1210_v3 = vld [vmem:[#allocation7 + $0x268] sm:$0xff] }
 0x3fc   :  { %3773 = vmatpush3.msra.mxu1 %v4126_v45  ;;  %4151 = vrcp.f32 %v908_v6  ;;  %v1208_v6 = vld [vmem:[#allocation7 + $0x258] sm:$0xff] }
 0x3fd   :  { %v4128_v13 = vpop.eup %4127  ;;  %3774 = vmatprep.subr.mxu1 %v4389_v32  ;;  %4153 = vrcp.f32 %v907_v11  ;;  %v1222_v11 = vld [vmem:[#allocation7 + $0x2c8] sm:$0xff] }
 0x3fe   :  { %3775 = vmatpush3.msra.mxu1 %v4128_v13  ;;  %v4130_v7 = vpop.eup %4129  ;;  %4155 = vrcp.f32 %v906_v62  ;;  %v1221_v62 = vld [vmem:[#allocation7 + $0x2c0] sm:$0xff] }
 0x3ff   :  { %3776 = vmatprep.subr.mxu1 %v4389_v32  ;;  %v4132_v5 = vpop.eup %4131 }
 0x400   :  { %3777 = vmatpush3.msra.mxu1 %v4130_v7  ;;  %v4134_v4 = vpop.eup %4133  ;;  %v1212_v7 = vld [vmem:[#allocation7 + $0x278] sm:$0xff] }
 0x401   :  { %3778 = vmatprep.subr.mxu1 %v4389_v32  ;;  %v4136_v0 = vpop.eup %4135 }
 0x402   :  { %3779 = vmatpush3.msra.mxu1 %v4132_v5  ;;  %v4138_v1 = vpop.eup %4137  ;;  %v1226_v5 = vld [vmem:[#allocation7 + $0x2e8] sm:$0xff] }
 0x403   :  { %3780 = vmatprep.subr.mxu1 %v4389_v32  ;;  %v4140_v14 = vpop.eup %4139 }
 0x404   :  { %3781 = vmatpush3.msra.mxu1 %v4134_v4  ;;  %v4142_v63 = vpop.eup %4141  ;;  %v1209_v4 = vld [vmem:[#allocation7 + $0x260] sm:$0xff] }
 0x405   :  { %3782 = vmatprep.subr.mxu1 %v4389_v32  ;;  %v4144_v59 = vpop.eup %4143 }
 0x406   :  { %3783 = vmatpush3.msra.mxu1 %v4136_v0  ;;  %v4146_v16 = vpop.eup %4145  ;;  %v1207_v0 = vld [vmem:[#allocation7 + $0x250] sm:$0xff] }
 0x407   :  { %3784 = vmatprep.subr.mxu1 %v4389_v32  ;;  %v4148_v60 = vpop.eup %4147 }
 0x408   :  { %3785 = vmatpush3.msra.mxu1 %v4138_v1  ;;  %v4150_v18 = vpop.eup %4149  ;;  %v1206_v1 = vld [vmem:[#allocation7 + $0x248] sm:$0xff] }
 0x409   :  { %3786 = vmatprep.subr.mxu1 %v4389_v32  ;;  %v4152_v21 = vpop.eup %4151 }
 0x40a   :  { %3787 = vmatpush3.msra.mxu1 %v4140_v14  ;;  %v4154_v23 = vpop.eup %4153  ;;  %v1205_v14 = vld [vmem:[#allocation7 + $0x240] sm:$0xff] }
 0x40b   :  { %3788 = vmatprep.subr.mxu1 %v4389_v32  ;;  %v4156_v27 = vpop.eup %4155 }
 0x40c   :  { %3789 = vmatpush3.msra.mxu1 %v4142_v63  ;;  %v1220_v63 = vld [vmem:[#allocation7 + $0x2b8] sm:$0xff] }
 0x40d   :  { %3790 = vmatprep.subr.mxu1 %v4389_v32 }
 0x40e   :  { %3791 = vmatpush3.msra.mxu1 %v4144_v59  ;;  %v1204_v59 = vld [vmem:[#allocation7 + $0x238] sm:$0xff] }
 0x40f   :  { %3792 = vmatprep.subr.mxu1 %v4389_v32 }
 0x410   :  { %3793 = vmatpush3.msra.mxu1 %v4146_v16  ;;  %v1219_v16 = vld [vmem:[#allocation7 + $0x2b0] sm:$0xff] }
 0x411   :  { %3794 = vmatprep.subr.mxu1 %v4389_v32 }
 0x412   :  { %3795 = vmatpush3.msra.mxu1 %v4148_v60  ;;  %v1203_v60 = vld [vmem:[#allocation7 + $0x230] sm:$0xff] }
 0x413   :  { %3796 = vmatprep.subr.mxu1 %v4389_v32 }
 0x414   :  { %3797 = vmatpush3.msra.mxu1 %v4150_v18  ;;  %v1218_v18 = vld [vmem:[#allocation7 + $0x2a8] sm:$0xff] }
 0x415   :  { %3798 = vmatprep.subr.mxu1 %v4389_v32 }
 0x416   :  { %3799 = vmatpush3.msra.mxu1 %v4152_v21  ;;  %v1202_v21 = vld [vmem:[#allocation7 + $0x228] sm:$0xff] }
 0x417   :  { %3800 = vmatprep.subr.mxu1 %v4389_v32 }
 0x418   :  { %3801 = vmatpush3.msra.mxu1 %v4154_v23  ;;  %v1217_v23 = vld [vmem:[#allocation7 + $0x2a0] sm:$0xff] }
 0x419   :  { %3802 = vmatprep.subr.mxu1 %v4389_v32 }
 0x41a   :  { %3803 = vmatpush3.msra.mxu1 %v4156_v27  ;;  %v1201_v27 = vld [vmem:[#allocation7 + $0x220] sm:$0xff] }
 0x41b   :  { %3805 = vmatmul.mubr.f32.vlgmr.msra.gmra.mxu1 %v4452_v33 }
 0x41c   :  { %3807 = vmatprep.mubr.msk.f32.mxu1 %vm4390_vm0, %v4389_v32 }
 0x41f   :  { %3808 = vmatmul.mubr.f32.gmra.mxu1 %v4461_v34  ;;  %v1228_v34 = vld [vmem:[#allocation7 + $0x2f8] sm:$0xff] }
 0x420   :  { %3810 = vmatprep.mubr.msk.f32.mxu1 %vm4390_vm0, %v4389_v32  ;;  %3224 = vmatprep.subr.mxu1 %v1228_v34 }
 0x421   :  { %3225 = vmatpush3.msra.mxu1 %v1212_v7 }
 0x422   :  { %3226 = vmatprep.subr.mxu1 %v1227_v9 }
 0x423   :  { %3811 = vmatmul.mubr.f32.gmra.mxu1 %v4467_v35  ;;  %v1211_v35 = vld [vmem:[#allocation7 + $0x270] sm:$0xff] }
 0x424   :  { %3227 = vmatpush3.msra.mxu1 %v1211_v35 }
 0x425   :  { %3228 = vmatprep.subr.mxu1 %v1226_v5 }
 0x426   :  { %3229 = vmatpush3.msra.mxu1 %v1210_v3 }
 0x4db   :  { %v1004_v31 = vpop.f32.mrf.mxu1 }
 0x4dc   :  { %v1018_v10 = vmul.f32 %v1004_v31, %v4593_v51  ;;  %v1223_v51 = vld [vmem:[#allocation7 + $0x2d0] sm:$0xff]  ;;  %v1216_v31 = vld [vmem:[#allocation7 + $0x298] sm:$0xff] }
 0x4dd   :  { %v3806_v37 = vpop.f32.mrf.mxu1 }
 0x4de   :  { %v1200_v37 = vld [vmem:[#allocation7 + $0x218] sm:$0xff] }
 0x4df   :  { %v1009_v40 = vpop.f32.mrf.mxu1 }
 0x4e0   :  { %v1019_v44 = vmul.f32 %v1009_v40, %v4586_v50  ;;  %v1225_v50 = vld [vmem:[#allocation7 + $0x2e0] sm:$0xff]  ;;  %v1215_v40 = vld [vmem:[#allocation7 + $0x290] sm:$0xff] }
 0x4e1   :  { %v3809_v45 = vpop.f32.mrf.mxu1  ;;  %3230 = vmatprep.subr.mxu1 %v1225_v50 }
 0x4e2   :  { %1023 = vadd.xlane.f32.xlu1 %v1019_v44  ;;  %3231 = vmatpush3.msra.mxu1 %v1209_v4  ;;  %v1199_v44 = vld [vmem:[#allocation7 + $0x210] sm:$0xff] }
 0x4e3   :  { %v1014_v48 = vpop.f32.mrf.mxu1 }
 0x4e4   :  { %v1020_v33 = vmul.f32 %v1014_v48, %v4582_v47  ;;  %v1224_v47 = vld [vmem:[#allocation7 + $0x2d8] sm:$0xff] }
 0x4e5   :  { %v3812_v13 = vpop.f32.mrf.mxu1  ;;  %3232 = vmatprep.subr.mxu1 %v1224_v47 }
 0x4e6   :  { %1025 = vadd.xlane.f32.xlu1 %v1020_v33  ;;  %3233 = vmatpush3.msra.mxu1 %v1208_v6 }
 0x4e7   :  { %3234 = vmatprep.subr.mxu1 %v1223_v51 }
 0x4e8   :  { %3235 = vmatpush3.msra.mxu1 %v1207_v0 }
 0x4e9   :  { %3236 = vmatprep.subr.mxu1 %v1222_v11 }
 0x4ea   :  { %1021 = vadd.xlane.f32.xlu1 %v1018_v10  ;;  %3237 = vmatpush3.msra.mxu1 %v1206_v1 }
 0x4eb   :  { %3238 = vmatprep.subr.mxu1 %v1221_v62 }
 0x4ec   :  { %3239 = vmatpush3.msra.mxu1 %v1205_v14  ;;  %v1511_v14 = vld [vmem:[#allocation7 + $0x378] sm:$0xff] }
 0x4ed   :  { %3240 = vmatprep.subr.mxu1 %v1220_v63  ;;  %v1510_v63 = vld [vmem:[#allocation7 + $0x370] sm:$0xff] }
 0x4ee   :  { %3241 = vmatpush3.msra.mxu1 %v1204_v59  ;;  %v1509_v59 = vld [vmem:[#allocation7 + $0x368] sm:$0xff] }
 0x4ef   :  { %3242 = vmatprep.subr.mxu1 %v1219_v16  ;;  %v1508_v16 = vld [vmem:[#allocation7 + $0x360] sm:$0xff] }
 0x4f0   :  { %3243 = vmatpush3.msra.mxu1 %v1203_v60  ;;  %v1507_v60 = vld [vmem:[#allocation7 + $0x358] sm:$0xff] }
 0x4f1   :  { %3244 = vmatprep.subr.mxu1 %v1218_v18  ;;  %v1231_v18 = vsub.s32 1, %v4492_v61 }
 0x4f2   :  { %3245 = vmatpush3.msra.mxu1 %v1202_v21 }
 0x4f3   :  { %3246 = vmatprep.subr.mxu1 %v1217_v23  ;;  %v4732_v23 = vld [vmem:[#allocation8] sm:$0xff] }
 0x4f4   :  { %3247 = vmatpush3.msra.mxu1 %v1201_v27  ;;  %v4735_v27 = vrot.slane %v4732_v23, %v1231_v18 }
 0x4f5   :  { %3248 = vmatprep.subr.mxu1 %v1216_v31 }
 0x4f6   :  { %3249 = vmatpush3.msra.mxu1 %v1200_v37 }
 0x4f7   :  { %3250 = vmatprep.subr.mxu1 %v1215_v40 }
 0x4f8   :  { %3251 = vmatpush3.msra.mxu1 %v1199_v44 }
 0x56b   :  { %v1024_v45 = vpop.xlane.xlu1 %1023 }
 0x56c   :  { %v1028_v33 = vmul.f32 %v1024_v45, %v444_v26 }
 0x56e   :  { %v1034_v9 = vmul.f32 %v1028_v33, %v4521_v20  ;;  %v1031_v5 = vmul.f32 %v1028_v33, %v4548_v36  ;;  %v1213_v20 = vld [vmem:[#allocation7 + $0x280] sm:$0xff] }
 0x56f   :  { %v1026_v48 = vpop.xlane.xlu1 %1025 }
 0x570   :  { %v1029_v13 = vmul.f32 %v1026_v48, %v445_v29 }
 0x572   :  { %v1032_v10 = vmul.f32 %v1029_v13, %v4552_v38  ;;  %v1035_v34 = vmul.f32 %v1029_v13, %v4531_v25 }
 0x573   :  { %v1022_v7 = vpop.xlane.xlu1 %1021 }
 0x574   :  { %v1027_v35 = vmul.f32 %v1022_v7, %v443_v22  ;;  %1062 = vmatprep.subr.mxu0 %v1035_v34  ;;  %v1197_v22 = vld [vmem:[#allocation7 + $0x200] sm:$0xff] }
 0x575   :  { %1063 = vmatpush1.msra.mxu0 %v1032_v10 }
 0x576   :  { %v1030_v24 = vmul.f32 %v1027_v35, %v4544_v30  ;;  %v1033_v26 = vmul.f32 %v1027_v35, %v4516_v15  ;;  %1064 = vmatprep.subr.mxu0 %v1034_v9  ;;  %v1214_v15 = vld [vmem:[#allocation7 + $0x288] sm:$0xff] }
 0x577   :  { %1065 = vmatpush1.msra.mxu0 %v1031_v5  ;;  %3252 = vmatprep.subr.mxu1 %v1214_v15 }
 0x578   :  { %1066 = vmatprep.subr.mxu0 %v1033_v26  ;;  %3253 = vmatpush3.msra.mxu1 %v1198_v19 }
 0x579   :  { %1067 = vmatpush1.msra.mxu0 %v1030_v24  ;;  %3254 = vmatprep.subr.mxu1 %v1213_v20 }
 0x57a   :  { %3008 = vmatmul.mubr.msk.f32.vlgmr.msra.gmra.mxu0 %vm712_vm1, %v4555_v46  ;;  %3255 = vmatpush3.msra.mxu1 %v1197_v22 }
 0x57b   :  { %1106 = vmatprep.mubr.f32.mxu0 %v4389_v32  ;;  %3813 = vmatprep.subr.mxu0 %v1511_v14 }
 0x57c   :  { %3814 = vmatpush3.msra.mxu0 %v1511_v14 }
 0x57d   :  { %3815 = vmatprep.subr.mxu0 %v1510_v63 }
 0x57e   :  { %3009 = vmatmul.mubr.msk.f32.gmra.mxu0 %vm712_vm1, %v4559_v49 }
 0x57f   :  { %1112 = vmatprep.mubr.f32.mxu0 %v4389_v32  ;;  %3816 = vmatpush3.msra.mxu0 %v1510_v63 }
 0x580   :  { %3817 = vmatprep.subr.mxu0 %v1509_v59 }
 0x581   :  { %3818 = vmatpush3.msra.mxu0 %v1509_v59  ;;  %v1499_v59 = vld [vmem:[#allocation7 + $0x318] sm:$0xff] }
 0x582   :  { %3010 = vmatmul.mubr.msk.f32.gmra.mxu0 %vm712_vm1, %v4561_v56  ;;  %3819 = vmatprep.subr.mxu0 %v1508_v16 }
 0x583   :  { %1118 = vmatprep.mubr.f32.mxu0 %v4389_v32  ;;  %3820 = vmatpush3.msra.mxu0 %v1508_v16 }
 0x584   :  { %3821 = vmatprep.subr.mxu0 %v1507_v60 }
 0x585   :  { %3822 = vmatpush3.msra.mxu0 %v1507_v60 }
 0x586   :  { %3011 = vmatmul.mubr.msk.f32.gmra.mxu0 %vm712_vm1, %v4563_v2 }
 0x587   :  { %1124 = vmatprep.mubr.f32.mxu0 %v4389_v32 }
 0x58a   :  { %3012 = vmatmul.mubr.msk.f32.gmra.mxu0 %vm712_vm1, %v4565_v8 }
 0x58b   :  { %1130 = vmatprep.mubr.f32.mxu0 %v4389_v32 }
 0x58e   :  { %3013 = vmatmul.mubr.msk.f32.gmra.mxu0 %vm712_vm1, %v4567_v12 }
 0x58f   :  { %1136 = vmatprep.mubr.f32.mxu0 %v4389_v32 }
 0x592   :  { %3014 = vmatmul.mubr.msk.f32.gmra.mxu0 %vm712_vm1, %v4569_v17 }
 0x593   :  { %1142 = vmatprep.mubr.f32.mxu0 %v4389_v32 }
 0x596   :  { %3015 = vmatmul.mubr.msk.f32.gmra.mxu0 %vm712_vm1, %v4571_v39 }
 0x597   :  { %1148 = vmatprep.mubr.f32.mxu0 %v4389_v32 }
 0x59a   :  { %3016 = vmatmul.mubr.msk.f32.gmra.mxu0 %vm712_vm1, %v4574_v41 }
 0x59b   :  { %1154 = vmatprep.mubr.f32.mxu0 %v4389_v32 }
 0x59e   :  { %3017 = vmatmul.mubr.msk.f32.gmra.mxu0 %vm712_vm1, %v4579_v43 }
 0x59f   :  { %1160 = vmatprep.mubr.f32.mxu0 %v4389_v32 }
 0x5a2   :  { %3018 = vmatmul.mubr.msk.f32.gmra.mxu0 %vm712_vm1, %v4589_v58 }
 0x5a3   :  { %1166 = vmatprep.mubr.f32.mxu0 %v4389_v32 }
 0x5a6   :  { %3019 = vmatmul.mubr.msk.f32.gmra.mxu0 %vm712_vm1, %v4603_v52 }
 0x5a7   :  { %1172 = vmatprep.mubr.f32.mxu0 %v4389_v32 }
 0x5aa   :  { %3020 = vmatmul.mubr.msk.f32.gmra.mxu0 %vm712_vm1, %v4609_v53 }
 0x5ab   :  { %1178 = vmatprep.mubr.f32.mxu0 %v4389_v32 }
 0x5ae   :  { %3021 = vmatmul.mubr.msk.f32.gmra.mxu0 %vm712_vm1, %v4619_v54 }
 0x5af   :  { %1184 = vmatprep.mubr.f32.mxu0 %v4389_v32 }
 0x5b2   :  { %3022 = vmatmul.mubr.msk.f32.gmra.mxu0 %vm712_vm1, %v4625_v55 }
 0x5b3   :  { %1190 = vmatprep.mubr.f32.mxu0 %v4389_v32 }
 0x5b6   :  { %3023 = vmatmul.mubr.msk.f32.gmra.mxu0 %vm712_vm1, %v4635_v57 }
 0x63a   :  { %v1102_v25 = vpop.f32.mrf.mxu0 }
 0x63c   :  { %v1104_v28 = vpop.f32.mrf.mxu0 }
 0x63d   :  { %1297 = vmatprep.mubr.f32.mxu1 %v1104_v28 }
 0x63e   :  { %v1108_v29 = vpop.f32.mrf.mxu0  ;;  %1298 = vmatmul.mubr.f32.vlgmr.msra.gmra.mxu1 %v1102_v25 }
 0x640   :  { %v1110_v30 = vpop.f32.mrf.mxu0 }
 0x641   :  { %1302 = vmatprep.mubr.f32.mxu1 %v1110_v30 }
 0x642   :  { %v1114_v36 = vpop.f32.mrf.mxu0  ;;  %1303 = vmatmul.mubr.f32.gmra.mxu1 %v1108_v29 }
 0x644   :  { %v1116_v38 = vpop.f32.mrf.mxu0 }
 0x645   :  { %1307 = vmatprep.mubr.f32.mxu1 %v1116_v38 }
 0x646   :  { %v1120_v46 = vpop.f32.mrf.mxu0  ;;  %1308 = vmatmul.mubr.f32.gmra.mxu1 %v1114_v36 }
 0x648   :  { %v1122_v49 = vpop.f32.mrf.mxu0 }
 0x649   :  { %1312 = vmatprep.mubr.f32.mxu1 %v1122_v49 }
 0x64a   :  { %v1126_v56 = vpop.f32.mrf.mxu0  ;;  %1313 = vmatmul.mubr.f32.gmra.mxu1 %v1120_v46  ;;  %v1506_v46 = vld [vmem:[#allocation7 + $0x350] sm:$0xff] }
 0x64b   :  { %3823 = vmatprep.subr.mxu0 %v1506_v46 }
 0x64c   :  { %v1128_v2 = vpop.f32.mrf.mxu0  ;;  %3824 = vmatpush3.msra.mxu0 %v1506_v46 }
 0x64d   :  { %1317 = vmatprep.mubr.f32.mxu1 %v1128_v2 }
 0x64e   :  { %v1132_v8 = vpop.f32.mrf.mxu0  ;;  %1318 = vmatmul.mubr.f32.gmra.mxu1 %v1126_v56 }
 0x650   :  { %v1134_v12 = vpop.f32.mrf.mxu0 }
 0x651   :  { %1322 = vmatprep.mubr.f32.mxu1 %v1134_v12 }
 0x652   :  { %v1138_v17 = vpop.f32.mrf.mxu0  ;;  %1323 = vmatmul.mubr.f32.gmra.mxu1 %v1132_v8  ;;  %v1505_v8 = vld [vmem:[#allocation7 + $0x348] sm:$0xff] }
 0x653   :  { %3825 = vmatprep.subr.mxu0 %v1505_v8 }
 0x654   :  { %v1140_v39 = vpop.f32.mrf.mxu0  ;;  %3826 = vmatpush3.msra.mxu0 %v1505_v8 }
 0x655   :  { %1327 = vmatprep.mubr.f32.mxu1 %v1140_v39 }
 0x656   :  { %v1144_v41 = vpop.f32.mrf.mxu0  ;;  %1328 = vmatmul.mubr.f32.gmra.mxu1 %v1138_v17 }
 0x658   :  { %v1146_v43 = vpop.f32.mrf.mxu0 }
 0x659   :  { %1332 = vmatprep.mubr.f32.mxu1 %v1146_v43 }
 0x65a   :  { %v1150_v58 = vpop.f32.mrf.mxu0  ;;  %1333 = vmatmul.mubr.f32.gmra.mxu1 %v1144_v41  ;;  %v1504_v41 = vld [vmem:[#allocation7 + $0x340] sm:$0xff] }
 0x65b   :  { %3827 = vmatprep.subr.mxu0 %v1504_v41 }
 0x65c   :  { %v1152_v52 = vpop.f32.mrf.mxu0  ;;  %3828 = vmatpush3.msra.mxu0 %v1504_v41 }
 0x65d   :  { %1337 = vmatprep.mubr.f32.mxu1 %v1152_v52 }
 0x65e   :  { %v1156_v53 = vpop.f32.mrf.mxu0  ;;  %1338 = vmatmul.mubr.f32.gmra.mxu1 %v1150_v58 }
 0x660   :  { %v1158_v54 = vpop.f32.mrf.mxu0 }
 0x661   :  { %1342 = vmatprep.mubr.f32.mxu1 %v1158_v54 }
 0x662   :  { %v1162_v55 = vpop.f32.mrf.mxu0  ;;  %1343 = vmatmul.mubr.f32.gmra.mxu1 %v1156_v53  ;;  %v1503_v53 = vld [vmem:[#allocation7 + $0x338] sm:$0xff] }
 0x663   :  { %3829 = vmatprep.subr.mxu0 %v1503_v53 }
 0x664   :  { %v1164_v57 = vpop.f32.mrf.mxu0  ;;  %3830 = vmatpush3.msra.mxu0 %v1503_v53 }
 0x665   :  { %1347 = vmatprep.mubr.f32.mxu1 %v1164_v57 }
 0x666   :  { %v1168_v3 = vpop.f32.mrf.mxu0  ;;  %1348 = vmatmul.mubr.f32.gmra.mxu1 %v1162_v55 }
 0x668   :  { %v1170_v50 = vpop.f32.mrf.mxu0 }
 0x669   :  { %1352 = vmatprep.mubr.f32.mxu1 %v1170_v50 }
 0x66a   :  { %v1174_v4 = vpop.f32.mrf.mxu0  ;;  %1353 = vmatmul.mubr.f32.gmra.mxu1 %v1168_v3  ;;  %v1502_v3 = vld [vmem:[#allocation7 + $0x330] sm:$0xff] }
 0x66b   :  { %3831 = vmatprep.subr.mxu0 %v1502_v3 }
 0x66c   :  { %v1176_v47 = vpop.f32.mrf.mxu0  ;;  %3832 = vmatpush3.msra.mxu0 %v1502_v3 }
 0x66d   :  { %1357 = vmatprep.mubr.f32.mxu1 %v1176_v47 }
 0x66e   :  { %v1180_v6 = vpop.f32.mrf.mxu0  ;;  %1358 = vmatmul.mubr.f32.gmra.mxu1 %v1174_v4 }
 0x670   :  { %v1182_v51 = vpop.f32.mrf.mxu0 }
 0x671   :  { %1362 = vmatprep.mubr.f32.mxu1 %v1182_v51 }
 0x672   :  { %v1186_v0 = vpop.f32.mrf.mxu0  ;;  %1363 = vmatmul.mubr.f32.gmra.mxu1 %v1180_v6  ;;  %v1501_v6 = vld [vmem:[#allocation7 + $0x328] sm:$0xff] }
 0x673   :  { %3833 = vmatprep.subr.mxu0 %v1501_v6 }
 0x674   :  { %v1188_v11 = vpop.f32.mrf.mxu0  ;;  %3834 = vmatpush3.msra.mxu0 %v1501_v6 }
 0x675   :  { %1367 = vmatprep.mubr.f32.mxu1 %v1188_v11 }
 0x676   :  { %v1192_v1 = vpop.f32.mrf.mxu0  ;;  %1368 = vmatmul.mubr.f32.gmra.mxu1 %v1186_v0 }
 0x678   :  { %v1194_v62 = vpop.f32.mrf.mxu0 }
 0x679   :  { %1372 = vmatprep.mubr.f32.mxu1 %v1194_v62 }
 0x67a   :  { %1373 = vmatmul.mubr.f32.gmra.mxu1 %v1192_v1  ;;  %v1500_v1 = vld [vmem:[#allocation7 + $0x320] sm:$0xff] }
 0x67b   :  { %3835 = vmatprep.subr.mxu0 %v1500_v1 }
 0x67c   :  { %3836 = vmatpush3.msra.mxu0 %v1500_v1 }
 0x67d   :  { %3837 = vmatprep.subr.mxu0 %v1499_v59 }
 0x67e   :  { %3838 = vmatpush3.msra.mxu0 %v1499_v59 }
 0x6fe   :  { %v3256_v21 = vpop.f32.mrf.mxu1 }
 0x700   :  { %v3257_v31 = vpop.f32.mrf.mxu1 }
 0x701   :  { %v3258_v37 = vadd.f32 %v3257_v31, %v3256_v21  ;;  %v1498_v21 = vld [vmem:[#allocation7 + $0x310] sm:$0xff] }
 0x702   :  { %v3259_v40 = vpop.f32.mrf.mxu1  ;;  %3839 = vmatprep.subr.mxu0 %v1498_v21 }
 0x703   :  { %v1300_v44 = vadd.f32 %v3258_v37, %v4735_v27  ;;  %3840 = vmatpush3.msra.mxu0 %v1498_v21 }
 0x704   :  { %v3260_v45 = vpop.f32.mrf.mxu1 }
 0x705   :  { %v4738_v48 = vmax.f32 %v1300_v44, 0.0  ;;  %v3261_v33 = vadd.f32 %v3260_v45, %v3259_v40  ;;  %v1497_v44 = vld [vmem:[#allocation7 + $0x308] sm:$0xff] }
 0x706   :  { %v3262_v13 = vpop.f32.mrf.mxu1  ;;  %3841 = vmatprep.subr.mxu0 %v1497_v44 }
 0x707   :  { %v1305_v10 = vadd.f32 %v3261_v33, %v4735_v27  ;;  %v1394_v34 = vmul.f32 %v4738_v48, %v4738_v48  ;;  %3842 = vmatpush3.msra.mxu0 %v1497_v44 }
 0x708   :  { %v3263_v7 = vpop.f32.mrf.mxu1 }
 0x709   :  { %v4743_v9 = vmax.f32 %v1305_v10, 0.0  ;;  %v3264_v35 = vadd.f32 %v3263_v7, %v3262_v13  ;;  %1410 = vadd.xlane.f32.xlu0 %v1394_v34  ;;  %v1496_v10 = vld [vmem:[#allocation7 + $0x300] sm:$0xff] }
 0x70a   :  { %v3265_v5 = vpop.f32.mrf.mxu1  ;;  %3843 = vmatprep.subr.mxu0 %v1496_v10 }
 0x70b   :  { %v1310_v24 = vadd.f32 %v3264_v35, %v4735_v27  ;;  %v1395_v26 = vmul.f32 %v4743_v9, %v4743_v9  ;;  %3844 = vmatpush3.msra.mxu0 %v1496_v10 }
 0x70c   :  { %v3266_v15 = vpop.f32.mrf.mxu1 }
 0x70d   :  { %v4748_v19 = vmax.f32 %v1310_v24, 0.0  ;;  %v3267_v20 = vadd.f32 %v3266_v15, %v3265_v5  ;;  %1412 = vadd.xlane.f32.xlu1 %v1395_v26 }
 0x70e   :  { %v3268_v22 = vpop.f32.mrf.mxu1 }
 0x70f   :  { %v1315_v25 = vadd.f32 %v3267_v20, %v4735_v27  ;;  %v1396_v28 = vmul.f32 %v4748_v19, %v4748_v19 }
 0x710   :  { %v3269_v29 = vpop.f32.mrf.mxu1 }
 0x711   :  { %v4753_v30 = vmax.f32 %v1315_v25, 0.0  ;;  %v3270_v36 = vadd.f32 %v3269_v29, %v3268_v22  ;;  %1414 = vadd.xlane.f32.xlu1 %v1396_v28 }
 0x712   :  { %v3271_v38 = vpop.f32.mrf.mxu1 }
 0x713   :  { %v1320_v49 = vadd.f32 %v3270_v36, %v4735_v27  ;;  %v1397_v56 = vmul.f32 %v4753_v30, %v4753_v30 }
 0x714   :  { %v3272_v2 = vpop.f32.mrf.mxu1 }
 0x715   :  { %v4758_v12 = vmax.f32 %v1320_v49, 0.0  ;;  %v3273_v17 = vadd.f32 %v3272_v2, %v3271_v38  ;;  %1416 = vadd.xlane.f32.xlu1 %v1397_v56 }
 0x716   :  { %v3274_v39 = vpop.f32.mrf.mxu1 }
 0x717   :  { %v1325_v43 = vadd.f32 %v3273_v17, %v4735_v27  ;;  %v1398_v58 = vmul.f32 %v4758_v12, %v4758_v12 }
 0x718   :  { %v3275_v52 = vpop.f32.mrf.mxu1 }
 0x719   :  { %v4763_v54 = vmax.f32 %v1325_v43, 0.0  ;;  %v3276_v55 = vadd.f32 %v3275_v52, %v3274_v39  ;;  %1418 = vadd.xlane.f32.xlu1 %v1398_v58 }
 0x71a   :  { %v3277_v57 = vpop.f32.mrf.mxu1 }
 0x71b   :  { %v1330_v50 = vadd.f32 %v3276_v55, %v4735_v27  ;;  %v1399_v4 = vmul.f32 %v4763_v54, %v4763_v54 }
 0x71c   :  { %v3278_v47 = vpop.f32.mrf.mxu1 }
 0x71d   :  { %v4768_v51 = vmax.f32 %v1330_v50, 0.0  ;;  %v3279_v0 = vadd.f32 %v3278_v47, %v3277_v57  ;;  %1420 = vadd.xlane.f32.xlu1 %v1399_v4 }
 0x71e   :  { %v3280_v11 = vpop.f32.mrf.mxu1 }
 0x71f   :  { %v1335_v62 = vadd.f32 %v3279_v0, %v4735_v27  ;;  %v1400_v14 = vmul.f32 %v4768_v51, %v4768_v51 }
 0x720   :  { %v3281_v63 = vpop.f32.mrf.mxu1 }
 0x721   :  { %v4773_v16 = vmax.f32 %v1335_v62, 0.0  ;;  %v3282_v60 = vadd.f32 %v3281_v63, %v3280_v11  ;;  %1422 = vadd.xlane.f32.xlu1 %v1400_v14 }
 0x722   :  { %v3283_v18 = vpop.f32.mrf.mxu1 }
 0x723   :  { %v1340_v31 = vadd.f32 %v3282_v60, %v4735_v27  ;;  %v1401_v37 = vmul.f32 %v4773_v16, %v4773_v16 }
 0x724   :  { %v3284_v40 = vpop.f32.mrf.mxu1 }
 0x725   :  { %v4778_v45 = vmax.f32 %v1340_v31, 0.0  ;;  %v3285_v33 = vadd.f32 %v3284_v40, %v3283_v18  ;;  %1424 = vadd.xlane.f32.xlu1 %v1401_v37 }
 0x726   :  { %v3286_v13 = vpop.f32.mrf.mxu1 }
 0x727   :  { %v1345_v34 = vadd.f32 %v3285_v33, %v4735_v27  ;;  %v1402_v7 = vmul.f32 %v4778_v45, %v4778_v45 }
 0x728   :  { %v3287_v35 = vpop.f32.mrf.mxu1 }
 0x729   :  { %v4783_v5 = vmax.f32 %v1345_v34, 0.0  ;;  %v3288_v24 = vadd.f32 %v3287_v35, %v3286_v13  ;;  %1426 = vadd.xlane.f32.xlu1 %v1402_v7 }
 0x72a   :  { %v3289_v26 = vpop.f32.mrf.mxu1 }
 0x72b   :  { %v1350_v15 = vadd.f32 %v3288_v24, %v4735_v27  ;;  %v1403_v20 = vmul.f32 %v4783_v5, %v4783_v5 }
 0x72c   :  { %v3290_v22 = vpop.f32.mrf.mxu1 }
 0x72d   :  { %v4788_v25 = vmax.f32 %v1350_v15, 0.0  ;;  %v3291_v28 = vadd.f32 %v3290_v22, %v3289_v26  ;;  %1428 = vadd.xlane.f32.xlu1 %v1403_v20 }
 0x72e   :  { %v3292_v29 = vpop.f32.mrf.mxu1 }
 0x72f   :  { %v1355_v36 = vadd.f32 %v3291_v28, %v4735_v27  ;;  %v1404_v38 = vmul.f32 %v4788_v25, %v4788_v25 }
 0x730   :  { %v3293_v46 = vpop.f32.mrf.mxu1 }
 0x731   :  { %v4793_v49 = vmax.f32 %v1355_v36, 0.0  ;;  %v3294_v56 = vadd.f32 %v3293_v46, %v3292_v29  ;;  %1430 = vadd.xlane.f32.xlu1 %v1404_v38 }
 0x732   :  { %v3295_v2 = vpop.f32.mrf.mxu1 }
 0x733   :  { %v1360_v8 = vadd.f32 %v3294_v56, %v4735_v27  ;;  %v1405_v17 = vmul.f32 %v4793_v49, %v4793_v49 }
 0x734   :  { %v3296_v39 = vpop.f32.mrf.mxu1 }
 0x735   :  { %v4798_v41 = vmax.f32 %v1360_v8, 0.0  ;;  %v3297_v43 = vadd.f32 %v3296_v39, %v3295_v2  ;;  %1432 = vadd.xlane.f32.xlu1 %v1405_v17 }
 0x736   :  { %v3298_v58 = vpop.f32.mrf.mxu1 }
 0x737   :  { %v1365_v52 = vadd.f32 %v3297_v43, %v4735_v27  ;;  %v1406_v53 = vmul.f32 %v4798_v41, %v4798_v41 }
 0x738   :  { %v3299_v55 = vpop.f32.mrf.mxu1 }
 0x739   :  { %v4803_v57 = vmax.f32 %v1365_v52, 0.0  ;;  %v3300_v3 = vadd.f32 %v3299_v55, %v3298_v58  ;;  %1434 = vadd.xlane.f32.xlu1 %v1406_v53 }
 0x73a   :  { %v3301_v50 = vpop.f32.mrf.mxu1 }
 0x73b   :  { %v1370_v4 = vadd.f32 %v3300_v3, %v4735_v27  ;;  %v1407_v47 = vmul.f32 %v4803_v57, %v4803_v57 }
 0x73c   :  { %v3302_v6 = vpop.f32.mrf.mxu1 }
 0x73d   :  { %v4808_v0 = vmax.f32 %v1370_v4, 0.0  ;;  %v3303_v11 = vadd.f32 %v3302_v6, %v3301_v50  ;;  %1436 = vadd.xlane.f32.xlu1 %v1407_v47 }
 0x73f   :  { %v1375_v1 = vadd.f32 %v3303_v11, %v4735_v27  ;;  %v1408_v62 = vmul.f32 %v4808_v0, %v4808_v0 }
 0x741   :  { %v4813_v14 = vmax.f32 %v1375_v1, 0.0  ;;  %1438 = vadd.xlane.f32.xlu1 %v1408_v62 }
 0x743   :  { %v1409_v63 = vmul.f32 %v4813_v14, %v4813_v14 }
 0x745   :  { %1440 = vadd.xlane.f32.xlu1 %v1409_v63 }
 0x792   :  { %v1411_v59 = vpop.xlane.xlu0 %1410 }
 0x793   :  { %v1442_v60 = vmax.f32 %v1411_v59, 1e-24 }
 0x795   :  { %4157 = vrsqrt.f32 %v1442_v60 }
 0x796   :  { %v1413_v18 = vpop.xlane.xlu1 %1412 }
 0x797   :  { %v1443_v21 = vmax.f32 %v1413_v18, 1e-24 }
 0x799   :  { %4159 = vrsqrt.f32 %v1443_v21 }
 0x79a   :  { %v1415_v31 = vpop.xlane.xlu1 %1414 }
 0x79b   :  { %v1444_v37 = vmax.f32 %v1415_v31, 1e-24 }
 0x79d   :  { %4161 = vrsqrt.f32 %v1444_v37 }
 0x79e   :  { %v1417_v27 = vpop.xlane.xlu1 %1416 }
 0x79f   :  { %v1445_v40 = vmax.f32 %v1417_v27, 1e-24 }
 0x7a1   :  { %4163 = vrsqrt.f32 %v1445_v40 }
 0x7a2   :  { %v4158_v44 = vpop.eup %4157  ;;  %v1419_v33 = vpop.xlane.xlu1 %1418 }
 0x7a3   :  { %v1446_v13 = vmax.f32 %v1419_v33, 1e-24  ;;  %v4818_v10 = vmul.f32 %v4158_v44, %v4738_v48  ;;  %v1874_v33 = vld [vmem:[#allocation7 + $0x4e8] sm:$0xff] }
 0x7a5   :  { %4165 = vrsqrt.f32 %v1446_v13  ;;  %3845 = vmatprep.mubr.f32.mxu0 %v4818_v10  ;;  %v1873_v13 = vld [vmem:[#allocation7 + $0x4e0] sm:$0xff] }
 0x7a6   :  { %v4160_v34 = vpop.eup %4159  ;;  %v1421_v7 = vpop.xlane.xlu1 %1420 }
 0x7a7   :  { %v1447_v35 = vmax.f32 %v1421_v7, 1e-24  ;;  %v4822_v24 = vmul.f32 %v4160_v34, %v4743_v9  ;;  %v1871_v34 = vld [vmem:[#allocation7 + $0x4d0] sm:$0xff]  ;;  %v1870_v7 = vld [vmem:[#allocation7 + $0x4c8] sm:$0xff] }
 0x7a9   :  { %4167 = vrsqrt.f32 %v1447_v35  ;;  %3846 = vmatmul.mubr.f32.vlgmr.msra.gmra.mxu0 %v4822_v24  ;;  %v1869_v35 = vld [vmem:[#allocation7 + $0x4c0] sm:$0xff] }
 0x7aa   :  { %v4162_v26 = vpop.eup %4161  ;;  %v1423_v15 = vpop.xlane.xlu1 %1422 }
 0x7ab   :  { %v1448_v20 = vmax.f32 %v1423_v15, 1e-24  ;;  %v4826_v22 = vmul.f32 %v4162_v26, %v4748_v19  ;;  %v1867_v26 = vld [vmem:[#allocation7 + $0x4b0] sm:$0xff]  ;;  %v1866_v15 = vld [vmem:[#allocation7 + $0x4a8] sm:$0xff] }
 0x7ad   :  { %4169 = vrsqrt.f32 %v1448_v20  ;;  %3848 = vmatprep.mubr.f32.mxu0 %v4826_v22  ;;  %v1865_v20 = vld [vmem:[#allocation7 + $0x4a0] sm:$0xff] }
 0x7ae   :  { %v4164_v48 = vpop.eup %4163  ;;  %v1425_v28 = vpop.xlane.xlu1 %1424 }
 0x7af   :  { %v1449_v29 = vmax.f32 %v1425_v28, 1e-24  ;;  %v4830_v36 = vmul.f32 %v4164_v48, %v4753_v30 }
 0x7b1   :  { %4171 = vrsqrt.f32 %v1449_v29  ;;  %3849 = vmatmul.mubr.f32.gmra.mxu0 %v4830_v36 }
 0x7b2   :  { %v4166_v9 = vpop.eup %4165  ;;  %v1427_v38 = vpop.xlane.xlu1 %1426 }
 0x7b3   :  { %v1450_v46 = vmax.f32 %v1427_v38, 1e-24  ;;  %v4834_v56 = vmul.f32 %v4166_v9, %v4758_v12  ;;  %v1864_v9 = vld [vmem:[#allocation7 + $0x498] sm:$0xff]  ;;  %v1863_v38 = vld [vmem:[#allocation7 + $0x490] sm:$0xff] }
 0x7b5   :  { %4173 = vrsqrt.f32 %v1450_v46  ;;  %3851 = vmatprep.mubr.f32.mxu0 %v4834_v56 }
 0x7b6   :  { %v4168_v19 = vpop.eup %4167  ;;  %v1429_v2 = vpop.xlane.xlu1 %1428 }
 0x7b7   :  { %v1451_v8 = vmax.f32 %v1429_v2, 1e-24  ;;  %v4838_v17 = vmul.f32 %v4168_v19, %v4763_v54 }
 0x7b9   :  { %4175 = vrsqrt.f32 %v1451_v8  ;;  %3852 = vmatmul.mubr.f32.gmra.mxu0 %v4838_v17 }
 0x7ba   :  { %v4170_v30 = vpop.eup %4169  ;;  %v1431_v39 = vpop.xlane.xlu1 %1430 }
 0x7bb   :  { %v1452_v43 = vmax.f32 %v1431_v39, 1e-24  ;;  %v4842_v58 = vmul.f32 %v4170_v30, %v4768_v51 }
 0x7bd   :  { %4177 = vrsqrt.f32 %v1452_v43  ;;  %3854 = vmatprep.mubr.f32.mxu0 %v4842_v58  ;;  %v1514_v43 = vsub.s32 2, %v4492_v61 }
 0x7be   :  { %v4172_v12 = vpop.eup %4171  ;;  %v1433_v52 = vpop.xlane.xlu1 %1432 }
 0x7bf   :  { %v1453_v53 = vmax.f32 %v1433_v52, 1e-24  ;;  %v1481_v55 = vmul.f32 %v4172_v12, %v4773_v16  ;;  %v1515_v12 = vrot.slane %v4732_v23, %v1514_v43  ;;  %v1834_v43 = vld [vmem:[#allocation7 + $0x3a8] sm:$0xff] }
 0x7c1   :  { %4179 = vrsqrt.f32 %v1453_v53  ;;  %3855 = vmatmul.mubr.f32.gmra.mxu0 %v1481_v55 }
 0x7c2   :  { %v4174_v54 = vpop.eup %4173  ;;  %v1435_v3 = vpop.xlane.xlu1 %1434 }
 0x7c3   :  { %v1454_v50 = vmax.f32 %v1435_v3, 1e-24  ;;  %v1482_v4 = vmul.f32 %v4174_v54, %v4778_v45 }
 0x7c5   :  { %4181 = vrsqrt.f32 %v1454_v50  ;;  %3857 = vmatprep.mubr.f32.mxu0 %v1482_v4 }
 0x7c6   :  { %v4176_v47 = vpop.eup %4175  ;;  %v1437_v51 = vpop.xlane.xlu1 %1436 }
 0x7c7   :  { %v1455_v6 = vmax.f32 %v1437_v51, 1e-24  ;;  %v1483_v11 = vmul.f32 %v4176_v47, %v4783_v5 }
 0x7c9   :  { %4183 = vrsqrt.f32 %v1455_v6  ;;  %3858 = vmatmul.mubr.f32.gmra.mxu0 %v1483_v11 }
 0x7ca   :  { %v4178_v1 = vpop.eup %4177  ;;  %v1439_v62 = vpop.xlane.xlu1 %1438 }
 0x7cb   :  { %v1456_v63 = vmax.f32 %v1439_v62, 1e-24  ;;  %v1484_v16 = vmul.f32 %v4178_v1, %v4788_v25 }
 0x7cd   :  { %4185 = vrsqrt.f32 %v1456_v63  ;;  %3860 = vmatprep.mubr.f32.mxu0 %v1484_v16 }
 0x7ce   :  { %v4180_v59 = vpop.eup %4179  ;;  %v1441_v60 = vpop.xlane.xlu1 %1440 }
 0x7cf   :  { %v1457_v18 = vmax.f32 %v1441_v60, 1e-24  ;;  %v1485_v45 = vmul.f32 %v4180_v59, %v4793_v49  ;;  %v4868_v49 = vld [vmem:[#allocation5 + $0x40] sm:$0xff] }
 0x7d0   :  { %3936 = vmatprep.mubr.f32.mxu1 %v4868_v49  ;;  %2046 = vxpose.xlu1.b32.start [1/2] (short) %v4868_v49, 128 }
 0x7d1   :  { %4187 = vrsqrt.f32 %v1457_v18  ;;  %3861 = vmatmul.mubr.f32.gmra.mxu0 %v1485_v45 }
 0x7d2   :  { %v4182_v21 = vpop.eup %4181 }
 0x7d3   :  { %v1486_v31 = vmul.f32 %v4182_v21, %v4798_v41  ;;  %v4871_v41 = vld [vmem:[#allocation5 + $0x48] sm:$0xff] }
 0x7d4   :  { %2047 = vxpose.xlu1.b32.end [2/2] (short) %v4871_v41, 128 }
 0x7d5   :  { %3863 = vmatprep.mubr.f32.mxu0 %v1486_v31 }
 0x7d6   :  { %v4184_v5 = vpop.eup %4183 }
 0x7d7   :  { %v1487_v37 = vmul.f32 %v4184_v5, %v4803_v57  ;;  %v1492_v57 = vld [vmem:[#allocation5 + $0x30] sm:$0xff] }
 0x7d9   :  { %3864 = vmatmul.mubr.f32.gmra.mxu0 %v1487_v37 }
 0x7da   :  { %v4186_v27 = vpop.eup %4185 }
 0x7db   :  { %v1488_v25 = vmul.f32 %v4186_v27, %v4808_v0  ;;  %v1876_v0 = vld [vmem:[#allocation7 + $0x4f8] sm:$0xff] }
 0x7dd   :  { %3866 = vmatprep.mubr.f32.mxu0 %v1488_v25 }
 0x7de   :  { %v4188_v40 = vpop.eup %4187 }
 0x7df   :  { %v1489_v44 = vmul.f32 %v4188_v40, %v4813_v14  ;;  %v1875_v14 = vld [vmem:[#allocation7 + $0x4f0] sm:$0xff] }
 0x7e1   :  { %3867 = vmatmul.mubr.f32.gmra.mxu0 %v1489_v44  ;;  %3904 = vmatprep.subr.mxu1 %v1489_v44 }
 0x7e2   :  { %3905 = vmatpush3.msra.mxu1 %v1489_v44  ;;  %3901 = vmatprep.mubr.f32.mxu0 %v1492_v57 }
 0x7e3   :  { %3906 = vmatprep.subr.mxu1 %v1488_v25 }
 0x7e4   :  { %3907 = vmatpush3.msra.mxu1 %v1488_v25 }
 0x7e5   :  { %3908 = vmatprep.subr.mxu1 %v1487_v37 }
 0x7e6   :  { %3909 = vmatpush3.msra.mxu1 %v1487_v37 }
 0x7e7   :  { %3910 = vmatprep.subr.mxu1 %v1486_v31 }
 0x7e8   :  { %3911 = vmatpush3.msra.mxu1 %v1486_v31 }
 0x7e9   :  { %3912 = vmatprep.subr.mxu1 %v1485_v45 }
 0x7ea   :  { %3913 = vmatpush3.msra.mxu1 %v1485_v45 }
 0x7eb   :  { %3914 = vmatprep.subr.mxu1 %v1484_v16 }
 0x7ec   :  { %3915 = vmatpush3.msra.mxu1 %v1484_v16 }
 0x7ed   :  { %3916 = vmatprep.subr.mxu1 %v1483_v11 }
 0x7ee   :  { %3917 = vmatpush3.msra.mxu1 %v1483_v11 }
 0x7ef   :  { %3918 = vmatprep.subr.mxu1 %v1482_v4 }
 0x7f0   :  { %3919 = vmatpush3.msra.mxu1 %v1482_v4 }
 0x7f1   :  { %3920 = vmatprep.subr.mxu1 %v1481_v55 }
 0x7f2   :  { %3921 = vmatpush3.msra.mxu1 %v1481_v55 }
 0x7f3   :  { %3922 = vmatprep.subr.mxu1 %v4842_v58 }
 0x7f4   :  { %3923 = vmatpush3.msra.mxu1 %v4842_v58 }
 0x7f5   :  { %3924 = vmatprep.subr.mxu1 %v4838_v17 }
 0x7f6   :  { %3925 = vmatpush3.msra.mxu1 %v4838_v17 }
 0x7f7   :  { %3926 = vmatprep.subr.mxu1 %v4834_v56 }
 0x7f8   :  { %3927 = vmatpush3.msra.mxu1 %v4834_v56 }
 0x7f9   :  { %3928 = vmatprep.subr.mxu1 %v4830_v36 }
 0x7fa   :  { %3929 = vmatpush3.msra.mxu1 %v4830_v36 }
 0x7fb   :  { %3930 = vmatprep.subr.mxu1 %v4826_v22 }
 0x7fc   :  { %3931 = vmatpush3.msra.mxu1 %v4826_v22 }
 0x7fd   :  { %3932 = vmatprep.subr.mxu1 %v4822_v24 }
 0x7fe   :  { %3933 = vmatpush3.msra.mxu1 %v4822_v24  ;;  %v1868_v24 = vld [vmem:[#allocation7 + $0x4b8] sm:$0xff] }
 0x7ff   :  { %3934 = vmatprep.subr.mxu1 %v4818_v10 }
 0x800   :  { %3935 = vmatpush3.msra.mxu1 %v4818_v10  ;;  %v1872_v10 = vld [vmem:[#allocation7 + $0x4d8] sm:$0xff] }
 0x801   :  { %3937 = vmatmul.mubr.f32.vlgmr.msra.gmra.mxu1 %v4871_v41  ;;  %3939 = vmatprep.subr.mxu1 %v1876_v0 }
 0x802   :  { %3940 = vmatpush3.msra.mxu1 %v1876_v0 }
 0x803   :  { %3941 = vmatprep.subr.mxu1 %v1875_v14 }
 0x804   :  { %3942 = vmatpush3.msra.mxu1 %v1875_v14 }
 0x805   :  { %3943 = vmatprep.subr.mxu1 %v1874_v33 }
 0x806   :  { %3944 = vmatpush3.msra.mxu1 %v1874_v33 }
 0x807   :  { %3945 = vmatprep.subr.mxu1 %v1873_v13 }
 0x808   :  { %3946 = vmatpush3.msra.mxu1 %v1873_v13 }
 0x809   :  { %3947 = vmatprep.subr.mxu1 %v1872_v10 }
 0x80a   :  { %3948 = vmatpush3.msra.mxu1 %v1872_v10 }
 0x80b   :  { %3949 = vmatprep.subr.mxu1 %v1871_v34 }
 0x80c   :  { %3950 = vmatpush3.msra.mxu1 %v1871_v34  ;;  %v1493_v34 = vld [vmem:[#allocation5 + $0x38] sm:$0xff] }
 0x80d   :  { %3951 = vmatprep.subr.mxu1 %v1870_v7 }
 0x80e   :  { %3952 = vmatpush3.msra.mxu1 %v1870_v7  ;;  %v1860_v7 = vld [vmem:[#allocation7 + $0x478] sm:$0xff] }
 0x80f   :  { %3953 = vmatprep.subr.mxu1 %v1869_v35 }
 0x810   :  { %3954 = vmatpush3.msra.mxu1 %v1869_v35  ;;  %v1844_v35 = vld [vmem:[#allocation7 + $0x3f8] sm:$0xff] }
 0x811   :  { %3955 = vmatprep.subr.mxu1 %v1868_v24 }
 0x812   :  { %3956 = vmatpush3.msra.mxu1 %v1868_v24  ;;  %v1859_v24 = vld [vmem:[#allocation7 + $0x470] sm:$0xff] }
 0x813   :  { %3957 = vmatprep.subr.mxu1 %v1867_v26 }
 0x814   :  { %3958 = vmatpush3.msra.mxu1 %v1867_v26  ;;  %v1843_v26 = vld [vmem:[#allocation7 + $0x3f0] sm:$0xff] }
 0x815   :  { %3959 = vmatprep.subr.mxu1 %v1866_v15 }
 0x816   :  { %3960 = vmatpush3.msra.mxu1 %v1866_v15  ;;  %v1858_v15 = vld [vmem:[#allocation7 + $0x468] sm:$0xff] }
 0x817   :  { %3961 = vmatprep.subr.mxu1 %v1865_v20 }
 0x818   :  { %3962 = vmatpush3.msra.mxu1 %v1865_v20  ;;  %v1842_v20 = vld [vmem:[#allocation7 + $0x3e8] sm:$0xff] }
 0x819   :  { %3963 = vmatprep.subr.mxu1 %v1864_v9 }
 0x81a   :  { %3964 = vmatpush3.msra.mxu1 %v1864_v9  ;;  %v1839_v9 = vld [vmem:[#allocation7 + $0x3d0] sm:$0xff] }
 0x81b   :  { %3965 = vmatprep.subr.mxu1 %v1863_v38 }
 0x81c   :  { %3966 = vmatpush3.msra.mxu1 %v1863_v38  ;;  %v1854_v38 = vld [vmem:[#allocation7 + $0x448] sm:$0xff] }
 0x869   :  { %v4876_v22 = vpop.f32.mrf.mxu0 }
 0x86a   :  { %v1588_v57 = vadd.f32 %v4876_v22, %v1515_v12  ;;  %v1857_v22 = vld [vmem:[#allocation7 + $0x460] sm:$0xff] }
 0x86b   :  { %v4878_v48 = vpop.f32.mrf.mxu0 }
 0x86c   :  { %v1583_v14 = vadd.f32 %v4878_v48, %v1515_v12  ;;  %v1662_v13 = vmax.f32 %v1588_v57, 0.0  ;;  %v1841_v48 = vld [vmem:[#allocation7 + $0x3e0] sm:$0xff] }
 0x86e   :  { %v1661_v10 = vmax.f32 %v1583_v14, 0.0 }
 0x871   :  { %v3850_v28 = vpop.f32.mrf.mxu0 }
 0x872   :  { %v1598_v27 = vadd.f32 %v3850_v28, %v1515_v12  ;;  %v1856_v28 = vld [vmem:[#allocation7 + $0x458] sm:$0xff] }
 0x873   :  { %v4880_v29 = vpop.f32.mrf.mxu0 }
 0x874   :  { %v1593_v40 = vadd.f32 %v4880_v29, %v1515_v12  ;;  %v1664_v0 = vmax.f32 %v1598_v27, 0.0  ;;  %v1840_v29 = vld [vmem:[#allocation7 + $0x3d8] sm:$0xff] }
 0x876   :  { %v1663_v33 = vmax.f32 %v1593_v40, 0.0 }
 0x879   :  { %v3853_v36 = vpop.f32.mrf.mxu0 }
 0x87a   :  { %v1608_v21 = vadd.f32 %v3853_v36, %v1515_v12  ;;  %v1855_v36 = vld [vmem:[#allocation7 + $0x450] sm:$0xff] }
 0x87b   :  { %v1602_v46 = vpop.f32.mrf.mxu0 }
 0x87c   :  { %v1603_v5 = vadd.f32 %v1602_v46, %v1515_v12  ;;  %v1666_v25 = vmax.f32 %v1608_v21, 0.0  ;;  %v1838_v46 = vld [vmem:[#allocation7 + $0x3c8] sm:$0xff] }
 0x87e   :  { %v1665_v44 = vmax.f32 %v1603_v5, 0.0 }
 0x881   :  { %v3856_v56 = vpop.f32.mrf.mxu0 }
 0x882   :  { %v1618_v59 = vadd.f32 %v3856_v56, %v1515_v12  ;;  %v1853_v56 = vld [vmem:[#allocation7 + $0x440] sm:$0xff] }
 0x883   :  { %v1612_v19 = vpop.f32.mrf.mxu0 }
 0x884   :  { %v1613_v18 = vadd.f32 %v1612_v19, %v1515_v12  ;;  %v1668_v31 = vmax.f32 %v1618_v59, 0.0  ;;  %v1837_v19 = vld [vmem:[#allocation7 + $0x3c0] sm:$0xff] }
 0x886   :  { %v1667_v37 = vmax.f32 %v1613_v18, 0.0  ;;  %v4910_v18 = vpop.trf.xlu1 }
 0x889   :  { %v3859_v2 = vpop.f32.mrf.mxu0 }
 0x88a   :  { %v1628_v62 = vadd.f32 %v3859_v2, %v1515_v12  ;;  %v1852_v2 = vld [vmem:[#allocation7 + $0x438] sm:$0xff] }
 0x88b   :  { %v1622_v8 = vpop.f32.mrf.mxu0 }
 0x88c   :  { %v1623_v63 = vadd.f32 %v1622_v8, %v1515_v12  ;;  %v1670_v60 = vmax.f32 %v1628_v62, 0.0  ;;  %v1836_v8 = vld [vmem:[#allocation7 + $0x3b8] sm:$0xff]  ;;  %v1861_v62 = vld [vmem:[#allocation7 + $0x480] sm:$0xff] }
 0x88e   :  { %v1669_v45 = vmax.f32 %v1623_v63, 0.0  ;;  %v4895_v63 = vld [vmem:[#allocation2 + $0xa0] sm:$0xff] }
 0x891   :  { %v3862_v17 = vpop.f32.mrf.mxu0 }
 0x892   :  { %v1638_v51 = vadd.f32 %v3862_v17, %v1515_v12  ;;  %v1851_v17 = vld [vmem:[#allocation7 + $0x430] sm:$0xff] }
 0x893   :  { %v1632_v30 = vpop.f32.mrf.mxu0 }
 0x894   :  { %v1633_v11 = vadd.f32 %v1632_v30, %v1515_v12  ;;  %v1672_v23 = vmax.f32 %v1638_v51, 0.0  ;;  %v1835_v30 = vld [vmem:[#allocation7 + $0x3b0] sm:$0xff]  ;;  %v1845_v51 = vld [vmem:[#allocation7 + $0x400] sm:$0xff] }
 0x896   :  { %v1671_v16 = vmax.f32 %v1633_v11, 0.0  ;;  %v1829_v11 = vld [vmem:[#allocation7 + $0x380] sm:$0xff] }
 0x899   :  { %v3865_v39 = vpop.f32.mrf.mxu0 }
 0x89a   :  { %v1648_v54 = vadd.f32 %v3865_v39, %v1515_v12  ;;  %v1850_v39 = vld [vmem:[#allocation7 + $0x428] sm:$0xff] }
 0x89b   :  { %v1642_v58 = vpop.f32.mrf.mxu0 }
 0x89c   :  { %v1643_v4 = vadd.f32 %v1642_v58, %v1515_v12  ;;  %v1674_v6 = vmax.f32 %v1648_v54, 0.0  ;;  %v1849_v58 = vld [vmem:[#allocation7 + $0x420] sm:$0xff]  ;;  %v1831_v54 = vld [vmem:[#allocation7 + $0x390] sm:$0xff] }
 0x89e   :  { %v1673_v1 = vmax.f32 %v1643_v4, 0.0 }
 0x8a1   :  { %v3868_v52 = vpop.f32.mrf.mxu0 }
 0x8a2   :  { %v1658_v53 = vadd.f32 %v3868_v52, %v1515_v12  ;;  %v1848_v52 = vld [vmem:[#allocation7 + $0x418] sm:$0xff] }
 0x8a3   :  { %v1652_v55 = vpop.f32.mrf.mxu0 }
 0x8a4   :  { %v1676_v3 = vmax.f32 %v1658_v53, 0.0  ;;  %v1653_v50 = vadd.f32 %v1652_v55, %v1515_v12  ;;  %v1833_v12 = vld [vmem:[#allocation7 + $0x3a0] sm:$0xff]  ;;  %v1832_v53 = vld [vmem:[#allocation7 + $0x398] sm:$0xff]  ;;  %v1847_v55 = vld [vmem:[#allocation7 + $0x410] sm:$0xff] }
 0x8a6   :  { %v1675_v47 = vmax.f32 %v1653_v50, 0.0  ;;  %3869 = vmatprep.subr.mxu0 %v1676_v3 }
 0x8a7   :  { %3870 = vmatpush3.msra.mxu0 %v1676_v3  ;;  %v1846_v3 = vld [vmem:[#allocation7 + $0x408] sm:$0xff] }
 0x8a8   :  { %3871 = vmatprep.subr.mxu0 %v1675_v47 }
 0x8a9   :  { %3872 = vmatpush3.msra.mxu0 %v1675_v47  ;;  %v1830_v47 = vld [vmem:[#allocation7 + $0x388] sm:$0xff] }
 0x8aa   :  { %3873 = vmatprep.subr.mxu0 %v1674_v6 }
 0x8ab   :  { %3874 = vmatpush3.msra.mxu0 %v1674_v6  ;;  %v1862_v6 = vld [vmem:[#allocation7 + $0x488] sm:$0xff] }
 0x8ac   :  { %3875 = vmatprep.subr.mxu0 %v1673_v1  ;;  %3967 = vmatprep.subr.mxu1 %v1862_v6 }
 0x8ad   :  { %3876 = vmatpush3.msra.mxu0 %v1673_v1  ;;  %v4892_v1 = vld [vmem:[#allocation2 + $0x98] sm:$0xff]  ;;  %3968 = vmatpush3.msra.mxu1 %v1862_v6 }
 0x8ae   :  { %3877 = vmatprep.subr.mxu0 %v1672_v23  ;;  %3969 = vmatprep.subr.mxu1 %v1861_v62 }
 0x8af   :  { %3878 = vmatpush3.msra.mxu0 %v1672_v23  ;;  %v1827_v23 = vmax.f32 %v4892_v1, 0.0  ;;  %3970 = vmatpush3.msra.mxu1 %v1861_v62  ;;  %v2568_v1 = vld [vmem:[#allocation7 + $0x580] sm:$0xff] }
 0x8b0   :  { %3879 = vmatprep.subr.mxu0 %v1671_v16 }
 0x8b1   :  { %3880 = vmatpush3.msra.mxu0 %v1671_v16  ;;  %v1828_v16 = vmax.f32 %v4895_v63, 0.0  ;;  %3971 = vmatprep.mubr.f32.mxu1 %v1827_v23 }
 0x8b2   :  { %3881 = vmatprep.subr.mxu0 %v1670_v60 }
 0x8b3   :  { %3882 = vmatpush3.msra.mxu0 %v1670_v60  ;;  %3972 = vmatmul.mubr.f32.vlgmr.msra.gmra.mxu1 %v1828_v16 }
 0x8b4   :  { %3883 = vmatprep.subr.mxu0 %v1669_v45  ;;  %3978 = vmatprep.mubr.msk.f32.mxu1 %vm2078_vm3, %v4910_v18 }
 0x8b5   :  { %3884 = vmatpush3.msra.mxu0 %v1669_v45  ;;  %v4914_v45 = vpop.trf.xlu1 }
 0x8b6   :  { %3885 = vmatprep.subr.mxu0 %v1668_v31 }
 0x8b7   :  { %3886 = vmatpush3.msra.mxu0 %v1668_v31 }
 0x8b8   :  { %3887 = vmatprep.subr.mxu0 %v1667_v37 }
 0x8b9   :  { %3888 = vmatpush3.msra.mxu0 %v1667_v37  ;;  %v4916_v5 = vpop.trf.xlu1 }
 0x8ba   :  { %3889 = vmatprep.subr.mxu0 %v1666_v25 }
 0x8bb   :  { %3890 = vmatpush3.msra.mxu0 %v1666_v25 }
 0x8bc   :  { %3891 = vmatprep.subr.mxu0 %v1665_v44 }
 0x8bd   :  { %3892 = vmatpush3.msra.mxu0 %v1665_v44 }
 0x8be   :  { %3893 = vmatprep.subr.mxu0 %v1664_v0 }
 0x8bf   :  { %3894 = vmatpush3.msra.mxu0 %v1664_v0 }
 0x8c0   :  { %3895 = vmatprep.subr.mxu0 %v1663_v33 }
 0x8c1   :  { %3896 = vmatpush3.msra.mxu0 %v1663_v33  ;;  %v4887_v50 = vpop.f32.mrf.mxu1 }
 0x8c2   :  { %3897 = vmatprep.subr.mxu0 %v1662_v13 }
 0x8c3   :  { %3898 = vmatpush3.msra.mxu0 %v1662_v13  ;;  %v4889_v4 = vpop.f32.mrf.mxu1 }
 0x8c4   :  { %3899 = vmatprep.subr.mxu0 %v1661_v10 }
 0x8c5   :  { %3900 = vmatpush3.msra.mxu0 %v1661_v10 }
 0x8c6   :  { %3902 = vmatmul.mubr.f32.vlgmr.msra.gmra.mxu0 %v1493_v34  ;;  %3372 = vmatprep.subr.mxu0 %v1860_v7 }
 0x8c7   :  { %3373 = vmatpush3.msra.mxu0 %v1844_v35  ;;  %1941 = vmatprep.mubr.f32.mxu0 %v4889_v4 }
 0x8c8   :  { %3374 = vmatprep.subr.mxu0 %v1859_v24 }
 0x8c9   :  { %3375 = vmatpush3.msra.mxu0 %v1843_v26 }
 0x8ca   :  { %3376 = vmatprep.subr.mxu0 %v1858_v15 }
 0x8cb   :  { %3377 = vmatpush3.msra.mxu0 %v1842_v20 }
 0x8cc   :  { %3378 = vmatprep.subr.mxu0 %v1857_v22 }
 0x8cd   :  { %3379 = vmatpush3.msra.mxu0 %v1841_v48 }
 0x8ce   :  { %3380 = vmatprep.subr.mxu0 %v1856_v28 }
 0x8cf   :  { %3381 = vmatpush3.msra.mxu0 %v1840_v29 }
 0x8d0   :  { %3382 = vmatprep.subr.mxu0 %v1855_v36 }
 0x8d1   :  { %3383 = vmatpush3.msra.mxu0 %v1839_v9 }
 0x8d2   :  { %3384 = vmatprep.subr.mxu0 %v1854_v38 }
 0x8d3   :  { %3385 = vmatpush3.msra.mxu0 %v1838_v46 }
 0x8d4   :  { %3386 = vmatprep.subr.mxu0 %v1853_v56 }
 0x8d5   :  { %3387 = vmatpush3.msra.mxu0 %v1837_v19 }
 0x8d6   :  { %3388 = vmatprep.subr.mxu0 %v1852_v2 }
 0x8d7   :  { %3389 = vmatpush3.msra.mxu0 %v1836_v8 }
 0x8d8   :  { %3390 = vmatprep.subr.mxu0 %v1851_v17 }
 0x8d9   :  { %3391 = vmatpush3.msra.mxu0 %v1835_v30 }
 0x8da   :  { %3392 = vmatprep.subr.mxu0 %v1850_v39 }
 0x8db   :  { %3393 = vmatpush3.msra.mxu0 %v1834_v43 }
 0x8dc   :  { %3394 = vmatprep.subr.mxu0 %v1849_v58 }
 0x8dd   :  { %3395 = vmatpush3.msra.mxu0 %v1833_v12 }
 0x8de   :  { %3396 = vmatprep.subr.mxu0 %v1848_v52 }
 0x8df   :  { %3397 = vmatpush3.msra.mxu0 %v1832_v53 }
 0x8e0   :  { %3398 = vmatprep.subr.mxu0 %v1847_v55 }
 0x8e1   :  { %3399 = vmatpush3.msra.mxu0 %v1831_v54 }
 0x8e2   :  { %3400 = vmatprep.subr.mxu0 %v1846_v3 }
 0x8e3   :  { %3401 = vmatpush3.msra.mxu0 %v1830_v47 }
 0x8e4   :  { %3402 = vmatprep.subr.mxu0 %v1845_v51 }
 0x8e5   :  { %3403 = vmatpush3.msra.mxu0 %v1829_v11 }
 0x973   :  { %v3973_v21 = vpop.f32.mrf.mxu1 }
 0x975   :  { %v2018_v27 = vpop.f32.mrf.mxu1 }
 0x986   :  { %v4902_v59 = vpop.f32.mrf.mxu0 }
 0x988   :  { %v4904_v60 = vpop.f32.mrf.mxu0 }
 0x989   :  { %1942 = vmatmul.mubr.f32.vlgmr.msra.gmra.mxu0 %v4904_v60 }
 0x98a   :  { %1946 = vmatprep.mubr.f32.mxu0 %v4887_v50 }
 0x98d   :  { %1947 = vmatmul.mubr.f32.gmra.mxu0 %v4902_v59 }
 0x98e   :  { %4034 = vmatprep.mubr.f32.mxu0 %v4868_v49  ;;  %v4918_v49 = vpop.trf.xlu1 }
 0x992   :  { %v4920_v7 = vpop.trf.xlu1 }
 0x996   :  { %v4922_v15 = vpop.trf.xlu1 }
 0x99a   :  { %v4924_v28 = vpop.trf.xlu1 }
 0x99e   :  { %v4926_v56 = vpop.trf.xlu1 }
 0x9a2   :  { %v4928_v19 = vpop.trf.xlu1 }
 0x9a6   :  { %v4930_v2 = vpop.trf.xlu1 }
 0x9aa   :  { %v4935_v39 = vpop.trf.xlu1 }
 0x9ae   :  { %v4948_v58 = vpop.trf.xlu1 }
 0xa49   :  { %v3404_v31 = vpop.f32.mrf.mxu0 }
 0xa4b   :  { %v3405_v37 = vpop.f32.mrf.mxu0 }
 0xa4c   :  { %v3406_v25 = vadd.f32 %v3405_v37, %v3404_v31 }
 0xa4d   :  { %v3407_v40 = vpop.f32.mrf.mxu0 }
 0xa4e   :  { %v2019_v44 = vadd.f32 %v3406_v25, %v2018_v27 }
 0xa4f   :  { %v3408_v57 = vpop.f32.mrf.mxu0 }
 0xa50   :  { %v3409_v0 = vadd.f32 %v3408_v57, %v3407_v40  ;;  %v2027_v14 = vmul.f32 0.01, %v2019_v44 }
 0xa52   :  { %v2024_v33 = vadd.f32 %v3973_v21, %v3409_v0  ;;  %v2029_v10 = vmax.f32 %v2019_v44, %v2027_v14 }
 0xa54   :  { %v2028_v13 = vmul.f32 0.01, %v2024_v33 }
 0xa56   :  { %v2030_v34 = vmax.f32 %v2024_v33, %v2028_v13 }
 0xa58   :  { %v2031_v35 = vmax.f32 %v2029_v10, %v2030_v34 }
 0xa5a   :  { %v2032_v24 = vrot.slane %v2031_v35, 4 }
 0xa5c   :  { %v2033_v26 = vmax.f32 %v2031_v35, %v2032_v24 }
 0xa5e   :  { %v2034_v20 = vrot.slane %v2033_v26, 2 }
 0xa60   :  { %v2035_v22 = vmax.f32 %v2033_v26, %v2034_v20 }
 0xa62   :  { %v2036_v48 = vrot.slane %v2035_v22, 1 }
 0xa64   :  { %v2037_v29 = vmax.f32 %v2035_v22, %v2036_v48 }
 0xa66   :  { %v2038_v36 = vsub.f32 %v2029_v10, %v2037_v29  ;;  %v2039_v9 = vsub.f32 %v2030_v34, %v2037_v29 }
 0xa68   :  { %v2040_v38 = vmul.f32 1.442695, %v2038_v36  ;;  %v2042_v46 = vmul.f32 1.442695, %v2039_v9 }
 0xa6a   :  { %4189 = vpow2.f32 %v2040_v38 }
 0xa6b   :  { %4191 = vpow2.f32 %v2042_v46 }
 0xa77   :  { %v4190_v8 = vpop.eup %4189 }
 0xa78   :  { %v4192_v17 = vpop.eup %4191  ;;  %v4939_v43 = vmul.f32 %v4190_v8, %v4577_v42 }
 0xa79   :  { %v4933_v30 = vmul.f32 %v4192_v17, %v4577_v42  ;;  %v4954_v42 = vpop.trf.xlu1 }
 0xa7b   :  { %3974 = vmatprep.subr.mxu1 %v4933_v30 }
 0xa7c   :  { %3975 = vmatpush3.msra.mxu1 %v4933_v30 }
 0xa7d   :  { %3976 = vmatprep.subr.mxu1 %v4939_v43  ;;  %v4964_v12 = vpop.trf.xlu1 }
 0xa7e   :  { %3977 = vmatpush3.msra.mxu1 %v4939_v43 }
 0xa7f   :  { %3979 = vmatmul.mubr.msk.f32.vlgmr.msra.gmra.mxu1 %vm2078_vm3, %v4914_v45 }
 0xa80   :  { %3981 = vmatprep.mubr.msk.f32.mxu1 %vm2078_vm3, %v4916_v5 }
 0xa81   :  { %v4970_v52 = vpop.trf.xlu1 }
 0xa83   :  { %3982 = vmatmul.mubr.msk.f32.gmra.mxu1 %vm2078_vm3, %v4918_v49 }
 0xa84   :  { %3984 = vmatprep.mubr.msk.f32.mxu1 %vm2078_vm3, %v4920_v7 }
 0xa85   :  { %v4980_v53 = vpop.trf.xlu1 }
 0xa87   :  { %3985 = vmatmul.mubr.msk.f32.gmra.mxu1 %vm2078_vm3, %v4922_v15 }
 0xa88   :  { %3987 = vmatprep.mubr.msk.f32.mxu1 %vm2078_vm3, %v4924_v28 }
 0xa8b   :  { %3988 = vmatmul.mubr.msk.f32.gmra.mxu1 %vm2078_vm3, %v4926_v56 }
 0xa8c   :  { %3990 = vmatprep.mubr.msk.f32.mxu1 %vm2078_vm3, %v4928_v19 }
 0xa8f   :  { %3991 = vmatmul.mubr.msk.f32.gmra.mxu1 %vm2078_vm3, %v4930_v2 }
 0xa90   :  { %3993 = vmatprep.mubr.msk.f32.mxu1 %vm2078_vm3, %v4935_v39 }
 0xa93   :  { %3994 = vmatmul.mubr.msk.f32.gmra.mxu1 %vm2078_vm3, %v4948_v58 }
 0xa94   :  { %3996 = vmatprep.mubr.msk.f32.mxu1 %vm2078_vm3, %v4954_v42 }
 0xa97   :  { %3997 = vmatmul.mubr.msk.f32.gmra.mxu1 %vm2078_vm3, %v4964_v12 }
 0xa98   :  { %3999 = vmatprep.mubr.msk.f32.mxu1 %vm2078_vm3, %v4970_v52 }
 0xa9b   :  { %4000 = vmatmul.mubr.msk.f32.gmra.mxu1 %vm2078_vm3, %v4980_v53 }
 0xb3f   :  { %v4984_v55 = vpop.f32.mrf.mxu1 }
 0xb41   :  { %v4986_v54 = vpop.f32.mrf.mxu1 }
 0xb43   :  { %v3983_v3 = vpop.f32.mrf.mxu1 }
 0xb44   :  { %v2275_v46 = vmax.f32 %v3983_v3, 1e-30 }
 0xb45   :  { %v2203_v47 = vpop.f32.mrf.mxu1 }
 0xb46   :  { %v2274_v17 = vmax.f32 %v2203_v47, 1e-30 }
 0xb47   :  { %v3986_v51 = vpop.f32.mrf.mxu1 }
 0xb48   :  { %v2277_v29 = vmax.f32 %v3986_v51, 1e-30  ;;  %v2273_v51 = vmax.f32 %v4984_v55, 1e-30 }
 0xb49   :  { %v2213_v6 = vpop.f32.mrf.mxu1 }
 0xb4a   :  { %v2276_v9 = vmax.f32 %v2213_v6, 1e-30  ;;  %v2272_v6 = vmax.f32 %v4986_v54, 1e-30 }
 0xb4b   :  { %v3989_v11 = vpop.f32.mrf.mxu1 }
 0xb4c   :  { %v2279_v26 = vmax.f32 %v3989_v11, 1e-30 }
 0xb4d   :  { %v2223_v62 = vpop.f32.mrf.mxu1 }
 0xb4e   :  { %v2278_v22 = vmax.f32 %v2223_v62, 1e-30 }
 0xb4f   :  { %v3992_v21 = vpop.f32.mrf.mxu1 }
 0xb50   :  { %v2281_v35 = vmax.f32 %v3992_v21, 1e-30 }
 0xb51   :  { %v2233_v31 = vpop.f32.mrf.mxu1 }
 0xb52   :  { %v2280_v24 = vmax.f32 %v2233_v31, 1e-30 }
 0xb53   :  { %v3995_v37 = vpop.f32.mrf.mxu1 }
 0xb54   :  { %v2283_v10 = vmax.f32 %v3995_v37, 1e-30 }
 0xb55   :  { %v2243_v27 = vpop.f32.mrf.mxu1 }
 0xb56   :  { %v2282_v34 = vmax.f32 %v2243_v27, 1e-30 }
 0xb57   :  { %v3998_v25 = vpop.f32.mrf.mxu1 }
 0xb58   :  { %v2285_v14 = vmax.f32 %v3998_v25, 1e-30 }
 0xb59   :  { %v2253_v40 = vpop.f32.mrf.mxu1 }
 0xb5a   :  { %v2284_v13 = vmax.f32 %v2253_v40, 1e-30 }
 0xb5b   :  { %v4001_v44 = vpop.f32.mrf.mxu1 }
 0xb5c   :  { %v2287_v57 = vmax.f32 %v4001_v44, 1e-30 }
 0xb5d   :  { %v2263_v0 = vpop.f32.mrf.mxu1 }
 0xb5e   :  { %4193 = vrcp.f32 %v2287_v57  ;;  %v2286_v33 = vmax.f32 %v2263_v0, 1e-30 }
 0xb60   :  { %4195 = vrcp.f32 %v2286_v33  ;;  %v2567_v33 = vld [vmem:[#allocation7 + $0x578] sm:$0xff] }
 0xb61   :  { %4197 = vrcp.f32 %v2285_v14  ;;  %v2583_v14 = vld [vmem:[#allocation7 + $0x5f8] sm:$0xff] }
 0xb62   :  { %4199 = vrcp.f32 %v2284_v13  ;;  %v2582_v13 = vld [vmem:[#allocation7 + $0x5f0] sm:$0xff]  ;;  %3464 = vmatprep.subr.mxu1 %v2583_v14 }
 0xb63   :  { %4201 = vrcp.f32 %v2283_v10  ;;  %v2566_v10 = vld [vmem:[#allocation7 + $0x570] sm:$0xff]  ;;  %3465 = vmatpush3.msra.mxu1 %v2567_v33 }
 0xb64   :  { %4203 = vrcp.f32 %v2282_v34  ;;  %v2581_v34 = vld [vmem:[#allocation7 + $0x5e8] sm:$0xff]  ;;  %3466 = vmatprep.subr.mxu1 %v2582_v13 }
 0xb65   :  { %4205 = vrcp.f32 %v2281_v35  ;;  %v2565_v35 = vld [vmem:[#allocation7 + $0x568] sm:$0xff]  ;;  %3467 = vmatpush3.msra.mxu1 %v2566_v10 }
 0xb66   :  { %4207 = vrcp.f32 %v2280_v24  ;;  %3468 = vmatprep.subr.mxu1 %v2581_v34  ;;  %v2564_v24 = vld [vmem:[#allocation7 + $0x560] sm:$0xff] }
 0xb67   :  { %4209 = vrcp.f32 %v2279_v26  ;;  %3469 = vmatpush3.msra.mxu1 %v2565_v35  ;;  %v2563_v26 = vld [vmem:[#allocation7 + $0x558] sm:$0xff] }
 0xb68   :  { %4211 = vrcp.f32 %v2278_v22  ;;  %v2577_v22 = vld [vmem:[#allocation7 + $0x5c8] sm:$0xff] }
 0xb69   :  { %4213 = vrcp.f32 %v2277_v29  ;;  %v2576_v29 = vld [vmem:[#allocation7 + $0x5c0] sm:$0xff] }
 0xb6a   :  { %4215 = vrcp.f32 %v2276_v9  ;;  %v2575_v9 = vld [vmem:[#allocation7 + $0x5b8] sm:$0xff] }
 0xb6b   :  { %v4194_v20 = vpop.eup %4193  ;;  %4217 = vrcp.f32 %v2275_v46  ;;  %v2574_v46 = vld [vmem:[#allocation7 + $0x5b0] sm:$0xff] }
 0xb6c   :  { %4002 = vmatprep.subr.mxu0 %v4194_v20  ;;  %4219 = vrcp.f32 %v2274_v17  ;;  %v2573_v17 = vld [vmem:[#allocation7 + $0x5a8] sm:$0xff] }
 0xb6d   :  { %v4196_v48 = vpop.eup %4195  ;;  %4003 = vmatpush3.msra.mxu0 %v4194_v20  ;;  %4221 = vrcp.f32 %v2273_v51  ;;  %v2562_v20 = vld [vmem:[#allocation7 + $0x550] sm:$0xff]  ;;  %v2572_v51 = vld [vmem:[#allocation7 + $0x5a0] sm:$0xff] }
 0xb6e   :  { %4004 = vmatprep.subr.mxu0 %v4196_v48  ;;  %v4198_v36 = vpop.eup %4197  ;;  %4223 = vrcp.f32 %v2272_v6  ;;  %v2571_v6 = vld [vmem:[#allocation7 + $0x598] sm:$0xff] }
 0xb6f   :  { %4005 = vmatpush3.msra.mxu0 %v4196_v48  ;;  %v4200_v38 = vpop.eup %4199  ;;  %v2561_v48 = vld [vmem:[#allocation7 + $0x548] sm:$0xff] }
 0xb70   :  { %4006 = vmatprep.subr.mxu0 %v4198_v36  ;;  %v4202_v8 = vpop.eup %4201 }
 0xb71   :  { %4007 = vmatpush3.msra.mxu0 %v4198_v36  ;;  %v4204_v11 = vpop.eup %4203  ;;  %v2560_v36 = vld [vmem:[#allocation7 + $0x540] sm:$0xff] }
 0xb72   :  { %4008 = vmatprep.subr.mxu0 %v4200_v38  ;;  %v4206_v62 = vpop.eup %4205 }
 0xb73   :  { %4009 = vmatpush3.msra.mxu0 %v4200_v38  ;;  %v4208_v3 = vpop.eup %4207  ;;  %v2559_v38 = vld [vmem:[#allocation7 + $0x538] sm:$0xff] }
 0xb74   :  { %4010 = vmatprep.subr.mxu0 %v4202_v8  ;;  %v4210_v21 = vpop.eup %4209 }
 0xb75   :  { %4011 = vmatpush3.msra.mxu0 %v4202_v8  ;;  %v4212_v47 = vpop.eup %4211  ;;  %v2558_v8 = vld [vmem:[#allocation7 + $0x530] sm:$0xff] }
 0xb76   :  { %4012 = vmatprep.subr.mxu0 %v4204_v11  ;;  %v4214_v55 = vpop.eup %4213 }
 0xb77   :  { %4013 = vmatpush3.msra.mxu0 %v4204_v11  ;;  %v4216_v31 = vpop.eup %4215  ;;  %v2557_v11 = vld [vmem:[#allocation7 + $0x528] sm:$0xff] }
 0xb78   :  { %4014 = vmatprep.subr.mxu0 %v4206_v62  ;;  %v4218_v54 = vpop.eup %4217 }
 0xb79   :  { %4015 = vmatpush3.msra.mxu0 %v4206_v62  ;;  %v4220_v37 = vpop.eup %4219  ;;  %v2556_v62 = vld [vmem:[#allocation7 + $0x520] sm:$0xff] }
 0xb7a   :  { %4016 = vmatprep.subr.mxu0 %v4208_v3  ;;  %v4222_v27 = vpop.eup %4221 }
 0xb7b   :  { %4017 = vmatpush3.msra.mxu0 %v4208_v3  ;;  %v4224_v25 = vpop.eup %4223  ;;  %v2555_v3 = vld [vmem:[#allocation7 + $0x518] sm:$0xff] }
 0xb7c   :  { %4018 = vmatprep.subr.mxu0 %v4210_v21 }
 0xb7d   :  { %4019 = vmatpush3.msra.mxu0 %v4210_v21  ;;  %v2570_v21 = vld [vmem:[#allocation7 + $0x590] sm:$0xff] }
 0xb7e   :  { %4020 = vmatprep.subr.mxu0 %v4212_v47 }
 0xb7f   :  { %4021 = vmatpush3.msra.mxu0 %v4212_v47  ;;  %v2554_v47 = vld [vmem:[#allocation7 + $0x510] sm:$0xff] }
 0xb80   :  { %4022 = vmatprep.subr.mxu0 %v4214_v55 }
 0xb81   :  { %4023 = vmatpush3.msra.mxu0 %v4214_v55 }
 0xb82   :  { %4024 = vmatprep.subr.mxu0 %v4216_v31 }
 0xb83   :  { %4025 = vmatpush3.msra.mxu0 %v4216_v31 }
 0xb84   :  { %4026 = vmatprep.subr.mxu0 %v4218_v54 }
 0xb85   :  { %4027 = vmatpush3.msra.mxu0 %v4218_v54 }
 0xb86   :  { %4028 = vmatprep.subr.mxu0 %v4220_v37 }
 0xb87   :  { %4029 = vmatpush3.msra.mxu0 %v4220_v37 }
 0xb88   :  { %4030 = vmatprep.subr.mxu0 %v4222_v27 }
 0xb89   :  { %4031 = vmatpush3.msra.mxu0 %v4222_v27 }
 0xb8a   :  { %4032 = vmatprep.subr.mxu0 %v4224_v25 }
 0xb8b   :  { %4033 = vmatpush3.msra.mxu0 %v4224_v25 }
 0xb8c   :  { %4035 = vmatmul.mubr.f32.vlgmr.msra.gmra.mxu0 %v4871_v41  ;;  %v2580_v41 = vld [vmem:[#allocation7 + $0x5e0] sm:$0xff] }
 0xb8d   :  { %2455 = vmatprep.mubr.f32.mxu0 %v4389_v32  ;;  %3470 = vmatprep.subr.mxu1 %v2580_v41 }
 0xb8e   :  { %3471 = vmatpush3.msra.mxu1 %v2564_v24 }
 0xc4c   :  { %v4036_v40 = vpop.f32.mrf.mxu0 }
 0xc4d   :  { %v2380_v44 = vmul.f32 %v4036_v40, %v4933_v30  ;;  %v2579_v30 = vld [vmem:[#allocation7 + $0x5d8] sm:$0xff] }
 0xc4e   :  { %v2370_v57 = vpop.f32.mrf.mxu0  ;;  %3472 = vmatprep.subr.mxu1 %v2579_v30 }
 0xc4f   :  { %2383 = vadd.xlane.f32.xlu0 %v2380_v44  ;;  %v2379_v0 = vmul.f32 %v2370_v57, %v4939_v43  ;;  %v2578_v43 = vld [vmem:[#allocation7 + $0x5d0] sm:$0xff]  ;;  %3473 = vmatpush3.msra.mxu1 %v2563_v26 }
 0xc50   :  { %3474 = vmatprep.subr.mxu1 %v2578_v43 }
 0xc51   :  { %3475 = vmatpush3.msra.mxu1 %v2562_v20 }
 0xc52   :  { %3476 = vmatprep.subr.mxu1 %v2577_v22 }
 0xc53   :  { %2381 = vadd.xlane.f32.xlu0 %v2379_v0  ;;  %3477 = vmatpush3.msra.mxu1 %v2561_v48 }
 0xc54   :  { %3478 = vmatprep.subr.mxu1 %v2576_v29 }
 0xc55   :  { %3479 = vmatpush3.msra.mxu1 %v2560_v36 }
 0xc56   :  { %3480 = vmatprep.subr.mxu1 %v2575_v9 }
 0xc57   :  { %3481 = vmatpush3.msra.mxu1 %v2559_v38 }
 0xc58   :  { %3482 = vmatprep.subr.mxu1 %v2574_v46 }
 0xc59   :  { %3483 = vmatpush3.msra.mxu1 %v2558_v8 }
 0xc5a   :  { %3484 = vmatprep.subr.mxu1 %v2573_v17 }
 0xc5b   :  { %3485 = vmatpush3.msra.mxu1 %v2557_v11 }
 0xc5c   :  { %3486 = vmatprep.subr.mxu1 %v2572_v51 }
 0xc5d   :  { %3487 = vmatpush3.msra.mxu1 %v2556_v62 }
 0xc5e   :  { %3488 = vmatprep.subr.mxu1 %v2571_v6 }
 0xc5f   :  { %3489 = vmatpush3.msra.mxu1 %v2555_v3 }
 0xc60   :  { %3490 = vmatprep.subr.mxu1 %v2570_v21 }
 0xc61   :  { %3491 = vmatpush3.msra.mxu1 %v2554_v47 }
 0xcd8   :  { %v2384_v55 = vpop.xlane.xlu0 %2383 }
 0xcd9   :  { %v2386_v31 = vmul.f32 %v2384_v55, %v1828_v16 }
 0xcdb   :  { %v2388_v54 = vmul.f32 %v4902_v59, %v2386_v31  ;;  %v2390_v37 = vmul.f32 %v4887_v50, %v2386_v31  ;;  %v2569_v50 = vld [vmem:[#allocation7 + $0x588] sm:$0xff] }
 0xcdc   :  { %v2382_v27 = vpop.xlane.xlu0 %2381  ;;  %3492 = vmatprep.subr.mxu1 %v2569_v50 }
 0xcdd   :  { %v2385_v25 = vmul.f32 %v2382_v27, %v1827_v23  ;;  %2419 = vmatprep.subr.mxu0 %v2390_v37  ;;  %v2552_v23 = vld [vmem:[#allocation7 + $0x500] sm:$0xff] }
 0xcde   :  { %2420 = vmatpush1.msra.mxu0 %v2388_v54 }
 0xcdf   :  { %v2387_v40 = vmul.f32 %v2385_v25, %v4904_v60  ;;  %v2389_v44 = vmul.f32 %v2385_v25, %v4889_v4  ;;  %v2553_v4 = vld [vmem:[#allocation7 + $0x508] sm:$0xff] }
 0xce0   :  { %3493 = vmatpush3.msra.mxu1 %v2553_v4  ;;  %v2586_v4 = vsub.s32 3, %v4492_v61 }
 0xce1   :  { %2421 = vmatprep.subr.mxu0 %v2389_v44  ;;  %3494 = vmatprep.subr.mxu1 %v2568_v1 }
 0xce2   :  { %2422 = vmatpush1.msra.mxu0 %v2387_v40  ;;  %3495 = vmatpush3.msra.mxu1 %v2552_v23 }
 0xce3   :  { %3040 = vmatmul.mubr.msk.f32.vlgmr.msra.gmra.mxu0 %vm2078_vm3, %v4910_v18  ;;  %4037 = vmatprep.subr.mxu0 %v4389_v32 }
 0xce4   :  { %2461 = vmatprep.mubr.f32.mxu0 %v4389_v32  ;;  %4078 = vmatprep.subr.mxu1 %v4389_v32 }
 0xce7   :  { %3041 = vmatmul.mubr.msk.f32.gmra.mxu0 %vm2078_vm3, %v4914_v45 }
 0xce8   :  { %2467 = vmatprep.mubr.f32.mxu0 %v4389_v32 }
 0xceb   :  { %3042 = vmatmul.mubr.msk.f32.gmra.mxu0 %vm2078_vm3, %v4916_v5 }
 0xcec   :  { %2473 = vmatprep.mubr.f32.mxu0 %v4389_v32 }
 0xcef   :  { %3043 = vmatmul.mubr.msk.f32.gmra.mxu0 %vm2078_vm3, %v4918_v49 }
 0xcf0   :  { %2479 = vmatprep.mubr.f32.mxu0 %v4389_v32 }
 0xcf3   :  { %3044 = vmatmul.mubr.msk.f32.gmra.mxu0 %vm2078_vm3, %v4920_v7 }
 0xcf4   :  { %2485 = vmatprep.mubr.f32.mxu0 %v4389_v32 }
 0xcf7   :  { %3045 = vmatmul.mubr.msk.f32.gmra.mxu0 %vm2078_vm3, %v4922_v15 }
 0xcf8   :  { %2491 = vmatprep.mubr.f32.mxu0 %v4389_v32 }
 0xcfb   :  { %3046 = vmatmul.mubr.msk.f32.gmra.mxu0 %vm2078_vm3, %v4924_v28 }
 0xcfc   :  { %2497 = vmatprep.mubr.f32.mxu0 %v4389_v32 }
 0xcff   :  { %3047 = vmatmul.mubr.msk.f32.gmra.mxu0 %vm2078_vm3, %v4926_v56 }
 0xd00   :  { %2503 = vmatprep.mubr.f32.mxu0 %v4389_v32 }
 0xd03   :  { %3048 = vmatmul.mubr.msk.f32.gmra.mxu0 %vm2078_vm3, %v4928_v19 }
 0xd04   :  { %2509 = vmatprep.mubr.f32.mxu0 %v4389_v32 }
 0xd07   :  { %3049 = vmatmul.mubr.msk.f32.gmra.mxu0 %vm2078_vm3, %v4930_v2 }
 0xd08   :  { %2515 = vmatprep.mubr.f32.mxu0 %v4389_v32 }
 0xd0b   :  { %3050 = vmatmul.mubr.msk.f32.gmra.mxu0 %vm2078_vm3, %v4935_v39 }
 0xd0c   :  { %2521 = vmatprep.mubr.f32.mxu0 %v4389_v32 }
 0xd0f   :  { %3051 = vmatmul.mubr.msk.f32.gmra.mxu0 %vm2078_vm3, %v4948_v58 }
 0xd10   :  { %2527 = vmatprep.mubr.f32.mxu0 %v4389_v32 }
 0xd13   :  { %3052 = vmatmul.mubr.msk.f32.gmra.mxu0 %vm2078_vm3, %v4954_v42 }
 0xd14   :  { %2533 = vmatprep.mubr.f32.mxu0 %v4389_v32 }
 0xd17   :  { %3053 = vmatmul.mubr.msk.f32.gmra.mxu0 %vm2078_vm3, %v4964_v12 }
 0xd18   :  { %2539 = vmatprep.mubr.f32.mxu0 %v4389_v32 }
 0xd1b   :  { %3054 = vmatmul.mubr.msk.f32.gmra.mxu0 %vm2078_vm3, %v4970_v52 }
 0xd1c   :  { %2545 = vmatprep.mubr.f32.mxu0 %v4389_v32 }
 0xd1f   :  { %3055 = vmatmul.mubr.msk.f32.gmra.mxu0 %vm2078_vm3, %v4980_v53 }
 0xd20   :  { %4069 = vmatprep.mubr.msk.f32.mxu0 %vm4390_vm0, %v4389_v32 }
 0xda3   :  { %v2457_v63 = vpop.f32.mrf.mxu0 }
 0xda5   :  { %v2459_v16 = vpop.f32.mrf.mxu0 }
 0xda6   :  { %2652 = vmatprep.mubr.f32.mxu1 %v2459_v16  ;;  %v5070_v16 = vld [vmem:[#allocation8] sm:$0xff] }
 0xda7   :  { %v2463_v59 = vpop.f32.mrf.mxu0  ;;  %2653 = vmatmul.mubr.f32.vlgmr.msra.gmra.mxu1 %v2457_v63 }
 0xda9   :  { %v2465_v60 = vpop.f32.mrf.mxu0 }
 0xdaa   :  { %2657 = vmatprep.mubr.f32.mxu1 %v2465_v60 }
 0xdab   :  { %v2469_v18 = vpop.f32.mrf.mxu0  ;;  %2658 = vmatmul.mubr.f32.gmra.mxu1 %v2463_v59  ;;  %v5073_v59 = vrot.slane %v5070_v16, %v2586_v4 }
 0xdad   :  { %v2471_v45 = vpop.f32.mrf.mxu0 }
 0xdae   :  { %2662 = vmatprep.mubr.f32.mxu1 %v2471_v45 }
 0xdaf   :  { %v2475_v5 = vpop.f32.mrf.mxu0  ;;  %2663 = vmatmul.mubr.f32.gmra.mxu1 %v2469_v18 }
 0xdb1   :  { %v2477_v49 = vpop.f32.mrf.mxu0 }
 0xdb2   :  { %2667 = vmatprep.mubr.f32.mxu1 %v2477_v49 }
 0xdb3   :  { %v2481_v7 = vpop.f32.mrf.mxu0  ;;  %2668 = vmatmul.mubr.f32.gmra.mxu1 %v2475_v5 }
 0xdb5   :  { %v2483_v15 = vpop.f32.mrf.mxu0 }
 0xdb6   :  { %2672 = vmatprep.mubr.f32.mxu1 %v2483_v15 }
 0xdb7   :  { %v2487_v28 = vpop.f32.mrf.mxu0  ;;  %2673 = vmatmul.mubr.f32.gmra.mxu1 %v2481_v7 }
 0xdb9   :  { %v2489_v56 = vpop.f32.mrf.mxu0 }
 0xdba   :  { %2677 = vmatprep.mubr.f32.mxu1 %v2489_v56 }
 0xdbb   :  { %v2493_v19 = vpop.f32.mrf.mxu0  ;;  %2678 = vmatmul.mubr.f32.gmra.mxu1 %v2487_v28 }
 0xdbd   :  { %v2495_v2 = vpop.f32.mrf.mxu0 }
 0xdbe   :  { %2682 = vmatprep.mubr.f32.mxu1 %v2495_v2 }
 0xdbf   :  { %v2499_v39 = vpop.f32.mrf.mxu0  ;;  %2683 = vmatmul.mubr.f32.gmra.mxu1 %v2493_v19 }
 0xdc1   :  { %v2501_v58 = vpop.f32.mrf.mxu0 }
 0xdc2   :  { %2687 = vmatprep.mubr.f32.mxu1 %v2501_v58 }
 0xdc3   :  { %v2505_v42 = vpop.f32.mrf.mxu0  ;;  %2688 = vmatmul.mubr.f32.gmra.mxu1 %v2499_v39 }
 0xdc5   :  { %v2507_v12 = vpop.f32.mrf.mxu0 }
 0xdc6   :  { %2692 = vmatprep.mubr.f32.mxu1 %v2507_v12 }
 0xdc7   :  { %v2511_v52 = vpop.f32.mrf.mxu0  ;;  %2693 = vmatmul.mubr.f32.gmra.mxu1 %v2505_v42 }
 0xdc9   :  { %v2513_v53 = vpop.f32.mrf.mxu0 }
 0xdca   :  { %2697 = vmatprep.mubr.f32.mxu1 %v2513_v53 }
 0xdcb   :  { %v2517_v57 = vpop.f32.mrf.mxu0  ;;  %2698 = vmatmul.mubr.f32.gmra.mxu1 %v2511_v52 }
 0xdcd   :  { %v2519_v0 = vpop.f32.mrf.mxu0 }
 0xdce   :  { %2702 = vmatprep.mubr.f32.mxu1 %v2519_v0 }
 0xdcf   :  { %v2523_v14 = vpop.f32.mrf.mxu0  ;;  %2703 = vmatmul.mubr.f32.gmra.mxu1 %v2517_v57 }
 0xdd1   :  { %v2525_v33 = vpop.f32.mrf.mxu0 }
 0xdd2   :  { %2707 = vmatprep.mubr.f32.mxu1 %v2525_v33 }
 0xdd3   :  { %v2529_v13 = vpop.f32.mrf.mxu0  ;;  %2708 = vmatmul.mubr.f32.gmra.mxu1 %v2523_v14 }
 0xdd5   :  { %v2531_v10 = vpop.f32.mrf.mxu0 }
 0xdd6   :  { %2712 = vmatprep.mubr.f32.mxu1 %v2531_v10 }
 0xdd7   :  { %v2535_v34 = vpop.f32.mrf.mxu0  ;;  %2713 = vmatmul.mubr.f32.gmra.mxu1 %v2529_v13 }
 0xdd9   :  { %v2537_v35 = vpop.f32.mrf.mxu0 }
 0xdda   :  { %2717 = vmatprep.mubr.f32.mxu1 %v2537_v35 }
 0xddb   :  { %v2541_v41 = vpop.f32.mrf.mxu0  ;;  %2718 = vmatmul.mubr.f32.gmra.mxu1 %v2535_v34 }
 0xddd   :  { %v2543_v24 = vpop.f32.mrf.mxu0 }
 0xdde   :  { %2722 = vmatprep.mubr.f32.mxu1 %v2543_v24 }
 0xddf   :  { %v2547_v30 = vpop.f32.mrf.mxu0  ;;  %2723 = vmatmul.mubr.f32.gmra.mxu1 %v2541_v41 }
 0xde1   :  { %v2549_v26 = vpop.f32.mrf.mxu0 }
 0xde2   :  { %2727 = vmatprep.mubr.f32.mxu1 %v2549_v26 }
 0xde3   :  { %2728 = vmatmul.mubr.f32.gmra.mxu1 %v2547_v30 }
 0xde4   :  { %4072 = vmatprep.mubr.msk.f32.mxu1 %vm4390_vm0, %v4389_v32 }
 0xe67   :  { %v3496_v43 = vpop.f32.mrf.mxu1 }
 0xe69   :  { %v3497_v20 = vpop.f32.mrf.mxu1 }
 0xe6a   :  { %v5055_v22 = vadd.f32 %v3497_v20, %v3496_v43 }
 0xe6b   :  { %v3499_v48 = vpop.f32.mrf.mxu1 }
 0xe6d   :  { %v3500_v29 = vpop.f32.mrf.mxu1 }
 0xe6e   :  { %v5057_v36 = vadd.f32 %v3500_v29, %v3499_v48 }
 0xe6f   :  { %v3502_v9 = vpop.f32.mrf.mxu1 }
 0xe71   :  { %v3503_v38 = vpop.f32.mrf.mxu1 }
 0xe72   :  { %v5059_v46 = vadd.f32 %v3503_v38, %v3502_v9 }
 0xe73   :  { %v3505_v8 = vpop.f32.mrf.mxu1 }
 0xe75   :  { %v3506_v17 = vpop.f32.mrf.mxu1 }
 0xe76   :  { %v5061_v11 = vadd.f32 %v3506_v17, %v3505_v8 }
 0xe77   :  { %v3508_v51 = vpop.f32.mrf.mxu1 }
 0xe78   :  { %v2670_v4 = vadd.f32 %v5061_v11, %v5073_v59 }
 0xe79   :  { %v3509_v62 = vpop.f32.mrf.mxu1 }
 0xe7a   :  { %v5063_v6 = vadd.f32 %v3509_v62, %v3508_v51 }
 0xe7b   :  { %v5065_v3 = vpop.f32.mrf.mxu1 }
 0xe7d   :  { %v5067_v21 = vpop.f32.mrf.mxu1 }
 0xe7f   :  { %v3514_v47 = vpop.f32.mrf.mxu1 }
 0xe81   :  { %v3515_v55 = vpop.f32.mrf.mxu1 }
 0xe82   :  { %v3516_v51 = vadd.f32 %v3515_v55, %v3514_v47 }
 0xe83   :  { %v3517_v31 = vpop.f32.mrf.mxu1 }
 0xe85   :  { %v3518_v54 = vpop.f32.mrf.mxu1 }
 0xe86   :  { %v3519_v9 = vadd.f32 %v3518_v54, %v3517_v31  ;;  %v3513_v31 = vadd.f32 %v5067_v21, %v5065_v3  ;;  %v2685_v54 = vadd.f32 %v3516_v51, %v5073_v59 }
 0xe87   :  { %v3520_v37 = vpop.f32.mrf.mxu1 }
 0xe88   :  { %v2690_v62 = vadd.f32 %v3519_v9, %v5073_v59  ;;  %v2680_v47 = vadd.f32 %v3513_v31, %v5073_v59  ;;  %v5122_v55 = vmax.f32 %v2685_v54, 0.0 }
 0xe89   :  { %v3521_v27 = vpop.f32.mrf.mxu1 }
 0xe8a   :  { %v3522_v56 = vadd.f32 %v3521_v27, %v3520_v37  ;;  %v5128_v3 = vmax.f32 %v2680_v47, 0.0  ;;  %v2755_v21 = vmul.f32 %v5122_v55, %v5122_v55 }
 0xe8b   :  { %v3523_v25 = vpop.f32.mrf.mxu1 }
 0xe8c   :  { %v2695_v53 = vadd.f32 %v3522_v56, %v5073_v59 }
 0xe8d   :  { %v3524_v40 = vpop.f32.mrf.mxu1 }
 0xe8e   :  { %v3525_v45 = vadd.f32 %v3524_v40, %v3523_v25  ;;  %v5094_v35 = vmax.f32 %v2695_v53, 0.0  ;;  %v5117_v25 = vmax.f32 %v2690_v62, 0.0 }
 0xe8f   :  { %v3526_v44 = vpop.f32.mrf.mxu1 }
 0xe90   :  { %v2700_v2 = vadd.f32 %v3525_v45, %v5073_v59  ;;  %v2757_v29 = vmul.f32 %v5094_v35, %v5094_v35 }
 0xe91   :  { %v3527_v50 = vpop.f32.mrf.mxu1 }
 0xe92   :  { %v3528_v23 = vadd.f32 %v3527_v50, %v3526_v44  ;;  %v5088_v0 = vmax.f32 %v2700_v2, 0.0  ;;  %v2756_v44 = vmul.f32 %v5117_v25, %v5117_v25  ;;  %v2675_v50 = vadd.f32 %v5063_v6, %v5073_v59 }
 0xe93   :  { %v3529_v1 = vpop.f32.mrf.mxu1 }
 0xe94   :  { %v2705_v5 = vadd.f32 %v3528_v23, %v5073_v59  ;;  %v2758_v30 = vmul.f32 %v5088_v0, %v5088_v0  ;;  %v2754_v23 = vmul.f32 %v5128_v3, %v5128_v3 }
 0xe95   :  { %v3530_v63 = vpop.f32.mrf.mxu1 }
 0xe96   :  { %v3531_v60 = vadd.f32 %v3530_v63, %v3529_v1  ;;  %v5080_v39 = vmax.f32 %v2705_v5, 0.0  ;;  %v5134_v1 = vmax.f32 %v2675_v50, 0.0  ;;  %v2665_v63 = vadd.f32 %v5059_v46, %v5073_v59 }
 0xe97   :  { %v3532_v18 = vpop.f32.mrf.mxu1  ;;  %v2655_v5 = vadd.f32 %v5055_v22, %v5073_v59 }
 0xe98   :  { %v2710_v49 = vadd.f32 %v3531_v60, %v5073_v59  ;;  %v2759_v33 = vmul.f32 %v5080_v39, %v5080_v39  ;;  %v5140_v60 = vmax.f32 %v2670_v4, 0.0  ;;  %v2753_v6 = vmul.f32 %v5134_v1, %v5134_v1 }
 0xe99   :  { %v3533_v7 = vpop.f32.mrf.mxu1  ;;  %v5146_v45 = vmax.f32 %v2665_v63, 0.0 }
 0xe9a   :  { %v5077_v15 = vmax.f32 %v2710_v49, 0.0  ;;  %v3534_v28 = vadd.f32 %v3533_v7, %v3532_v18  ;;  %v2660_v18 = vadd.f32 %v5057_v36, %v5073_v59  ;;  %v2752_v11 = vmul.f32 %v5140_v60, %v5140_v60 }
 0xe9b   :  { %v3535_v19 = vpop.f32.mrf.mxu1  ;;  %v2751_v46 = vmul.f32 %v5146_v45, %v5146_v45  ;;  %v5156_v7 = vmax.f32 %v2655_v5, 0.0 }
 0xe9c   :  { %v2715_v58 = vadd.f32 %v3534_v28, %v5073_v59  ;;  %v2760_v42 = vmul.f32 %v5077_v15, %v5077_v15  ;;  %v5152_v49 = vmax.f32 %v2660_v18, 0.0 }
 0xe9d   :  { %v3536_v12 = vpop.f32.mrf.mxu1  ;;  %v2749_v28 = vmul.f32 %v5156_v7, %v5156_v7 }
 0xe9e   :  { %v5085_v52 = vmax.f32 %v2715_v58, 0.0  ;;  %2787 = vadd.xlane.f32.xlu0 %v2760_v42  ;;  %v3537_v14 = vadd.f32 %v3536_v12, %v3535_v19  ;;  %v2750_v36 = vmul.f32 %v5152_v49, %v5152_v49 }
 0xe9f   :  { %v3538_v57 = vpop.f32.mrf.mxu1 }
 0xea0   :  { %v2761_v13 = vmul.f32 %v5085_v52, %v5085_v52  ;;  %v2720_v41 = vadd.f32 %v3537_v14, %v5073_v59 }
 0xea1   :  { %v3539_v10 = vpop.f32.mrf.mxu1 }
 0xea2   :  { %2785 = vadd.xlane.f32.xlu0 %v2759_v33  ;;  %2789 = vadd.xlane.f32.xlu1 %v2761_v13  ;;  %v3540_v24 = vadd.f32 %v3539_v10, %v3538_v57  ;;  %v5099_v43 = vmax.f32 %v2720_v41, 0.0 }
 0xea3   :  { %v3541_v34 = vpop.f32.mrf.mxu1 }
 0xea4   :  { %v2725_v20 = vadd.f32 %v3540_v24, %v5073_v59  ;;  %v2762_v17 = vmul.f32 %v5099_v43, %v5099_v43 }
 0xea5   :  { %v3542_v26 = vpop.f32.mrf.mxu1 }
 0xea6   :  { %2783 = vadd.xlane.f32.xlu0 %v2758_v30  ;;  %v3543_v48 = vadd.f32 %v3542_v26, %v3541_v34  ;;  %v5104_v38 = vmax.f32 %v2725_v20, 0.0 }
 0xea8   :  { %v2730_v8 = vadd.f32 %v3543_v48, %v5073_v59  ;;  %v2763_v27 = vmul.f32 %v5104_v38, %v5104_v38 }
 0xeaa   :  { %2781 = vadd.xlane.f32.xlu0 %v2757_v29  ;;  %v5110_v37 = vmax.f32 %v2730_v8, 0.0 }
 0xeac   :  { %v2764_v40 = vmul.f32 %v5110_v37, %v5110_v37 }
 0xeae   :  { %2791 = vadd.xlane.f32.xlu0 %v2762_v17 }
 0xeb2   :  { %2793 = vadd.xlane.f32.xlu0 %v2763_v27 }
 0xeb6   :  { %2795 = vadd.xlane.f32.xlu0 %v2764_v40  ;;  %v4259_v40 = vld [vmem:[#allocation2 + $0x78] sm:$0xff] }
 0xeba   :  { %2779 = vadd.xlane.f32.xlu0 %v2756_v44 }
 0xebe   :  { %2777 = vadd.xlane.f32.xlu0 %v2755_v21 }
 0xec2   :  { %2775 = vadd.xlane.f32.xlu0 %v2754_v23  ;;  %v4260_v23 = vld [vmem:[#allocation2 + $0x70] sm:$0xff] }
 0xec6   :  { %2773 = vadd.xlane.f32.xlu0 %v2753_v6 }
 0xeca   :  { %2771 = vadd.xlane.f32.xlu0 %v2752_v11 }
 0xece   :  { %2769 = vadd.xlane.f32.xlu0 %v2751_v46 }
 0xed2   :  { %2767 = vadd.xlane.f32.xlu0 %v2750_v36 }
 0xed6   :  { %2765 = vadd.xlane.f32.xlu0 %v2749_v28 }
 0xf27   :  { %v2788_v56 = vpop.xlane.xlu0 %2787 }
 0xf28   :  { %v2808_v13 = vmax.f32 %v2788_v56, 1e-24 }
 0xf2b   :  { %v2786_v19 = vpop.xlane.xlu0 %2785  ;;  %v2790_v12 = vpop.xlane.xlu1 %2789 }
 0xf2c   :  { %v2809_v14 = vmax.f32 %v2790_v12, 1e-24  ;;  %v2807_v34 = vmax.f32 %v2786_v19, 1e-24 }
 0xf2f   :  { %v2784_v2 = vpop.xlane.xlu0 %2783 }
 0xf30   :  { %v2806_v41 = vmax.f32 %v2784_v2, 1e-24 }
 0xf33   :  { %v2782_v22 = vpop.xlane.xlu0 %2781 }
 0xf34   :  { %v2805_v30 = vmax.f32 %v2782_v22, 1e-24 }
 0xf37   :  { %v2792_v59 = vpop.xlane.xlu0 %2791 }
 0xf38   :  { %v2810_v53 = vmax.f32 %v2792_v59, 1e-24 }
 0xf3b   :  { %v2794_v58 = vpop.xlane.xlu0 %2793 }
 0xf3c   :  { %v2811_v42 = vmax.f32 %v2794_v58, 1e-24 }
 0xf3e   :  { %4225 = vrsqrt.f32 %v2811_v42 }
 0xf3f   :  { %v2796_v57 = vpop.xlane.xlu0 %2795  ;;  %4227 = vrsqrt.f32 %v2810_v53 }
 0xf40   :  { %v2812_v33 = vmax.f32 %v2796_v57, 1e-24 }
 0xf42   :  { %4229 = vrsqrt.f32 %v2812_v33 }
 0xf43   :  { %v2780_v10 = vpop.xlane.xlu0 %2779  ;;  %4231 = vrsqrt.f32 %v2809_v14 }
 0xf44   :  { %4233 = vrsqrt.f32 %v2808_v13  ;;  %v2804_v26 = vmax.f32 %v2780_v10, 1e-24 }
 0xf45   :  { %4235 = vrsqrt.f32 %v2807_v34 }
 0xf46   :  { %4237 = vrsqrt.f32 %v2806_v41 }
 0xf47   :  { %v2778_v24 = vpop.xlane.xlu0 %2777  ;;  %4239 = vrsqrt.f32 %v2805_v30 }
 0xf48   :  { %v2803_v48 = vmax.f32 %v2778_v24, 1e-24  ;;  %4241 = vrsqrt.f32 %v2804_v26 }
 0xf4a   :  { %4243 = vrsqrt.f32 %v2803_v48 }
 0xf4b   :  { %v2776_v20 = vpop.xlane.xlu0 %2775  ;;  %v4226_v29 = vpop.eup %4225 }
 0xf4c   :  { %v4228_v9 = vpop.eup %4227  ;;  %v2802_v8 = vmax.f32 %v2776_v20, 1e-24  ;;  %v2843_v31 = vmul.f32 %v4226_v29, %v5104_v38  ;;  %v4261_v38 = vld [vmem:[#allocation2 + $0x68] sm:$0xff] }
 0xf4d   :  { %v2842_v44 = vmul.f32 %v4228_v9, %v5099_v43  ;;  %v4269_v9 = vld [vmem:[#allocation2 + $0x28] sm:$0xff] }
 0xf4e   :  { %4245 = vrsqrt.f32 %v2802_v8  ;;  %v2859_v63 = vadd.f32 %v4260_v23, %v2843_v31  ;;  %v2861_v23 = vld [vmem:[#allocation5 + $0x50] sm:$0xff] }
 0xf4f   :  { %v4230_v17 = vpop.eup %4229  ;;  %v2774_v51 = vpop.xlane.xlu0 %2773  ;;  %v2858_v43 = vadd.f32 %v4261_v38, %v2842_v44 }
 0xf50   :  { %v2801_v62 = vmax.f32 %v2774_v51, 1e-24  ;;  %v2844_v27 = vmul.f32 %v4230_v17, %v5110_v37  ;;  %v4232_v54 = vpop.eup %4231  ;;  %v4270_v51 = vld [vmem:[#allocation2 + $0x20] sm:$0xff] }
 0xf51   :  { %v4234_v50 = vpop.eup %4233  ;;  %v2841_v6 = vmul.f32 %v4232_v54, %v5085_v52  ;;  %v4262_v52 = vld [vmem:[#allocation2 + $0x60] sm:$0xff]  ;;  %v4272_v54 = vld [vmem:[#allocation2 + $0x10] sm:$0xff] }
 0xf52   :  { %v2860_v47 = vadd.f32 %v4259_v40, %v2844_v27  ;;  %4247 = vrsqrt.f32 %v2801_v62  ;;  %v4236_v18 = vpop.eup %4235  ;;  %v2840_v37 = vmul.f32 %v4234_v50, %v5077_v15  ;;  %v4263_v15 = vld [vmem:[#allocation2 + $0x58] sm:$0xff] }
 0xf53   :  { %v2772_v21 = vpop.xlane.xlu0 %2771  ;;  %v4238_v11 = vpop.eup %4237  ;;  %v2857_v36 = vadd.f32 %v4262_v52, %v2841_v6  ;;  %v2839_v28 = vmul.f32 %v4236_v18, %v5080_v39  ;;  %v4264_v39 = vld [vmem:[#allocation2 + $0x50] sm:$0xff]  ;;  %v4271_v27 = vld [vmem:[#allocation2 + $0x18] sm:$0xff]  ;;  %v2863_v6 = vld [vmem:[#allocation5 + $0x60] sm:$0xff] }
 0xf54   :  { %v2800_v4 = vmax.f32 %v2772_v21, 1e-24  ;;  %4038 = vmatpush3.msra.mxu0 %v2860_v47  ;;  %4094 = vmatpush3.msra.mxu1 %v2860_v47  ;;  %v4240_v56 = vpop.eup %4239  ;;  %v2856_v19 = vadd.f32 %v4263_v15, %v2840_v37  ;;  %v2838_v2 = vmul.f32 %v4238_v11, %v5088_v0  ;;  %v4265_v0 = vld [vmem:[#allocation2 + $0x48] sm:$0xff]  ;;  %v2966_v15 = vsub.s32 6, %v4492_v61 }
 0xf55   :  { %4039 = vmatprep.subr.mxu0 %v4389_v32  ;;  %4079 = vmatprep.subr.mxu1 %v4389_v32  ;;  %v4242_v22 = vpop.eup %4241  ;;  %v2855_v42 = vadd.f32 %v4264_v39, %v2839_v28  ;;  %v2837_v12 = vmul.f32 %v4240_v56, %v5094_v35  ;;  %v4266_v35 = vld [vmem:[#allocation2 + $0x40] sm:$0xff]  ;;  %v2955_v28 = vsub.s32 4, %v4492_v61 }
 0xf56   :  { %4249 = vrsqrt.f32 %v2800_v4  ;;  %4040 = vmatpush3.msra.mxu0 %v2859_v63  ;;  %4095 = vmatpush3.msra.mxu1 %v2859_v63  ;;  %v2854_v57 = vadd.f32 %v4265_v0, %v2838_v2  ;;  %v2836_v14 = vmul.f32 %v4242_v22, %v5117_v25  ;;  %v4267_v25 = vld [vmem:[#allocation2 + $0x38] sm:$0xff]  ;;  %v2862_v63 = vld [vmem:[#allocation5 + $0x58] sm:$0xff] }
 0xf57   :  { %4041 = vmatprep.subr.mxu0 %v4389_v32  ;;  %4080 = vmatprep.subr.mxu1 %v4389_v32  ;;  %v2770_v5 = vpop.xlane.xlu0 %2769  ;;  %v4244_v53 = vpop.eup %4243  ;;  %v2853_v34 = vadd.f32 %v4266_v35, %v2837_v12  ;;  %v2956_v56 = vrot.slane %v5070_v16, %v2955_v28 }
 0xf58   :  { %v2799_v46 = vmax.f32 %v2770_v5, 1e-24  ;;  %4042 = vmatpush3.msra.mxu0 %v2858_v43  ;;  %4096 = vmatpush3.msra.mxu1 %v2858_v43  ;;  %v2835_v41 = vmul.f32 %v4244_v53, %v5122_v55  ;;  %v2852_v30 = vadd.f32 %v4267_v25, %v2836_v14  ;;  %v4268_v55 = vld [vmem:[#allocation2 + $0x30] sm:$0xff] }
 0xf59   :  { %4043 = vmatprep.subr.mxu0 %v4389_v32  ;;  %4081 = vmatprep.subr.mxu1 %v4389_v32 }
 0xf5a   :  { %4251 = vrsqrt.f32 %v2799_v46  ;;  %4044 = vmatpush3.msra.mxu0 %v2857_v36  ;;  %4097 = vmatpush3.msra.mxu1 %v2857_v36  ;;  %v2851_v48 = vadd.f32 %v4268_v55, %v2835_v41 }
 0xf5b   :  { %4045 = vmatprep.subr.mxu0 %v4389_v32  ;;  %4082 = vmatprep.subr.mxu1 %v4389_v32  ;;  %v2768_v59 = vpop.xlane.xlu0 %2767  ;;  %v4246_v33 = vpop.eup %4245 }
 0xf5c   :  { %v2798_v58 = vmax.f32 %v2768_v59, 1e-24  ;;  %4046 = vmatpush3.msra.mxu0 %v2856_v19  ;;  %4098 = vmatpush3.msra.mxu1 %v2856_v19  ;;  %v2834_v26 = vmul.f32 %v4246_v33, %v5128_v3  ;;  %v2967_v59 = vrot.slane %v5070_v16, %v2966_v15 }
 0xf5d   :  { %4047 = vmatprep.subr.mxu0 %v4389_v32  ;;  %4083 = vmatprep.subr.mxu1 %v4389_v32 }
 0xf5e   :  { %4253 = vrsqrt.f32 %v2798_v58  ;;  %4048 = vmatpush3.msra.mxu0 %v2855_v42  ;;  %4099 = vmatpush3.msra.mxu1 %v2855_v42  ;;  %v2850_v8 = vadd.f32 %v4269_v9, %v2834_v26 }
 0xf5f   :  { %4049 = vmatprep.subr.mxu0 %v4389_v32  ;;  %4084 = vmatprep.subr.mxu1 %v4389_v32  ;;  %v2766_v13 = vpop.xlane.xlu0 %2765  ;;  %v4248_v24 = vpop.eup %4247 }
 0xf60   :  { %v2797_v10 = vmax.f32 %v2766_v13, 1e-24  ;;  %4050 = vmatpush3.msra.mxu0 %v2854_v57  ;;  %4100 = vmatpush3.msra.mxu1 %v2854_v57  ;;  %v2833_v29 = vmul.f32 %v4248_v24, %v5134_v1 }
 0xf61   :  { %4051 = vmatprep.subr.mxu0 %v4389_v32  ;;  %4085 = vmatprep.subr.mxu1 %v4389_v32 }
 0xf62   :  { %4255 = vrsqrt.f32 %v2797_v10  ;;  %4052 = vmatpush3.msra.mxu0 %v2853_v34  ;;  %4101 = vmatpush3.msra.mxu1 %v2853_v34  ;;  %v2849_v62 = vadd.f32 %v4270_v51, %v2833_v29 }
 0xf63   :  { %v4250_v20 = vpop.eup %4249  ;;  %4053 = vmatprep.subr.mxu0 %v4389_v32  ;;  %4086 = vmatprep.subr.mxu1 %v4389_v32 }
 0xf64   :  { %4054 = vmatpush3.msra.mxu0 %v2852_v30  ;;  %4102 = vmatpush3.msra.mxu1 %v2852_v30  ;;  %v2832_v3 = vmul.f32 %v4250_v20, %v5140_v60 }
 0xf65   :  { %4055 = vmatprep.subr.mxu0 %v4389_v32  ;;  %4087 = vmatprep.subr.mxu1 %v4389_v32 }
 0xf66   :  { %4056 = vmatpush3.msra.mxu0 %v2851_v48  ;;  %4103 = vmatpush3.msra.mxu1 %v2851_v48  ;;  %v2848_v31 = vadd.f32 %v4271_v27, %v2832_v3 }
 0xf67   :  { %v4252_v17 = vpop.eup %4251  ;;  %4057 = vmatprep.subr.mxu0 %v4389_v32  ;;  %4088 = vmatprep.subr.mxu1 %v4389_v32 }
 0xf68   :  { %4058 = vmatpush3.msra.mxu0 %v2850_v8  ;;  %4104 = vmatpush3.msra.mxu1 %v2850_v8  ;;  %v2831_v1 = vmul.f32 %v4252_v17, %v5146_v45  ;;  %v4273_v45 = vld [vmem:[#allocation2 + $0x8] sm:$0xff] }
 0xf69   :  { %4059 = vmatprep.subr.mxu0 %v4389_v32  ;;  %4089 = vmatprep.subr.mxu1 %v4389_v32 }
 0xf6a   :  { %4060 = vmatpush3.msra.mxu0 %v2849_v62  ;;  %4105 = vmatpush3.msra.mxu1 %v2849_v62  ;;  %v2847_v40 = vadd.f32 %v4272_v54, %v2831_v1 }
 0xf6b   :  { %v4254_v60 = vpop.eup %4253  ;;  %4061 = vmatprep.subr.mxu0 %v4389_v32  ;;  %4090 = vmatprep.subr.mxu1 %v4389_v32 }
 0xf6c   :  { %4062 = vmatpush3.msra.mxu0 %v2848_v31  ;;  %4106 = vmatpush3.msra.mxu1 %v2848_v31  ;;  %v2830_v47 = vmul.f32 %v4254_v60, %v5152_v49  ;;  %v4274_v49 = vld [vmem:[#allocation2] sm:$0xff] }
 0xf6d   :  { %4063 = vmatprep.subr.mxu0 %v4389_v32  ;;  %4091 = vmatprep.subr.mxu1 %v4389_v32 }
 0xf6e   :  { %4064 = vmatpush3.msra.mxu0 %v2847_v40  ;;  %4107 = vmatpush3.msra.mxu1 %v2847_v40  ;;  %v2846_v44 = vadd.f32 %v4273_v45, %v2830_v47 }
 0xf6f   :  { %v4256_v50 = vpop.eup %4255  ;;  %4065 = vmatprep.subr.mxu0 %v4389_v32  ;;  %4092 = vmatprep.subr.mxu1 %v4389_v32 }
 0xf70   :  { %4066 = vmatpush3.msra.mxu0 %v2846_v44  ;;  %4108 = vmatpush3.msra.mxu1 %v2846_v44  ;;  %v2829_v21 = vmul.f32 %v4256_v50, %v5156_v7 }
 0xf71   :  { %4067 = vmatprep.subr.mxu0 %v4389_v32  ;;  %4093 = vmatprep.subr.mxu1 %v4389_v32 }
 0xf72   :  { %v2845_v4 = vadd.f32 %v4274_v49, %v2829_v21 }
 0xf74   :  { %4068 = vmatpush3.msra.mxu0 %v2845_v4  ;;  %4109 = vmatpush3.msra.mxu1 %v2845_v4 }
 0xf75   :  { %4070 = vmatmul.mubr.f32.vlgmr.msra.gmra.mxu0 %v2861_v23  ;;  %4073 = vmatmul.mubr.f32.vlgmr.msra.gmra.mxu1 %v2862_v63 }
 0xf76   :  { %4075 = vmatprep.mubr.msk.f32.mxu1 %vm4390_vm0, %v4389_v32  ;;  %v2960_v32 = vsub.s32 5, %v4492_v61 }
 0xf78   :  { %v2961_v2 = vrot.slane %v5070_v16, %v2960_v32 }
 0xf79   :  { %4076 = vmatmul.mubr.f32.gmra.mxu1 %v2863_v6 }
0x1035   :  { %v2930_v18 = vpop.f32.mrf.mxu0  ;;  %v2935_v38 = vpop.f32.mrf.mxu1 }
0x1036   :  { %v2944_v7 = vmul.f32 %v2935_v38, %v2930_v18 }
0x1037   :  { %v4074_v43 = vpop.f32.mrf.mxu1  ;;  %v4071_v37 = vpop.f32.mrf.mxu0 }
0x1038   :  { %v2946_v11 = vsel %vm2945_vm4, %v2944_v7, 0.0 }
0x1039   :  { %v2940_v5 = vpop.f32.mrf.mxu1  ;;  %2947 = vadd.xlane.f32.xlu0 %v2946_v11 }
0x103a   :  { %v2949_v46 = vmul.f32 %v2940_v5, %v2930_v18 }
0x103b   :  { %v4077_v52 = vpop.f32.mrf.mxu1 }
0x103c   :  { %v2950_v36 = vsel %vm2945_vm4, %v2949_v46, 0.0 }
0x103d   :  { %2951 = vadd.xlane.f32.xlu0 %v2950_v36 }
0x10c2   :  { %v2948_v19 = vpop.xlane.xlu0 %2947 }
0x10c3   :  { %v2957_v22 = vadd.f32 %v2956_v56, %v2948_v19 }
0x10c5   :  { %v2962_v42 = vadd.f32 %v2961_v2, %v2957_v22 }
0x10c6   :  { %v2952_v58 = vpop.xlane.xlu0 %2951 }
0x10c7   :  { %v2963_v39 = vadd.f32 %v2956_v56, %v2952_v58 }
0x10c9   :  { %v2968_v12 = vadd.f32 %v2967_v59, %v2963_v39 }
0x10cb   :  { %v2969_v53 = vsub.f32 %v2968_v12, %v2962_v42 }
0x10cd   :  { %v2970_v0 = vadd.f32 1.0, %v2969_v53 }
0x10cf   :  { %v2971_v57 = vmax.f32 %v2970_v0, 0.0 }
0x10d1   :  { %2973 = vst.msk [vmem:[#allocation10] sm:$0x3f] %vm2972_vm5, %v2971_v57 }
0x10d2   :  { %4366 = shalt.err (!%p4363_p10)
}
0x10d3   :  { %2983 = dma.vmem_to_hbm [thread:$0]  %s2981_s3, 128, %s5223_s4, [#allocation4]  }
0x10d4   :  { %4381 = dma.done.wait [#allocation4], 128  }
0x10d5   :  { %4382 = vsyncadd [#allocation4], 4294967168 }
0x10d6   :  { %2987 = vsyncpa [#allocation3], 1 }
0x10d7   :  { %2988 = vsyncpa [#allocation6], 1 }
0x10d8   :  { %2989 = vsyncpa [#allocation9], 1 }
0x10d9   :  { %2990 = vsyncpa [#allocation4], 1 }

</bundles_post_ra>
